<compile_context>
chip_gen: v6e
topology: v6e:2x2x1
jax: 0.10.0
libtpu: 0.0.40
codegen_flags: <defaults>
</compile_context>

<pallas_src>
import functools

import jax
import jax.numpy as jnp
from jax.experimental import pallas as pl
from jax.experimental.pallas import tpu as pltpu

PAD = 2      # Conv2d(..., padding=2)
KSIZE = 3    # kernel_size=3


def _conv3x3_kernel(w_ref, x_ref, o_ref, xp_ref, *, c_in, c_out, h, w):
    """One grid step computes ALL output channels for one batch element.

    w_ref  : SMEM (c_out*c_in*9,)            flattened OIHW weights (scalar reads)
    x_ref  : VMEM (1, c_in, h, w)            unpadded input image for this batch
    o_ref  : VMEM (1, c_out, h+2, w+2)       all output channels for this batch
    xp_ref : VMEM (c_in, h+2*PAD, w+2*PAD)   scratch: zero-padded image
    """
    h_out = h + 2
    w_out = w + 2

    # ---- Fold the spatial zero-padding into the kernel: zero + interior store,
    # done ONCE per image (c_out no longer multiplies this work).
    xp_ref[...] = jnp.zeros_like(xp_ref)
    for ci in range(c_in):
        xp_ref[ci, PAD:PAD + h, PAD:PAD + w] = x_ref[0, ci].astype(xp_ref.dtype)

    # ---- 3x3 conv as shifted multiply-adds on the VPU.
    # One f32 accumulator plane per output channel (c_out * ceil(h_out/8) vregs
    # at this shape); every tap load is shared by all c_out output channels.
    accs = [jnp.zeros((h_out, w_out), jnp.float32) for _ in range(c_out)]
    ck = c_in * KSIZE * KSIZE
    for ci in range(c_in):
        for kh in range(KSIZE):
            for kw in range(KSIZE):
                # Direct offset load from the padded VMEM scratch (vld slot),
                # not an in-register lane-shift slice of a wider row load.
                tap = xp_ref[ci, kh:kh + h_out, kw:kw + w_out].astype(jnp.float32)
                base = (ci * KSIZE + kh) * KSIZE + kw
                for co in range(c_out):
                    w_s = w_ref[co * ck + base]          # SMEM scalar read
                    accs[co] = accs[co] + w_s * tap

    for co in range(c_out):
        o_ref[0, co] = accs[co].astype(o_ref.dtype)


def conv1x1_forward(x_nchw, weight_oihw):
    """Forward pass matching nn.Conv2d(C, C, 3, stride=1, padding=2, bias=False).

    x_nchw      : (N, C, H, W)        NCHW (PyTorch convention)
    weight_oihw : (C_out, C_in, 3, 3) OIHW (PyTorch convention)
    returns     : (N, C_out, H+2, W+2) NCHW
    """
    n, c_in, h, w = x_nchw.shape
    c_out = weight_oihw.shape[0]
    h_out, w_out = h + 2, w + 2
    h_pad, w_pad = h + 2 * PAD, w + 2 * PAD

    # Tiny weight tensor: flatten and keep it whole in SMEM.
    # TODO(synk): move weights to a VMEM tile once 9*C_in*C_out scalar reads
    #             start to bind the 2-wide scalar slot (C >= ~32-64).
    w_flat = weight_oihw.reshape(-1)

    kernel = functools.partial(_conv3x3_kernel, c_in=c_in, c_out=c_out, h=h, w=w)

    itemsize = jnp.dtype(x_nchw.dtype).itemsize
    cost = pl.CostEstimate(
        flops=2 * n * c_out * c_in * KSIZE * KSIZE * h_out * w_out,
        transcendentals=0,
        bytes_accessed=(x_nchw.size + n * c_out * h_out * w_out) * itemsize
        + w_flat.size * jnp.dtype(w_flat.dtype).itemsize,
    )

    return pl.pallas_call(
        kernel,
        out_shape=jax.ShapeDtypeStruct((n, c_out, h_out, w_out), x_nchw.dtype),
        grid_spec=pltpu.PrefetchScalarGridSpec(
            num_scalar_prefetch=0,
            grid=(n,),                       # one step per image; >=2 steps keeps
                                             # both v7x TensorCores busy
            in_specs=[
                # Whole flattened weight vector, resident in SMEM.
                pl.BlockSpec(memory_space=pltpu.MemorySpace.SMEM),
                # Whole (unpadded) image for one batch element.
                pl.BlockSpec((1, c_in, h, w), lambda b: (b, 0, 0, 0)),
            ],
            out_specs=pl.BlockSpec((1, c_out, h_out, w_out),
                                   lambda b: (b, 0, 0, 0)),
            scratch_shapes=[pltpu.VMEM((c_in, h_pad, w_pad), x_nchw.dtype)],
        ),
        compiler_params=pltpu.CompilerParams(
            dimension_semantics=("parallel",),
            vmem_limit_bytes=32 * 1024 * 1024,
        ),
        cost_estimate=cost,
    )(w_flat, x_nchw)


if __name__ == "__main__":
    key = jax.random.PRNGKey(0)
    kx, kw = jax.random.split(key)

    N, C, H, W = 2, 4, 16, 16
    x = jax.random.normal(kx, (N, C, H, W), dtype=jnp.float32)
    # Conv2d weight shape: (C_out=C, C_in=C, 3, 3)
    weight = jax.random.normal(kw, (C, C, 3, 3), dtype=jnp.float32) * 0.1

    out = conv1x1_forward(x, weight)
    out = jax.block_until_ready(out)

    # Reference: XLA conv with the same semantics as torch Conv2d(padding=2).
    ref = jax.lax.conv_general_dilated(
        x, weight, window_strides=(1, 1), padding=((PAD, PAD), (PAD, PAD)),
        dimension_numbers=("NCHW", "OIHW", "NCHW"),
        precision=jax.lax.Precision.HIGHEST)
    assert out.shape == (N, C, H + 2, W + 2)
    assert jnp.allclose(out, ref, atol=1e-4, rtol=1e-4)

    print("KERNEL_OK")
</pallas_src>

<mosaic_0001>
module attributes {stable_mosaic.version = 11 : i64} {
  func.func @_conv3x3_kernel(%arg0: i32, %arg1: memref<144xf32, #tpu.memory_space<smem>>, %arg2: memref<1x4x16x16xf32, #tpu.memory_space<vmem>>, %arg3: memref<1x4x18x18xf32, #tpu.memory_space<vmem>>, %arg4: memref<4x20x20xf32, #tpu.memory_space<vmem>>) attributes {dimension_semantics = [#tpu.dimension_semantics<parallel>], iteration_bounds = array<i64: 2>, scalar_prefetch = 0 : i64, scratch_operands = 1 : i64, tpu.core_type = #tpu.core_type<tc>, window_params = [{transform_indices = @transform_0, window_bounds = array<i64: 144>}, {transform_indices = @transform_1, window_bounds = array<i64: 1, 4, 16, 16>}, {transform_indices = @transform_2, window_bounds = array<i64: 1, 4, 18, 18>}]} {
    %cst = arith.constant 0.000000e+00 : f32
    %0 = vector.broadcast %cst : f32 to vector<4x20x20xf32>
    %c0 = arith.constant 0 : index
    %c0_0 = arith.constant 0 : index
    %c0_1 = arith.constant 0 : index
    %1 = vector.load %arg4[%c0, %c0_0, %c0_1] : memref<4x20x20xf32, #tpu.memory_space<vmem>>, vector<4x20x20xf32>
    tpu.vector_store %arg4[%c0, %c0_0, %c0_1], %0 {strides = array<i32>} : memref<4x20x20xf32, #tpu.memory_space<vmem>>, vector<4x20x20xf32>,
    %c0_2 = arith.constant 0 : index
    %c0_3 = arith.constant 0 : index
    %c0_4 = arith.constant 0 : index
    %c0_5 = arith.constant 0 : index
    %2 = vector.load %arg2[%c0_2, %c0_3, %c0_4, %c0_5] : memref<1x4x16x16xf32, #tpu.memory_space<vmem>>, vector<1x1x16x16xf32>
    %3 = vector.shape_cast %2 : vector<1x1x16x16xf32> to vector<16x16xf32>
    %c0_6 = arith.constant 0 : index
    %c2 = arith.constant 2 : index
    %c2_7 = arith.constant 2 : index
    %4 = vector.load %arg4[%c0_6, %c2, %c2_7] : memref<4x20x20xf32, #tpu.memory_space<vmem>>, vector<1x16x16xf32>
    %5 = vector.shape_cast %4 : vector<1x16x16xf32> to vector<16x16xf32>
    %6 = vector.shape_cast %3 : vector<16x16xf32> to vector<1x16x16xf32>
    tpu.vector_store %arg4[%c0_6, %c2, %c2_7], %6 {strides = array<i32>} : memref<4x20x20xf32, #tpu.memory_space<vmem>>, vector<1x16x16xf32>,
    %c0_8 = arith.constant 0 : index
    %c1 = arith.constant 1 : index
    %c0_9 = arith.constant 0 : index
    %c0_10 = arith.constant 0 : index
    %7 = vector.load %arg2[%c0_8, %c1, %c0_9, %c0_10] : memref<1x4x16x16xf32, #tpu.memory_space<vmem>>, vector<1x1x16x16xf32>
    %8 = vector.shape_cast %7 : vector<1x1x16x16xf32> to vector<16x16xf32>
    %c1_11 = arith.constant 1 : index
    %c2_12 = arith.constant 2 : index
    %c2_13 = arith.constant 2 : index
    %9 = vector.load %arg4[%c1_11, %c2_12, %c2_13] : memref<4x20x20xf32, #tpu.memory_space<vmem>>, vector<1x16x16xf32>
    %10 = vector.shape_cast %9 : vector<1x16x16xf32> to vector<16x16xf32>
    %11 = vector.shape_cast %8 : vector<16x16xf32> to vector<1x16x16xf32>
    tpu.vector_store %arg4[%c1_11, %c2_12, %c2_13], %11 {strides = array<i32>} : memref<4x20x20xf32, #tpu.memory_space<vmem>>, vector<1x16x16xf32>,
    %c0_14 = arith.constant 0 : index
    %c2_15 = arith.constant 2 : index
    %c0_16 = arith.constant 0 : index
    %c0_17 = arith.constant 0 : index
    %12 = vector.load %arg2[%c0_14, %c2_15, %c0_16, %c0_17] : memref<1x4x16x16xf32, #tpu.memory_space<vmem>>, vector<1x1x16x16xf32>
    %13 = vector.shape_cast %12 : vector<1x1x16x16xf32> to vector<16x16xf32>
    %c2_18 = arith.constant 2 : index
    %c2_19 = arith.constant 2 : index
    %c2_20 = arith.constant 2 : index
    %14 = vector.load %arg4[%c2_18, %c2_19, %c2_20] : memref<4x20x20xf32, #tpu.memory_space<vmem>>, vector<1x16x16xf32>
    %15 = vector.shape_cast %14 : vector<1x16x16xf32> to vector<16x16xf32>
    %16 = vector.shape_cast %13 : vector<16x16xf32> to vector<1x16x16xf32>
    tpu.vector_store %arg4[%c2_18, %c2_19, %c2_20], %16 {strides = array<i32>} : memref<4x20x20xf32, #tpu.memory_space<vmem>>, vector<1x16x16xf32>,
    %c0_21 = arith.constant 0 : index
    %c3 = arith.constant 3 : index
    %c0_22 = arith.constant 0 : index
    %c0_23 = arith.constant 0 : index
    %17 = vector.load %arg2[%c0_21, %c3, %c0_22, %c0_23] : memref<1x4x16x16xf32, #tpu.memory_space<vmem>>, vector<1x1x16x16xf32>
    %18 = vector.shape_cast %17 : vector<1x1x16x16xf32> to vector<16x16xf32>
    %c3_24 = arith.constant 3 : index
    %c2_25 = arith.constant 2 : index
    %c2_26 = arith.constant 2 : index
    %19 = vector.load %arg4[%c3_24, %c2_25, %c2_26] : memref<4x20x20xf32, #tpu.memory_space<vmem>>, vector<1x16x16xf32>
    %20 = vector.shape_cast %19 : vector<1x16x16xf32> to vector<16x16xf32>
    %21 = vector.shape_cast %18 : vector<16x16xf32> to vector<1x16x16xf32>
    tpu.vector_store %arg4[%c3_24, %c2_25, %c2_26], %21 {strides = array<i32>} : memref<4x20x20xf32, #tpu.memory_space<vmem>>, vector<1x16x16xf32>,
    %cst_27 = arith.constant 0.000000e+00 : f32
    %22 = vector.broadcast %cst_27 : f32 to vector<18x18xf32>
    %cst_28 = arith.constant 0.000000e+00 : f32
    %23 = vector.broadcast %cst_28 : f32 to vector<18x18xf32>
    %cst_29 = arith.constant 0.000000e+00 : f32
    %24 = vector.broadcast %cst_29 : f32 to vector<18x18xf32>
    %cst_30 = arith.constant 0.000000e+00 : f32
    %25 = vector.broadcast %cst_30 : f32 to vector<18x18xf32>
    %c0_31 = arith.constant 0 : index
    %c0_32 = arith.constant 0 : index
    %c0_33 = arith.constant 0 : index
    %26 = vector.load %arg4[%c0_31, %c0_32, %c0_33] : memref<4x20x20xf32, #tpu.memory_space<vmem>>, vector<1x18x18xf32>
    %27 = vector.shape_cast %26 : vector<1x18x18xf32> to vector<18x18xf32>
    %c0_34 = arith.constant 0 : index
    %28 = memref.load %arg1[%c0_34] : memref<144xf32, #tpu.memory_space<smem>>
    %29 = vector.broadcast %28 : f32 to vector<18x18xf32>
    %30 = arith.mulf %29, %27 : vector<18x18xf32>
    %31 = arith.addf %22, %30 : vector<18x18xf32>
    %c36 = arith.constant 36 : index
    %32 = memref.load %arg1[%c36] : memref<144xf32, #tpu.memory_space<smem>>
    %33 = vector.broadcast %32 : f32 to vector<18x18xf32>
    %34 = arith.mulf %33, %27 : vector<18x18xf32>
    %35 = arith.addf %23, %34 : vector<18x18xf32>
    %c72 = arith.constant 72 : index
    %36 = memref.load %arg1[%c72] : memref<144xf32, #tpu.memory_space<smem>>
    %37 = vector.broadcast %36 : f32 to vector<18x18xf32>
    %38 = arith.mulf %37, %27 : vector<18x18xf32>
    %39 = arith.addf %24, %38 : vector<18x18xf32>
    %c108 = arith.constant 108 : index
    %40 = memref.load %arg1[%c108] : memref<144xf32, #tpu.memory_space<smem>>
    %41 = vector.broadcast %40 : f32 to vector<18x18xf32>
    %42 = arith.mulf %41, %27 : vector<18x18xf32>
    %43 = arith.addf %25, %42 : vector<18x18xf32>
    %c0_35 = arith.constant 0 : index
    %c0_36 = arith.constant 0 : index
    %c1_37 = arith.constant 1 : index
    %44 = vector.load %arg4[%c0_35, %c0_36, %c1_37] : memref<4x20x20xf32, #tpu.memory_space<vmem>>, vector<1x18x18xf32>
    %45 = vector.shape_cast %44 : vector<1x18x18xf32> to vector<18x18xf32>
    %c1_38 = arith.constant 1 : index
    %46 = memref.load %arg1[%c1_38] : memref<144xf32, #tpu.memory_space<smem>>
    %47 = vector.broadcast %46 : f32 to vector<18x18xf32>
    %48 = arith.mulf %47, %45 : vector<18x18xf32>
    %49 = arith.addf %31, %48 : vector<18x18xf32>
    %c37 = arith.constant 37 : index
    %50 = memref.load %arg1[%c37] : memref<144xf32, #tpu.memory_space<smem>>
    %51 = vector.broadcast %50 : f32 to vector<18x18xf32>
    %52 = arith.mulf %51, %45 : vector<18x18xf32>
    %53 = arith.addf %35, %52 : vector<18x18xf32>
    %c73 = arith.constant 73 : index
    %54 = memref.load %arg1[%c73] : memref<144xf32, #tpu.memory_space<smem>>
    %55 = vector.broadcast %54 : f32 to vector<18x18xf32>
    %56 = arith.mulf %55, %45 : vector<18x18xf32>
    %57 = arith.addf %39, %56 : vector<18x18xf32>
    %c109 = arith.constant 109 : index
    %58 = memref.load %arg1[%c109] : memref<144xf32, #tpu.memory_space<smem>>
    %59 = vector.broadcast %58 : f32 to vector<18x18xf32>
    %60 = arith.mulf %59, %45 : vector<18x18xf32>
    %61 = arith.addf %43, %60 : vector<18x18xf32>
    %c0_39 = arith.constant 0 : index
    %c0_40 = arith.constant 0 : index
    %c2_41 = arith.constant 2 : index
    %62 = vector.load %arg4[%c0_39, %c0_40, %c2_41] : memref<4x20x20xf32, #tpu.memory_space<vmem>>, vector<1x18x18xf32>
    %63 = vector.shape_cast %62 : vector<1x18x18xf32> to vector<18x18xf32>
    %c2_42 = arith.constant 2 : index
    %64 = memref.load %arg1[%c2_42] : memref<144xf32, #tpu.memory_space<smem>>
    %65 = vector.broadcast %64 : f32 to vector<18x18xf32>
    %66 = arith.mulf %65, %63 : vector<18x18xf32>
    %67 = arith.addf %49, %66 : vector<18x18xf32>
    %c38 = arith.constant 38 : index
    %68 = memref.load %arg1[%c38] : memref<144xf32, #tpu.memory_space<smem>>
    %69 = vector.broadcast %68 : f32 to vector<18x18xf32>
    %70 = arith.mulf %69, %63 : vector<18x18xf32>
    %71 = arith.addf %53, %70 : vector<18x18xf32>
    %c74 = arith.constant 74 : index
    %72 = memref.load %arg1[%c74] : memref<144xf32, #tpu.memory_space<smem>>
    %73 = vector.broadcast %72 : f32 to vector<18x18xf32>
    %74 = arith.mulf %73, %63 : vector<18x18xf32>
    %75 = arith.addf %57, %74 : vector<18x18xf32>
    %c110 = arith.constant 110 : index
    %76 = memref.load %arg1[%c110] : memref<144xf32, #tpu.memory_space<smem>>
    %77 = vector.broadcast %76 : f32 to vector<18x18xf32>
    %78 = arith.mulf %77, %63 : vector<18x18xf32>
    %79 = arith.addf %61, %78 : vector<18x18xf32>
    %c0_43 = arith.constant 0 : index
    %c1_44 = arith.constant 1 : index
    %c0_45 = arith.constant 0 : index
    %80 = vector.load %arg4[%c0_43, %c1_44, %c0_45] : memref<4x20x20xf32, #tpu.memory_space<vmem>>, vector<1x18x18xf32>
    %81 = vector.shape_cast %80 : vector<1x18x18xf32> to vector<18x18xf32>
    %c3_46 = arith.constant 3 : index
    %82 = memref.load %arg1[%c3_46] : memref<144xf32, #tpu.memory_space<smem>>
    %83 = vector.broadcast %82 : f32 to vector<18x18xf32>
    %84 = arith.mulf %83, %81 : vector<18x18xf32>
    %85 = arith.addf %67, %84 : vector<18x18xf32>
    %c39 = arith.constant 39 : index
    %86 = memref.load %arg1[%c39] : memref<144xf32, #tpu.memory_space<smem>>
    %87 = vector.broadcast %86 : f32 to vector<18x18xf32>
    %88 = arith.mulf %87, %81 : vector<18x18xf32>
    %89 = arith.addf %71, %88 : vector<18x18xf32>
    %c75 = arith.constant 75 : index
    %90 = memref.load %arg1[%c75] : memref<144xf32, #tpu.memory_space<smem>>
    %91 = vector.broadcast %90 : f32 to vector<18x18xf32>
    %92 = arith.mulf %91, %81 : vector<18x18xf32>
    %93 = arith.addf %75, %92 : vector<18x18xf32>
    %c111 = arith.constant 111 : index
    %94 = memref.load %arg1[%c111] : memref<144xf32, #tpu.memory_space<smem>>
    %95 = vector.broadcast %94 : f32 to vector<18x18xf32>
    %96 = arith.mulf %95, %81 : vector<18x18xf32>
    %97 = arith.addf %79, %96 : vector<18x18xf32>
    %c0_47 = arith.constant 0 : index
    %c1_48 = arith.constant 1 : index
    %c1_49 = arith.constant 1 : index
    %98 = vector.load %arg4[%c0_47, %c1_48, %c1_49] : memref<4x20x20xf32, #tpu.memory_space<vmem>>, vector<1x18x18xf32>
    %99 = vector.shape_cast %98 : vector<1x18x18xf32> to vector<18x18xf32>
    %c4 = arith.constant 4 : index
    %100 = memref.load %arg1[%c4] : memref<144xf32, #tpu.memory_space<smem>>
    %101 = vector.broadcast %100 : f32 to vector<18x18xf32>
    %102 = arith.mulf %101, %99 : vector<18x18xf32>
    %103 = arith.addf %85, %102 : vector<18x18xf32>
    %c40 = arith.constant 40 : index
    %104 = memref.load %arg1[%c40] : memref<144xf32, #tpu.memory_space<smem>>
    %105 = vector.broadcast %104 : f32 to vector<18x18xf32>
    %106 = arith.mulf %105, %99 : vector<18x18xf32>
    %107 = arith.addf %89, %106 : vector<18x18xf32>
    %c76 = arith.constant 76 : index
    %108 = memref.load %arg1[%c76] : memref<144xf32, #tpu.memory_space<smem>>
    %109 = vector.broadcast %108 : f32 to vector<18x18xf32>
    %110 = arith.mulf %109, %99 : vector<18x18xf32>
    %111 = arith.addf %93, %110 : vector<18x18xf32>
    %c112 = arith.constant 112 : index
    %112 = memref.load %arg1[%c112] : memref<144xf32, #tpu.memory_space<smem>>
    %113 = vector.broadcast %112 : f32 to vector<18x18xf32>
    %114 = arith.mulf %113, %99 : vector<18x18xf32>
    %115 = arith.addf %97, %114 : vector<18x18xf32>
    %c0_50 = arith.constant 0 : index
    %c1_51 = arith.constant 1 : index
    %c2_52 = arith.constant 2 : index
    %116 = vector.load %arg4[%c0_50, %c1_51, %c2_52] : memref<4x20x20xf32, #tpu.memory_space<vmem>>, vector<1x18x18xf32>
    %117 = vector.shape_cast %116 : vector<1x18x18xf32> to vector<18x18xf32>
    %c5 = arith.constant 5 : index
    %118 = memref.load %arg1[%c5] : memref<144xf32, #tpu.memory_space<smem>>
    %119 = vector.broadcast %118 : f32 to vector<18x18xf32>
    %120 = arith.mulf %119, %117 : vector<18x18xf32>
    %121 = arith.addf %103, %120 : vector<18x18xf32>
    %c41 = arith.constant 41 : index
    %122 = memref.load %arg1[%c41] : memref<144xf32, #tpu.memory_space<smem>>
    %123 = vector.broadcast %122 : f32 to vector<18x18xf32>
    %124 = arith.mulf %123, %117 : vector<18x18xf32>
    %125 = arith.addf %107, %124 : vector<18x18xf32>
    %c77 = arith.constant 77 : index
    %126 = memref.load %arg1[%c77] : memref<144xf32, #tpu.memory_space<smem>>
    %127 = vector.broadcast %126 : f32 to vector<18x18xf32>
    %128 = arith.mulf %127, %117 : vector<18x18xf32>
    %129 = arith.addf %111, %128 : vector<18x18xf32>
    %c113 = arith.constant 113 : index
    %130 = memref.load %arg1[%c113] : memref<144xf32, #tpu.memory_space<smem>>
    %131 = vector.broadcast %130 : f32 to vector<18x18xf32>
    %132 = arith.mulf %131, %117 : vector<18x18xf32>
    %133 = arith.addf %115, %132 : vector<18x18xf32>
    %c0_53 = arith.constant 0 : index
    %c2_54 = arith.constant 2 : index
    %c0_55 = arith.constant 0 : index
    %134 = vector.load %arg4[%c0_53, %c2_54, %c0_55] : memref<4x20x20xf32, #tpu.memory_space<vmem>>, vector<1x18x18xf32>
    %135 = vector.shape_cast %134 : vector<1x18x18xf32> to vector<18x18xf32>
    %c6 = arith.constant 6 : index
    %136 = memref.load %arg1[%c6] : memref<144xf32, #tpu.memory_space<smem>>
    %137 = vector.broadcast %136 : f32 to vector<18x18xf32>
    %138 = arith.mulf %137, %135 : vector<18x18xf32>
    %139 = arith.addf %121, %138 : vector<18x18xf32>
    %c42 = arith.constant 42 : index
    %140 = memref.load %arg1[%c42] : memref<144xf32, #tpu.memory_space<smem>>
    %141 = vector.broadcast %140 : f32 to vector<18x18xf32>
    %142 = arith.mulf %141, %135 : vector<18x18xf32>
    %143 = arith.addf %125, %142 : vector<18x18xf32>
    %c78 = arith.constant 78 : index
    %144 = memref.load %arg1[%c78] : memref<144xf32, #tpu.memory_space<smem>>
    %145 = vector.broadcast %144 : f32 to vector<18x18xf32>
    %146 = arith.mulf %145, %135 : vector<18x18xf32>
    %147 = arith.addf %129, %146 : vector<18x18xf32>
    %c114 = arith.constant 114 : index
    %148 = memref.load %arg1[%c114] : memref<144xf32, #tpu.memory_space<smem>>
    %149 = vector.broadcast %148 : f32 to vector<18x18xf32>
    %150 = arith.mulf %149, %135 : vector<18x18xf32>
    %151 = arith.addf %133, %150 : vector<18x18xf32>
    %c0_56 = arith.constant 0 : index
    %c2_57 = arith.constant 2 : index
    %c1_58 = arith.constant 1 : index
    %152 = vector.load %arg4[%c0_56, %c2_57, %c1_58] : memref<4x20x20xf32, #tpu.memory_space<vmem>>, vector<1x18x18xf32>
    %153 = vector.shape_cast %152 : vector<1x18x18xf32> to vector<18x18xf32>
    %c7 = arith.constant 7 : index
    %154 = memref.load %arg1[%c7] : memref<144xf32, #tpu.memory_space<smem>>
    %155 = vector.broadcast %154 : f32 to vector<18x18xf32>
    %156 = arith.mulf %155, %153 : vector<18x18xf32>
    %157 = arith.addf %139, %156 : vector<18x18xf32>
    %c43 = arith.constant 43 : index
    %158 = memref.load %arg1[%c43] : memref<144xf32, #tpu.memory_space<smem>>
    %159 = vector.broadcast %158 : f32 to vector<18x18xf32>
    %160 = arith.mulf %159, %153 : vector<18x18xf32>
    %161 = arith.addf %143, %160 : vector<18x18xf32>
    %c79 = arith.constant 79 : index
    %162 = memref.load %arg1[%c79] : memref<144xf32, #tpu.memory_space<smem>>
    %163 = vector.broadcast %162 : f32 to vector<18x18xf32>
    %164 = arith.mulf %163, %153 : vector<18x18xf32>
    %165 = arith.addf %147, %164 : vector<18x18xf32>
    %c115 = arith.constant 115 : index
    %166 = memref.load %arg1[%c115] : memref<144xf32, #tpu.memory_space<smem>>
    %167 = vector.broadcast %166 : f32 to vector<18x18xf32>
    %168 = arith.mulf %167, %153 : vector<18x18xf32>
    %169 = arith.addf %151, %168 : vector<18x18xf32>
    %c0_59 = arith.constant 0 : index
    %c2_60 = arith.constant 2 : index
    %c2_61 = arith.constant 2 : index
    %170 = vector.load %arg4[%c0_59, %c2_60, %c2_61] : memref<4x20x20xf32, #tpu.memory_space<vmem>>, vector<1x18x18xf32>
    %171 = vector.shape_cast %170 : vector<1x18x18xf32> to vector<18x18xf32>
    %c8 = arith.constant 8 : index
    %172 = memref.load %arg1[%c8] : memref<144xf32, #tpu.memory_space<smem>>
    %173 = vector.broadcast %172 : f32 to vector<18x18xf32>
    %174 = arith.mulf %173, %171 : vector<18x18xf32>
    %175 = arith.addf %157, %174 : vector<18x18xf32>
    %c44 = arith.constant 44 : index
    %176 = memref.load %arg1[%c44] : memref<144xf32, #tpu.memory_space<smem>>
    %177 = vector.broadcast %176 : f32 to vector<18x18xf32>
    %178 = arith.mulf %177, %171 : vector<18x18xf32>
    %179 = arith.addf %161, %178 : vector<18x18xf32>
    %c80 = arith.constant 80 : index
    %180 = memref.load %arg1[%c80] : memref<144xf32, #tpu.memory_space<smem>>
    %181 = vector.broadcast %180 : f32 to vector<18x18xf32>
    %182 = arith.mulf %181, %171 : vector<18x18xf32>
    %183 = arith.addf %165, %182 : vector<18x18xf32>
    %c116 = arith.constant 116 : index
    %184 = memref.load %arg1[%c116] : memref<144xf32, #tpu.memory_space<smem>>
    %185 = vector.broadcast %184 : f32 to vector<18x18xf32>
    %186 = arith.mulf %185, %171 : vector<18x18xf32>
    %187 = arith.addf %169, %186 : vector<18x18xf32>
    %c1_62 = arith.constant 1 : index
    %c0_63 = arith.constant 0 : index
    %c0_64 = arith.constant 0 : index
    %188 = vector.load %arg4[%c1_62, %c0_63, %c0_64] : memref<4x20x20xf32, #tpu.memory_space<vmem>>, vector<1x18x18xf32>
    %189 = vector.shape_cast %188 : vector<1x18x18xf32> to vector<18x18xf32>
    %c9 = arith.constant 9 : index
    %190 = memref.load %arg1[%c9] : memref<144xf32, #tpu.memory_space<smem>>
    %191 = vector.broadcast %190 : f32 to vector<18x18xf32>
    %192 = arith.mulf %191, %189 : vector<18x18xf32>
    %193 = arith.addf %175, %192 : vector<18x18xf32>
    %c45 = arith.constant 45 : index
    %194 = memref.load %arg1[%c45] : memref<144xf32, #tpu.memory_space<smem>>
    %195 = vector.broadcast %194 : f32 to vector<18x18xf32>
    %196 = arith.mulf %195, %189 : vector<18x18xf32>
    %197 = arith.addf %179, %196 : vector<18x18xf32>
    %c81 = arith.constant 81 : index
    %198 = memref.load %arg1[%c81] : memref<144xf32, #tpu.memory_space<smem>>
    %199 = vector.broadcast %198 : f32 to vector<18x18xf32>
    %200 = arith.mulf %199, %189 : vector<18x18xf32>
    %201 = arith.addf %183, %200 : vector<18x18xf32>
    %c117 = arith.constant 117 : index
    %202 = memref.load %arg1[%c117] : memref<144xf32, #tpu.memory_space<smem>>
    %203 = vector.broadcast %202 : f32 to vector<18x18xf32>
    %204 = arith.mulf %203, %189 : vector<18x18xf32>
    %205 = arith.addf %187, %204 : vector<18x18xf32>
    %c1_65 = arith.constant 1 : index
    %c0_66 = arith.constant 0 : index
    %c1_67 = arith.constant 1 : index
    %206 = vector.load %arg4[%c1_65, %c0_66, %c1_67] : memref<4x20x20xf32, #tpu.memory_space<vmem>>, vector<1x18x18xf32>
    %207 = vector.shape_cast %206 : vector<1x18x18xf32> to vector<18x18xf32>
    %c10 = arith.constant 10 : index
    %208 = memref.load %arg1[%c10] : memref<144xf32, #tpu.memory_space<smem>>
    %209 = vector.broadcast %208 : f32 to vector<18x18xf32>
    %210 = arith.mulf %209, %207 : vector<18x18xf32>
    %211 = arith.addf %193, %210 : vector<18x18xf32>
    %c46 = arith.constant 46 : index
    %212 = memref.load %arg1[%c46] : memref<144xf32, #tpu.memory_space<smem>>
    %213 = vector.broadcast %212 : f32 to vector<18x18xf32>
    %214 = arith.mulf %213, %207 : vector<18x18xf32>
    %215 = arith.addf %197, %214 : vector<18x18xf32>
    %c82 = arith.constant 82 : index
    %216 = memref.load %arg1[%c82] : memref<144xf32, #tpu.memory_space<smem>>
    %217 = vector.broadcast %216 : f32 to vector<18x18xf32>
    %218 = arith.mulf %217, %207 : vector<18x18xf32>
    %219 = arith.addf %201, %218 : vector<18x18xf32>
    %c118 = arith.constant 118 : index
    %220 = memref.load %arg1[%c118] : memref<144xf32, #tpu.memory_space<smem>>
    %221 = vector.broadcast %220 : f32 to vector<18x18xf32>
    %222 = arith.mulf %221, %207 : vector<18x18xf32>
    %223 = arith.addf %205, %222 : vector<18x18xf32>
    %c1_68 = arith.constant 1 : index
    %c0_69 = arith.constant 0 : index
    %c2_70 = arith.constant 2 : index
    %224 = vector.load %arg4[%c1_68, %c0_69, %c2_70] : memref<4x20x20xf32, #tpu.memory_space<vmem>>, vector<1x18x18xf32>
    %225 = vector.shape_cast %224 : vector<1x18x18xf32> to vector<18x18xf32>
    %c11 = arith.constant 11 : index
    %226 = memref.load %arg1[%c11] : memref<144xf32, #tpu.memory_space<smem>>
    %227 = vector.broadcast %226 : f32 to vector<18x18xf32>
    %228 = arith.mulf %227, %225 : vector<18x18xf32>
    %229 = arith.addf %211, %228 : vector<18x18xf32>
    %c47 = arith.constant 47 : index
    %230 = memref.load %arg1[%c47] : memref<144xf32, #tpu.memory_space<smem>>
    %231 = vector.broadcast %230 : f32 to vector<18x18xf32>
    %232 = arith.mulf %231, %225 : vector<18x18xf32>
    %233 = arith.addf %215, %232 : vector<18x18xf32>
    %c83 = arith.constant 83 : index
    %234 = memref.load %arg1[%c83] : memref<144xf32, #tpu.memory_space<smem>>
    %235 = vector.broadcast %234 : f32 to vector<18x18xf32>
    %236 = arith.mulf %235, %225 : vector<18x18xf32>
    %237 = arith.addf %219, %236 : vector<18x18xf32>
    %c119 = arith.constant 119 : index
    %238 = memref.load %arg1[%c119] : memref<144xf32, #tpu.memory_space<smem>>
    %239 = vector.broadcast %238 : f32 to vector<18x18xf32>
    %240 = arith.mulf %239, %225 : vector<18x18xf32>
    %241 = arith.addf %223, %240 : vector<18x18xf32>
    %c1_71 = arith.constant 1 : index
    %c1_72 = arith.constant 1 : index
    %c0_73 = arith.constant 0 : index
    %242 = vector.load %arg4[%c1_71, %c1_72, %c0_73] : memref<4x20x20xf32, #tpu.memory_space<vmem>>, vector<1x18x18xf32>
    %243 = vector.shape_cast %242 : vector<1x18x18xf32> to vector<18x18xf32>
    %c12 = arith.constant 12 : index
    %244 = memref.load %arg1[%c12] : memref<144xf32, #tpu.memory_space<smem>>
    %245 = vector.broadcast %244 : f32 to vector<18x18xf32>
    %246 = arith.mulf %245, %243 : vector<18x18xf32>
    %247 = arith.addf %229, %246 : vector<18x18xf32>
    %c48 = arith.constant 48 : index
    %248 = memref.load %arg1[%c48] : memref<144xf32, #tpu.memory_space<smem>>
    %249 = vector.broadcast %248 : f32 to vector<18x18xf32>
    %250 = arith.mulf %249, %243 : vector<18x18xf32>
    %251 = arith.addf %233, %250 : vector<18x18xf32>
    %c84 = arith.constant 84 : index
    %252 = memref.load %arg1[%c84] : memref<144xf32, #tpu.memory_space<smem>>
    %253 = vector.broadcast %252 : f32 to vector<18x18xf32>
    %254 = arith.mulf %253, %243 : vector<18x18xf32>
    %255 = arith.addf %237, %254 : vector<18x18xf32>
    %c120 = arith.constant 120 : index
    %256 = memref.load %arg1[%c120] : memref<144xf32, #tpu.memory_space<smem>>
    %257 = vector.broadcast %256 : f32 to vector<18x18xf32>
    %258 = arith.mulf %257, %243 : vector<18x18xf32>
    %259 = arith.addf %241, %258 : vector<18x18xf32>
    %c1_74 = arith.constant 1 : index
    %c1_75 = arith.constant 1 : index
    %c1_76 = arith.constant 1 : index
    %260 = vector.load %arg4[%c1_74, %c1_75, %c1_76] : memref<4x20x20xf32, #tpu.memory_space<vmem>>, vector<1x18x18xf32>
    %261 = vector.shape_cast %260 : vector<1x18x18xf32> to vector<18x18xf32>
    %c13 = arith.constant 13 : index
    %262 = memref.load %arg1[%c13] : memref<144xf32, #tpu.memory_space<smem>>
    %263 = vector.broadcast %262 : f32 to vector<18x18xf32>
    %264 = arith.mulf %263, %261 : vector<18x18xf32>
    %265 = arith.addf %247, %264 : vector<18x18xf32>
    %c49 = arith.constant 49 : index
    %266 = memref.load %arg1[%c49] : memref<144xf32, #tpu.memory_space<smem>>
    %267 = vector.broadcast %266 : f32 to vector<18x18xf32>
    %268 = arith.mulf %267, %261 : vector<18x18xf32>
    %269 = arith.addf %251, %268 : vector<18x18xf32>
    %c85 = arith.constant 85 : index
    %270 = memref.load %arg1[%c85] : memref<144xf32, #tpu.memory_space<smem>>
    %271 = vector.broadcast %270 : f32 to vector<18x18xf32>
    %272 = arith.mulf %271, %261 : vector<18x18xf32>
    %273 = arith.addf %255, %272 : vector<18x18xf32>
    %c121 = arith.constant 121 : index
    %274 = memref.load %arg1[%c121] : memref<144xf32, #tpu.memory_space<smem>>
    %275 = vector.broadcast %274 : f32 to vector<18x18xf32>
    %276 = arith.mulf %275, %261 : vector<18x18xf32>
    %277 = arith.addf %259, %276 : vector<18x18xf32>
    %c1_77 = arith.constant 1 : index
    %c1_78 = arith.constant 1 : index
    %c2_79 = arith.constant 2 : index
    %278 = vector.load %arg4[%c1_77, %c1_78, %c2_79] : memref<4x20x20xf32, #tpu.memory_space<vmem>>, vector<1x18x18xf32>
    %279 = vector.shape_cast %278 : vector<1x18x18xf32> to vector<18x18xf32>
    %c14 = arith.constant 14 : index
    %280 = memref.load %arg1[%c14] : memref<144xf32, #tpu.memory_space<smem>>
    %281 = vector.broadcast %280 : f32 to vector<18x18xf32>
    %282 = arith.mulf %281, %279 : vector<18x18xf32>
    %283 = arith.addf %265, %282 : vector<18x18xf32>
    %c50 = arith.constant 50 : index
    %284 = memref.load %arg1[%c50] : memref<144xf32, #tpu.memory_space<smem>>
    %285 = vector.broadcast %284 : f32 to vector<18x18xf32>
    %286 = arith.mulf %285, %279 : vector<18x18xf32>
    %287 = arith.addf %269, %286 : vector<18x18xf32>
    %c86 = arith.constant 86 : index
    %288 = memref.load %arg1[%c86] : memref<144xf32, #tpu.memory_space<smem>>
    %289 = vector.broadcast %288 : f32 to vector<18x18xf32>
    %290 = arith.mulf %289, %279 : vector<18x18xf32>
    %291 = arith.addf %273, %290 : vector<18x18xf32>
    %c122 = arith.constant 122 : index
    %292 = memref.load %arg1[%c122] : memref<144xf32, #tpu.memory_space<smem>>
    %293 = vector.broadcast %292 : f32 to vector<18x18xf32>
    %294 = arith.mulf %293, %279 : vector<18x18xf32>
    %295 = arith.addf %277, %294 : vector<18x18xf32>
    %c1_80 = arith.constant 1 : index
    %c2_81 = arith.constant 2 : index
    %c0_82 = arith.constant 0 : index
    %296 = vector.load %arg4[%c1_80, %c2_81, %c0_82] : memref<4x20x20xf32, #tpu.memory_space<vmem>>, vector<1x18x18xf32>
    %297 = vector.shape_cast %296 : vector<1x18x18xf32> to vector<18x18xf32>
    %c15 = arith.constant 15 : index
    %298 = memref.load %arg1[%c15] : memref<144xf32, #tpu.memory_space<smem>>
    %299 = vector.broadcast %298 : f32 to vector<18x18xf32>
    %300 = arith.mulf %299, %297 : vector<18x18xf32>
    %301 = arith.addf %283, %300 : vector<18x18xf32>
    %c51 = arith.constant 51 : index
    %302 = memref.load %arg1[%c51] : memref<144xf32, #tpu.memory_space<smem>>
    %303 = vector.broadcast %302 : f32 to vector<18x18xf32>
    %304 = arith.mulf %303, %297 : vector<18x18xf32>
    %305 = arith.addf %287, %304 : vector<18x18xf32>
    %c87 = arith.constant 87 : index
    %306 = memref.load %arg1[%c87] : memref<144xf32, #tpu.memory_space<smem>>
    %307 = vector.broadcast %306 : f32 to vector<18x18xf32>
    %308 = arith.mulf %307, %297 : vector<18x18xf32>
    %309 = arith.addf %291, %308 : vector<18x18xf32>
    %c123 = arith.constant 123 : index
    %310 = memref.load %arg1[%c123] : memref<144xf32, #tpu.memory_space<smem>>
    %311 = vector.broadcast %310 : f32 to vector<18x18xf32>
    %312 = arith.mulf %311, %297 : vector<18x18xf32>
    %313 = arith.addf %295, %312 : vector<18x18xf32>
    %c1_83 = arith.constant 1 : index
    %c2_84 = arith.constant 2 : index
    %c1_85 = arith.constant 1 : index
    %314 = vector.load %arg4[%c1_83, %c2_84, %c1_85] : memref<4x20x20xf32, #tpu.memory_space<vmem>>, vector<1x18x18xf32>
    %315 = vector.shape_cast %314 : vector<1x18x18xf32> to vector<18x18xf32>
    %c16 = arith.constant 16 : index
    %316 = memref.load %arg1[%c16] : memref<144xf32, #tpu.memory_space<smem>>
    %317 = vector.broadcast %316 : f32 to vector<18x18xf32>
    %318 = arith.mulf %317, %315 : vector<18x18xf32>
    %319 = arith.addf %301, %318 : vector<18x18xf32>
    %c52 = arith.constant 52 : index
    %320 = memref.load %arg1[%c52] : memref<144xf32, #tpu.memory_space<smem>>
    %321 = vector.broadcast %320 : f32 to vector<18x18xf32>
    %322 = arith.mulf %321, %315 : vector<18x18xf32>
    %323 = arith.addf %305, %322 : vector<18x18xf32>
    %c88 = arith.constant 88 : index
    %324 = memref.load %arg1[%c88] : memref<144xf32, #tpu.memory_space<smem>>
    %325 = vector.broadcast %324 : f32 to vector<18x18xf32>
    %326 = arith.mulf %325, %315 : vector<18x18xf32>
    %327 = arith.addf %309, %326 : vector<18x18xf32>
    %c124 = arith.constant 124 : index
    %328 = memref.load %arg1[%c124] : memref<144xf32, #tpu.memory_space<smem>>
    %329 = vector.broadcast %328 : f32 to vector<18x18xf32>
    %330 = arith.mulf %329, %315 : vector<18x18xf32>
    %331 = arith.addf %313, %330 : vector<18x18xf32>
    %c1_86 = arith.constant 1 : index
    %c2_87 = arith.constant 2 : index
    %c2_88 = arith.constant 2 : index
    %332 = vector.load %arg4[%c1_86, %c2_87, %c2_88] : memref<4x20x20xf32, #tpu.memory_space<vmem>>, vector<1x18x18xf32>
    %333 = vector.shape_cast %332 : vector<1x18x18xf32> to vector<18x18xf32>
    %c17 = arith.constant 17 : index
    %334 = memref.load %arg1[%c17] : memref<144xf32, #tpu.memory_space<smem>>
    %335 = vector.broadcast %334 : f32 to vector<18x18xf32>
    %336 = arith.mulf %335, %333 : vector<18x18xf32>
    %337 = arith.addf %319, %336 : vector<18x18xf32>
    %c53 = arith.constant 53 : index
    %338 = memref.load %arg1[%c53] : memref<144xf32, #tpu.memory_space<smem>>
    %339 = vector.broadcast %338 : f32 to vector<18x18xf32>
    %340 = arith.mulf %339, %333 : vector<18x18xf32>
    %341 = arith.addf %323, %340 : vector<18x18xf32>
    %c89 = arith.constant 89 : index
    %342 = memref.load %arg1[%c89] : memref<144xf32, #tpu.memory_space<smem>>
    %343 = vector.broadcast %342 : f32 to vector<18x18xf32>
    %344 = arith.mulf %343, %333 : vector<18x18xf32>
    %345 = arith.addf %327, %344 : vector<18x18xf32>
    %c125 = arith.constant 125 : index
    %346 = memref.load %arg1[%c125] : memref<144xf32, #tpu.memory_space<smem>>
    %347 = vector.broadcast %346 : f32 to vector<18x18xf32>
    %348 = arith.mulf %347, %333 : vector<18x18xf32>
    %349 = arith.addf %331, %348 : vector<18x18xf32>
    %c2_89 = arith.constant 2 : index
    %c0_90 = arith.constant 0 : index
    %c0_91 = arith.constant 0 : index
    %350 = vector.load %arg4[%c2_89, %c0_90, %c0_91] : memref<4x20x20xf32, #tpu.memory_space<vmem>>, vector<1x18x18xf32>
    %351 = vector.shape_cast %350 : vector<1x18x18xf32> to vector<18x18xf32>
    %c18 = arith.constant 18 : index
    %352 = memref.load %arg1[%c18] : memref<144xf32, #tpu.memory_space<smem>>
    %353 = vector.broadcast %352 : f32 to vector<18x18xf32>
    %354 = arith.mulf %353, %351 : vector<18x18xf32>
    %355 = arith.addf %337, %354 : vector<18x18xf32>
    %c54 = arith.constant 54 : index
    %356 = memref.load %arg1[%c54] : memref<144xf32, #tpu.memory_space<smem>>
    %357 = vector.broadcast %356 : f32 to vector<18x18xf32>
    %358 = arith.mulf %357, %351 : vector<18x18xf32>
    %359 = arith.addf %341, %358 : vector<18x18xf32>
    %c90 = arith.constant 90 : index
    %360 = memref.load %arg1[%c90] : memref<144xf32, #tpu.memory_space<smem>>
    %361 = vector.broadcast %360 : f32 to vector<18x18xf32>
    %362 = arith.mulf %361, %351 : vector<18x18xf32>
    %363 = arith.addf %345, %362 : vector<18x18xf32>
    %c126 = arith.constant 126 : index
    %364 = memref.load %arg1[%c126] : memref<144xf32, #tpu.memory_space<smem>>
    %365 = vector.broadcast %364 : f32 to vector<18x18xf32>
    %366 = arith.mulf %365, %351 : vector<18x18xf32>
    %367 = arith.addf %349, %366 : vector<18x18xf32>
    %c2_92 = arith.constant 2 : index
    %c0_93 = arith.constant 0 : index
    %c1_94 = arith.constant 1 : index
    %368 = vector.load %arg4[%c2_92, %c0_93, %c1_94] : memref<4x20x20xf32, #tpu.memory_space<vmem>>, vector<1x18x18xf32>
    %369 = vector.shape_cast %368 : vector<1x18x18xf32> to vector<18x18xf32>
    %c19 = arith.constant 19 : index
    %370 = memref.load %arg1[%c19] : memref<144xf32, #tpu.memory_space<smem>>
    %371 = vector.broadcast %370 : f32 to vector<18x18xf32>
    %372 = arith.mulf %371, %369 : vector<18x18xf32>
    %373 = arith.addf %355, %372 : vector<18x18xf32>
    %c55 = arith.constant 55 : index
    %374 = memref.load %arg1[%c55] : memref<144xf32, #tpu.memory_space<smem>>
    %375 = vector.broadcast %374 : f32 to vector<18x18xf32>
    %376 = arith.mulf %375, %369 : vector<18x18xf32>
    %377 = arith.addf %359, %376 : vector<18x18xf32>
    %c91 = arith.constant 91 : index
    %378 = memref.load %arg1[%c91] : memref<144xf32, #tpu.memory_space<smem>>
    %379 = vector.broadcast %378 : f32 to vector<18x18xf32>
    %380 = arith.mulf %379, %369 : vector<18x18xf32>
    %381 = arith.addf %363, %380 : vector<18x18xf32>
    %c127 = arith.constant 127 : index
    %382 = memref.load %arg1[%c127] : memref<144xf32, #tpu.memory_space<smem>>
    %383 = vector.broadcast %382 : f32 to vector<18x18xf32>
    %384 = arith.mulf %383, %369 : vector<18x18xf32>
    %385 = arith.addf %367, %384 : vector<18x18xf32>
    %c2_95 = arith.constant 2 : index
    %c0_96 = arith.constant 0 : index
    %c2_97 = arith.constant 2 : index
    %386 = vector.load %arg4[%c2_95, %c0_96, %c2_97] : memref<4x20x20xf32, #tpu.memory_space<vmem>>, vector<1x18x18xf32>
    %387 = vector.shape_cast %386 : vector<1x18x18xf32> to vector<18x18xf32>
    %c20 = arith.constant 20 : index
    %388 = memref.load %arg1[%c20] : memref<144xf32, #tpu.memory_space<smem>>
    %389 = vector.broadcast %388 : f32 to vector<18x18xf32>
    %390 = arith.mulf %389, %387 : vector<18x18xf32>
    %391 = arith.addf %373, %390 : vector<18x18xf32>
    %c56 = arith.constant 56 : index
    %392 = memref.load %arg1[%c56] : memref<144xf32, #tpu.memory_space<smem>>
    %393 = vector.broadcast %392 : f32 to vector<18x18xf32>
    %394 = arith.mulf %393, %387 : vector<18x18xf32>
    %395 = arith.addf %377, %394 : vector<18x18xf32>
    %c92 = arith.constant 92 : index
    %396 = memref.load %arg1[%c92] : memref<144xf32, #tpu.memory_space<smem>>
    %397 = vector.broadcast %396 : f32 to vector<18x18xf32>
    %398 = arith.mulf %397, %387 : vector<18x18xf32>
    %399 = arith.addf %381, %398 : vector<18x18xf32>
    %c128 = arith.constant 128 : index
    %400 = memref.load %arg1[%c128] : memref<144xf32, #tpu.memory_space<smem>>
    %401 = vector.broadcast %400 : f32 to vector<18x18xf32>
    %402 = arith.mulf %401, %387 : vector<18x18xf32>
    %403 = arith.addf %385, %402 : vector<18x18xf32>
    %c2_98 = arith.constant 2 : index
    %c1_99 = arith.constant 1 : index
    %c0_100 = arith.constant 0 : index
    %404 = vector.load %arg4[%c2_98, %c1_99, %c0_100] : memref<4x20x20xf32, #tpu.memory_space<vmem>>, vector<1x18x18xf32>
    %405 = vector.shape_cast %404 : vector<1x18x18xf32> to vector<18x18xf32>
    %c21 = arith.constant 21 : index
    %406 = memref.load %arg1[%c21] : memref<144xf32, #tpu.memory_space<smem>>
    %407 = vector.broadcast %406 : f32 to vector<18x18xf32>
    %408 = arith.mulf %407, %405 : vector<18x18xf32>
    %409 = arith.addf %391, %408 : vector<18x18xf32>
    %c57 = arith.constant 57 : index
    %410 = memref.load %arg1[%c57] : memref<144xf32, #tpu.memory_space<smem>>
    %411 = vector.broadcast %410 : f32 to vector<18x18xf32>
    %412 = arith.mulf %411, %405 : vector<18x18xf32>
    %413 = arith.addf %395, %412 : vector<18x18xf32>
    %c93 = arith.constant 93 : index
    %414 = memref.load %arg1[%c93] : memref<144xf32, #tpu.memory_space<smem>>
    %415 = vector.broadcast %414 : f32 to vector<18x18xf32>
    %416 = arith.mulf %415, %405 : vector<18x18xf32>
    %417 = arith.addf %399, %416 : vector<18x18xf32>
    %c129 = arith.constant 129 : index
    %418 = memref.load %arg1[%c129] : memref<144xf32, #tpu.memory_space<smem>>
    %419 = vector.broadcast %418 : f32 to vector<18x18xf32>
    %420 = arith.mulf %419, %405 : vector<18x18xf32>
    %421 = arith.addf %403, %420 : vector<18x18xf32>
    %c2_101 = arith.constant 2 : index
    %c1_102 = arith.constant 1 : index
    %c1_103 = arith.constant 1 : index
    %422 = vector.load %arg4[%c2_101, %c1_102, %c1_103] : memref<4x20x20xf32, #tpu.memory_space<vmem>>, vector<1x18x18xf32>
    %423 = vector.shape_cast %422 : vector<1x18x18xf32> to vector<18x18xf32>
    %c22 = arith.constant 22 : index
    %424 = memref.load %arg1[%c22] : memref<144xf32, #tpu.memory_space<smem>>
    %425 = vector.broadcast %424 : f32 to vector<18x18xf32>
    %426 = arith.mulf %425, %423 : vector<18x18xf32>
    %427 = arith.addf %409, %426 : vector<18x18xf32>
    %c58 = arith.constant 58 : index
    %428 = memref.load %arg1[%c58] : memref<144xf32, #tpu.memory_space<smem>>
    %429 = vector.broadcast %428 : f32 to vector<18x18xf32>
    %430 = arith.mulf %429, %423 : vector<18x18xf32>
    %431 = arith.addf %413, %430 : vector<18x18xf32>
    %c94 = arith.constant 94 : index
    %432 = memref.load %arg1[%c94] : memref<144xf32, #tpu.memory_space<smem>>
    %433 = vector.broadcast %432 : f32 to vector<18x18xf32>
    %434 = arith.mulf %433, %423 : vector<18x18xf32>
    %435 = arith.addf %417, %434 : vector<18x18xf32>
    %c130 = arith.constant 130 : index
    %436 = memref.load %arg1[%c130] : memref<144xf32, #tpu.memory_space<smem>>
    %437 = vector.broadcast %436 : f32 to vector<18x18xf32>
    %438 = arith.mulf %437, %423 : vector<18x18xf32>
    %439 = arith.addf %421, %438 : vector<18x18xf32>
    %c2_104 = arith.constant 2 : index
    %c1_105 = arith.constant 1 : index
    %c2_106 = arith.constant 2 : index
    %440 = vector.load %arg4[%c2_104, %c1_105, %c2_106] : memref<4x20x20xf32, #tpu.memory_space<vmem>>, vector<1x18x18xf32>
    %441 = vector.shape_cast %440 : vector<1x18x18xf32> to vector<18x18xf32>
    %c23 = arith.constant 23 : index
    %442 = memref.load %arg1[%c23] : memref<144xf32, #tpu.memory_space<smem>>
    %443 = vector.broadcast %442 : f32 to vector<18x18xf32>
    %444 = arith.mulf %443, %441 : vector<18x18xf32>
    %445 = arith.addf %427, %444 : vector<18x18xf32>
    %c59 = arith.constant 59 : index
    %446 = memref.load %arg1[%c59] : memref<144xf32, #tpu.memory_space<smem>>
    %447 = vector.broadcast %446 : f32 to vector<18x18xf32>
    %448 = arith.mulf %447, %441 : vector<18x18xf32>
    %449 = arith.addf %431, %448 : vector<18x18xf32>
    %c95 = arith.constant 95 : index
    %450 = memref.load %arg1[%c95] : memref<144xf32, #tpu.memory_space<smem>>
    %451 = vector.broadcast %450 : f32 to vector<18x18xf32>
    %452 = arith.mulf %451, %441 : vector<18x18xf32>
    %453 = arith.addf %435, %452 : vector<18x18xf32>
    %c131 = arith.constant 131 : index
    %454 = memref.load %arg1[%c131] : memref<144xf32, #tpu.memory_space<smem>>
    %455 = vector.broadcast %454 : f32 to vector<18x18xf32>
    %456 = arith.mulf %455, %441 : vector<18x18xf32>
    %457 = arith.addf %439, %456 : vector<18x18xf32>
    %c2_107 = arith.constant 2 : index
    %c2_108 = arith.constant 2 : index
    %c0_109 = arith.constant 0 : index
    %458 = vector.load %arg4[%c2_107, %c2_108, %c0_109] : memref<4x20x20xf32, #tpu.memory_space<vmem>>, vector<1x18x18xf32>
    %459 = vector.shape_cast %458 : vector<1x18x18xf32> to vector<18x18xf32>
    %c24 = arith.constant 24 : index
    %460 = memref.load %arg1[%c24] : memref<144xf32, #tpu.memory_space<smem>>
    %461 = vector.broadcast %460 : f32 to vector<18x18xf32>
    %462 = arith.mulf %461, %459 : vector<18x18xf32>
    %463 = arith.addf %445, %462 : vector<18x18xf32>
    %c60 = arith.constant 60 : index
    %464 = memref.load %arg1[%c60] : memref<144xf32, #tpu.memory_space<smem>>
    %465 = vector.broadcast %464 : f32 to vector<18x18xf32>
    %466 = arith.mulf %465, %459 : vector<18x18xf32>
    %467 = arith.addf %449, %466 : vector<18x18xf32>
    %c96 = arith.constant 96 : index
    %468 = memref.load %arg1[%c96] : memref<144xf32, #tpu.memory_space<smem>>
    %469 = vector.broadcast %468 : f32 to vector<18x18xf32>
    %470 = arith.mulf %469, %459 : vector<18x18xf32>
    %471 = arith.addf %453, %470 : vector<18x18xf32>
    %c132 = arith.constant 132 : index
    %472 = memref.load %arg1[%c132] : memref<144xf32, #tpu.memory_space<smem>>
    %473 = vector.broadcast %472 : f32 to vector<18x18xf32>
    %474 = arith.mulf %473, %459 : vector<18x18xf32>
    %475 = arith.addf %457, %474 : vector<18x18xf32>
    %c2_110 = arith.constant 2 : index
    %c2_111 = arith.constant 2 : index
    %c1_112 = arith.constant 1 : index
    %476 = vector.load %arg4[%c2_110, %c2_111, %c1_112] : memref<4x20x20xf32, #tpu.memory_space<vmem>>, vector<1x18x18xf32>
    %477 = vector.shape_cast %476 : vector<1x18x18xf32> to vector<18x18xf32>
    %c25 = arith.constant 25 : index
    %478 = memref.load %arg1[%c25] : memref<144xf32, #tpu.memory_space<smem>>
    %479 = vector.broadcast %478 : f32 to vector<18x18xf32>
    %480 = arith.mulf %479, %477 : vector<18x18xf32>
    %481 = arith.addf %463, %480 : vector<18x18xf32>
    %c61 = arith.constant 61 : index
    %482 = memref.load %arg1[%c61] : memref<144xf32, #tpu.memory_space<smem>>
    %483 = vector.broadcast %482 : f32 to vector<18x18xf32>
    %484 = arith.mulf %483, %477 : vector<18x18xf32>
    %485 = arith.addf %467, %484 : vector<18x18xf32>
    %c97 = arith.constant 97 : index
    %486 = memref.load %arg1[%c97] : memref<144xf32, #tpu.memory_space<smem>>
    %487 = vector.broadcast %486 : f32 to vector<18x18xf32>
    %488 = arith.mulf %487, %477 : vector<18x18xf32>
    %489 = arith.addf %471, %488 : vector<18x18xf32>
    %c133 = arith.constant 133 : index
    %490 = memref.load %arg1[%c133] : memref<144xf32, #tpu.memory_space<smem>>
    %491 = vector.broadcast %490 : f32 to vector<18x18xf32>
    %492 = arith.mulf %491, %477 : vector<18x18xf32>
    %493 = arith.addf %475, %492 : vector<18x18xf32>
    %c2_113 = arith.constant 2 : index
    %c2_114 = arith.constant 2 : index
    %c2_115 = arith.constant 2 : index
    %494 = vector.load %arg4[%c2_113, %c2_114, %c2_115] : memref<4x20x20xf32, #tpu.memory_space<vmem>>, vector<1x18x18xf32>
    %495 = vector.shape_cast %494 : vector<1x18x18xf32> to vector<18x18xf32>
    %c26 = arith.constant 26 : index
    %496 = memref.load %arg1[%c26] : memref<144xf32, #tpu.memory_space<smem>>
    %497 = vector.broadcast %496 : f32 to vector<18x18xf32>
    %498 = arith.mulf %497, %495 : vector<18x18xf32>
    %499 = arith.addf %481, %498 : vector<18x18xf32>
    %c62 = arith.constant 62 : index
    %500 = memref.load %arg1[%c62] : memref<144xf32, #tpu.memory_space<smem>>
    %501 = vector.broadcast %500 : f32 to vector<18x18xf32>
    %502 = arith.mulf %501, %495 : vector<18x18xf32>
    %503 = arith.addf %485, %502 : vector<18x18xf32>
    %c98 = arith.constant 98 : index
    %504 = memref.load %arg1[%c98] : memref<144xf32, #tpu.memory_space<smem>>
    %505 = vector.broadcast %504 : f32 to vector<18x18xf32>
    %506 = arith.mulf %505, %495 : vector<18x18xf32>
    %507 = arith.addf %489, %506 : vector<18x18xf32>
    %c134 = arith.constant 134 : index
    %508 = memref.load %arg1[%c134] : memref<144xf32, #tpu.memory_space<smem>>
    %509 = vector.broadcast %508 : f32 to vector<18x18xf32>
    %510 = arith.mulf %509, %495 : vector<18x18xf32>
    %511 = arith.addf %493, %510 : vector<18x18xf32>
    %c3_116 = arith.constant 3 : index
    %c0_117 = arith.constant 0 : index
    %c0_118 = arith.constant 0 : index
    %512 = vector.load %arg4[%c3_116, %c0_117, %c0_118] : memref<4x20x20xf32, #tpu.memory_space<vmem>>, vector<1x18x18xf32>
    %513 = vector.shape_cast %512 : vector<1x18x18xf32> to vector<18x18xf32>
    %c27 = arith.constant 27 : index
    %514 = memref.load %arg1[%c27] : memref<144xf32, #tpu.memory_space<smem>>
    %515 = vector.broadcast %514 : f32 to vector<18x18xf32>
    %516 = arith.mulf %515, %513 : vector<18x18xf32>
    %517 = arith.addf %499, %516 : vector<18x18xf32>
    %c63 = arith.constant 63 : index
    %518 = memref.load %arg1[%c63] : memref<144xf32, #tpu.memory_space<smem>>
    %519 = vector.broadcast %518 : f32 to vector<18x18xf32>
    %520 = arith.mulf %519, %513 : vector<18x18xf32>
    %521 = arith.addf %503, %520 : vector<18x18xf32>
    %c99 = arith.constant 99 : index
    %522 = memref.load %arg1[%c99] : memref<144xf32, #tpu.memory_space<smem>>
    %523 = vector.broadcast %522 : f32 to vector<18x18xf32>
    %524 = arith.mulf %523, %513 : vector<18x18xf32>
    %525 = arith.addf %507, %524 : vector<18x18xf32>
    %c135 = arith.constant 135 : index
    %526 = memref.load %arg1[%c135] : memref<144xf32, #tpu.memory_space<smem>>
    %527 = vector.broadcast %526 : f32 to vector<18x18xf32>
    %528 = arith.mulf %527, %513 : vector<18x18xf32>
    %529 = arith.addf %511, %528 : vector<18x18xf32>
    %c3_119 = arith.constant 3 : index
    %c0_120 = arith.constant 0 : index
    %c1_121 = arith.constant 1 : index
    %530 = vector.load %arg4[%c3_119, %c0_120, %c1_121] : memref<4x20x20xf32, #tpu.memory_space<vmem>>, vector<1x18x18xf32>
    %531 = vector.shape_cast %530 : vector<1x18x18xf32> to vector<18x18xf32>
    %c28 = arith.constant 28 : index
    %532 = memref.load %arg1[%c28] : memref<144xf32, #tpu.memory_space<smem>>
    %533 = vector.broadcast %532 : f32 to vector<18x18xf32>
    %534 = arith.mulf %533, %531 : vector<18x18xf32>
    %535 = arith.addf %517, %534 : vector<18x18xf32>
    %c64 = arith.constant 64 : index
    %536 = memref.load %arg1[%c64] : memref<144xf32, #tpu.memory_space<smem>>
    %537 = vector.broadcast %536 : f32 to vector<18x18xf32>
    %538 = arith.mulf %537, %531 : vector<18x18xf32>
    %539 = arith.addf %521, %538 : vector<18x18xf32>
    %c100 = arith.constant 100 : index
    %540 = memref.load %arg1[%c100] : memref<144xf32, #tpu.memory_space<smem>>
    %541 = vector.broadcast %540 : f32 to vector<18x18xf32>
    %542 = arith.mulf %541, %531 : vector<18x18xf32>
    %543 = arith.addf %525, %542 : vector<18x18xf32>
    %c136 = arith.constant 136 : index
    %544 = memref.load %arg1[%c136] : memref<144xf32, #tpu.memory_space<smem>>
    %545 = vector.broadcast %544 : f32 to vector<18x18xf32>
    %546 = arith.mulf %545, %531 : vector<18x18xf32>
    %547 = arith.addf %529, %546 : vector<18x18xf32>
    %c3_122 = arith.constant 3 : index
    %c0_123 = arith.constant 0 : index
    %c2_124 = arith.constant 2 : index
    %548 = vector.load %arg4[%c3_122, %c0_123, %c2_124] : memref<4x20x20xf32, #tpu.memory_space<vmem>>, vector<1x18x18xf32>
    %549 = vector.shape_cast %548 : vector<1x18x18xf32> to vector<18x18xf32>
    %c29 = arith.constant 29 : index
    %550 = memref.load %arg1[%c29] : memref<144xf32, #tpu.memory_space<smem>>
    %551 = vector.broadcast %550 : f32 to vector<18x18xf32>
    %552 = arith.mulf %551, %549 : vector<18x18xf32>
    %553 = arith.addf %535, %552 : vector<18x18xf32>
    %c65 = arith.constant 65 : index
    %554 = memref.load %arg1[%c65] : memref<144xf32, #tpu.memory_space<smem>>
    %555 = vector.broadcast %554 : f32 to vector<18x18xf32>
    %556 = arith.mulf %555, %549 : vector<18x18xf32>
    %557 = arith.addf %539, %556 : vector<18x18xf32>
    %c101 = arith.constant 101 : index
    %558 = memref.load %arg1[%c101] : memref<144xf32, #tpu.memory_space<smem>>
    %559 = vector.broadcast %558 : f32 to vector<18x18xf32>
    %560 = arith.mulf %559, %549 : vector<18x18xf32>
    %561 = arith.addf %543, %560 : vector<18x18xf32>
    %c137 = arith.constant 137 : index
    %562 = memref.load %arg1[%c137] : memref<144xf32, #tpu.memory_space<smem>>
    %563 = vector.broadcast %562 : f32 to vector<18x18xf32>
    %564 = arith.mulf %563, %549 : vector<18x18xf32>
    %565 = arith.addf %547, %564 : vector<18x18xf32>
    %c3_125 = arith.constant 3 : index
    %c1_126 = arith.constant 1 : index
    %c0_127 = arith.constant 0 : index
    %566 = vector.load %arg4[%c3_125, %c1_126, %c0_127] : memref<4x20x20xf32, #tpu.memory_space<vmem>>, vector<1x18x18xf32>
    %567 = vector.shape_cast %566 : vector<1x18x18xf32> to vector<18x18xf32>
    %c30 = arith.constant 30 : index
    %568 = memref.load %arg1[%c30] : memref<144xf32, #tpu.memory_space<smem>>
    %569 = vector.broadcast %568 : f32 to vector<18x18xf32>
    %570 = arith.mulf %569, %567 : vector<18x18xf32>
    %571 = arith.addf %553, %570 : vector<18x18xf32>
    %c66 = arith.constant 66 : index
    %572 = memref.load %arg1[%c66] : memref<144xf32, #tpu.memory_space<smem>>
    %573 = vector.broadcast %572 : f32 to vector<18x18xf32>
    %574 = arith.mulf %573, %567 : vector<18x18xf32>
    %575 = arith.addf %557, %574 : vector<18x18xf32>
    %c102 = arith.constant 102 : index
    %576 = memref.load %arg1[%c102] : memref<144xf32, #tpu.memory_space<smem>>
    %577 = vector.broadcast %576 : f32 to vector<18x18xf32>
    %578 = arith.mulf %577, %567 : vector<18x18xf32>
    %579 = arith.addf %561, %578 : vector<18x18xf32>
    %c138 = arith.constant 138 : index
    %580 = memref.load %arg1[%c138] : memref<144xf32, #tpu.memory_space<smem>>
    %581 = vector.broadcast %580 : f32 to vector<18x18xf32>
    %582 = arith.mulf %581, %567 : vector<18x18xf32>
    %583 = arith.addf %565, %582 : vector<18x18xf32>
    %c3_128 = arith.constant 3 : index
    %c1_129 = arith.constant 1 : index
    %c1_130 = arith.constant 1 : index
    %584 = vector.load %arg4[%c3_128, %c1_129, %c1_130] : memref<4x20x20xf32, #tpu.memory_space<vmem>>, vector<1x18x18xf32>
    %585 = vector.shape_cast %584 : vector<1x18x18xf32> to vector<18x18xf32>
    %c31 = arith.constant 31 : index
    %586 = memref.load %arg1[%c31] : memref<144xf32, #tpu.memory_space<smem>>
    %587 = vector.broadcast %586 : f32 to vector<18x18xf32>
    %588 = arith.mulf %587, %585 : vector<18x18xf32>
    %589 = arith.addf %571, %588 : vector<18x18xf32>
    %c67 = arith.constant 67 : index
    %590 = memref.load %arg1[%c67] : memref<144xf32, #tpu.memory_space<smem>>
    %591 = vector.broadcast %590 : f32 to vector<18x18xf32>
    %592 = arith.mulf %591, %585 : vector<18x18xf32>
    %593 = arith.addf %575, %592 : vector<18x18xf32>
    %c103 = arith.constant 103 : index
    %594 = memref.load %arg1[%c103] : memref<144xf32, #tpu.memory_space<smem>>
    %595 = vector.broadcast %594 : f32 to vector<18x18xf32>
    %596 = arith.mulf %595, %585 : vector<18x18xf32>
    %597 = arith.addf %579, %596 : vector<18x18xf32>
    %c139 = arith.constant 139 : index
    %598 = memref.load %arg1[%c139] : memref<144xf32, #tpu.memory_space<smem>>
    %599 = vector.broadcast %598 : f32 to vector<18x18xf32>
    %600 = arith.mulf %599, %585 : vector<18x18xf32>
    %601 = arith.addf %583, %600 : vector<18x18xf32>
    %c3_131 = arith.constant 3 : index
    %c1_132 = arith.constant 1 : index
    %c2_133 = arith.constant 2 : index
    %602 = vector.load %arg4[%c3_131, %c1_132, %c2_133] : memref<4x20x20xf32, #tpu.memory_space<vmem>>, vector<1x18x18xf32>
    %603 = vector.shape_cast %602 : vector<1x18x18xf32> to vector<18x18xf32>
    %c32 = arith.constant 32 : index
    %604 = memref.load %arg1[%c32] : memref<144xf32, #tpu.memory_space<smem>>
    %605 = vector.broadcast %604 : f32 to vector<18x18xf32>
    %606 = arith.mulf %605, %603 : vector<18x18xf32>
    %607 = arith.addf %589, %606 : vector<18x18xf32>
    %c68 = arith.constant 68 : index
    %608 = memref.load %arg1[%c68] : memref<144xf32, #tpu.memory_space<smem>>
    %609 = vector.broadcast %608 : f32 to vector<18x18xf32>
    %610 = arith.mulf %609, %603 : vector<18x18xf32>
    %611 = arith.addf %593, %610 : vector<18x18xf32>
    %c104 = arith.constant 104 : index
    %612 = memref.load %arg1[%c104] : memref<144xf32, #tpu.memory_space<smem>>
    %613 = vector.broadcast %612 : f32 to vector<18x18xf32>
    %614 = arith.mulf %613, %603 : vector<18x18xf32>
    %615 = arith.addf %597, %614 : vector<18x18xf32>
    %c140 = arith.constant 140 : index
    %616 = memref.load %arg1[%c140] : memref<144xf32, #tpu.memory_space<smem>>
    %617 = vector.broadcast %616 : f32 to vector<18x18xf32>
    %618 = arith.mulf %617, %603 : vector<18x18xf32>
    %619 = arith.addf %601, %618 : vector<18x18xf32>
    %c3_134 = arith.constant 3 : index
    %c2_135 = arith.constant 2 : index
    %c0_136 = arith.constant 0 : index
    %620 = vector.load %arg4[%c3_134, %c2_135, %c0_136] : memref<4x20x20xf32, #tpu.memory_space<vmem>>, vector<1x18x18xf32>
    %621 = vector.shape_cast %620 : vector<1x18x18xf32> to vector<18x18xf32>
    %c33 = arith.constant 33 : index
    %622 = memref.load %arg1[%c33] : memref<144xf32, #tpu.memory_space<smem>>
    %623 = vector.broadcast %622 : f32 to vector<18x18xf32>
    %624 = arith.mulf %623, %621 : vector<18x18xf32>
    %625 = arith.addf %607, %624 : vector<18x18xf32>
    %c69 = arith.constant 69 : index
    %626 = memref.load %arg1[%c69] : memref<144xf32, #tpu.memory_space<smem>>
    %627 = vector.broadcast %626 : f32 to vector<18x18xf32>
    %628 = arith.mulf %627, %621 : vector<18x18xf32>
    %629 = arith.addf %611, %628 : vector<18x18xf32>
    %c105 = arith.constant 105 : index
    %630 = memref.load %arg1[%c105] : memref<144xf32, #tpu.memory_space<smem>>
    %631 = vector.broadcast %630 : f32 to vector<18x18xf32>
    %632 = arith.mulf %631, %621 : vector<18x18xf32>
    %633 = arith.addf %615, %632 : vector<18x18xf32>
    %c141 = arith.constant 141 : index
    %634 = memref.load %arg1[%c141] : memref<144xf32, #tpu.memory_space<smem>>
    %635 = vector.broadcast %634 : f32 to vector<18x18xf32>
    %636 = arith.mulf %635, %621 : vector<18x18xf32>
    %637 = arith.addf %619, %636 : vector<18x18xf32>
    %c3_137 = arith.constant 3 : index
    %c2_138 = arith.constant 2 : index
    %c1_139 = arith.constant 1 : index
    %638 = vector.load %arg4[%c3_137, %c2_138, %c1_139] : memref<4x20x20xf32, #tpu.memory_space<vmem>>, vector<1x18x18xf32>
    %639 = vector.shape_cast %638 : vector<1x18x18xf32> to vector<18x18xf32>
    %c34 = arith.constant 34 : index
    %640 = memref.load %arg1[%c34] : memref<144xf32, #tpu.memory_space<smem>>
    %641 = vector.broadcast %640 : f32 to vector<18x18xf32>
    %642 = arith.mulf %641, %639 : vector<18x18xf32>
    %643 = arith.addf %625, %642 : vector<18x18xf32>
    %c70 = arith.constant 70 : index
    %644 = memref.load %arg1[%c70] : memref<144xf32, #tpu.memory_space<smem>>
    %645 = vector.broadcast %644 : f32 to vector<18x18xf32>
    %646 = arith.mulf %645, %639 : vector<18x18xf32>
    %647 = arith.addf %629, %646 : vector<18x18xf32>
    %c106 = arith.constant 106 : index
    %648 = memref.load %arg1[%c106] : memref<144xf32, #tpu.memory_space<smem>>
    %649 = vector.broadcast %648 : f32 to vector<18x18xf32>
    %650 = arith.mulf %649, %639 : vector<18x18xf32>
    %651 = arith.addf %633, %650 : vector<18x18xf32>
    %c142 = arith.constant 142 : index
    %652 = memref.load %arg1[%c142] : memref<144xf32, #tpu.memory_space<smem>>
    %653 = vector.broadcast %652 : f32 to vector<18x18xf32>
    %654 = arith.mulf %653, %639 : vector<18x18xf32>
    %655 = arith.addf %637, %654 : vector<18x18xf32>
    %c3_140 = arith.constant 3 : index
    %c2_141 = arith.constant 2 : index
    %c2_142 = arith.constant 2 : index
    %656 = vector.load %arg4[%c3_140, %c2_141, %c2_142] : memref<4x20x20xf32, #tpu.memory_space<vmem>>, vector<1x18x18xf32>
    %657 = vector.shape_cast %656 : vector<1x18x18xf32> to vector<18x18xf32>
    %c35 = arith.constant 35 : index
    %658 = memref.load %arg1[%c35] : memref<144xf32, #tpu.memory_space<smem>>
    %659 = vector.broadcast %658 : f32 to vector<18x18xf32>
    %660 = arith.mulf %659, %657 : vector<18x18xf32>
    %661 = arith.addf %643, %660 : vector<18x18xf32>
    %c71 = arith.constant 71 : index
    %662 = memref.load %arg1[%c71] : memref<144xf32, #tpu.memory_space<smem>>
    %663 = vector.broadcast %662 : f32 to vector<18x18xf32>
    %664 = arith.mulf %663, %657 : vector<18x18xf32>
    %665 = arith.addf %647, %664 : vector<18x18xf32>
    %c107 = arith.constant 107 : index
    %666 = memref.load %arg1[%c107] : memref<144xf32, #tpu.memory_space<smem>>
    %667 = vector.broadcast %666 : f32 to vector<18x18xf32>
    %668 = arith.mulf %667, %657 : vector<18x18xf32>
    %669 = arith.addf %651, %668 : vector<18x18xf32>
    %c143 = arith.constant 143 : index
    %670 = memref.load %arg1[%c143] : memref<144xf32, #tpu.memory_space<smem>>
    %671 = vector.broadcast %670 : f32 to vector<18x18xf32>
    %672 = arith.mulf %671, %657 : vector<18x18xf32>
    %673 = arith.addf %655, %672 : vector<18x18xf32>
    %c0_143 = arith.constant 0 : index
    %c0_144 = arith.constant 0 : index
    %c0_145 = arith.constant 0 : index
    %c0_146 = arith.constant 0 : index
    %674 = vector.load %arg3[%c0_143, %c0_144, %c0_145, %c0_146] : memref<1x4x18x18xf32, #tpu.memory_space<vmem>>, vector<1x1x18x18xf32>
    %675 = vector.shape_cast %674 : vector<1x1x18x18xf32> to vector<18x18xf32>
    %676 = vector.shape_cast %661 : vector<18x18xf32> to vector<1x1x18x18xf32>
    tpu.vector_store %arg3[%c0_143, %c0_144, %c0_145, %c0_146], %676 {strides = array<i32>} : memref<1x4x18x18xf32, #tpu.memory_space<vmem>>, vector<1x1x18x18xf32>,
    %c0_147 = arith.constant 0 : index
    %c1_148 = arith.constant 1 : index
    %c0_149 = arith.constant 0 : index
    %c0_150 = arith.constant 0 : index
    %677 = vector.load %arg3[%c0_147, %c1_148, %c0_149, %c0_150] : memref<1x4x18x18xf32, #tpu.memory_space<vmem>>, vector<1x1x18x18xf32>
    %678 = vector.shape_cast %677 : vector<1x1x18x18xf32> to vector<18x18xf32>
    %679 = vector.shape_cast %665 : vector<18x18xf32> to vector<1x1x18x18xf32>
    tpu.vector_store %arg3[%c0_147, %c1_148, %c0_149, %c0_150], %679 {strides = array<i32>} : memref<1x4x18x18xf32, #tpu.memory_space<vmem>>, vector<1x1x18x18xf32>,
    %c0_151 = arith.constant 0 : index
    %c2_152 = arith.constant 2 : index
    %c0_153 = arith.constant 0 : index
    %c0_154 = arith.constant 0 : index
    %680 = vector.load %arg3[%c0_151, %c2_152, %c0_153, %c0_154] : memref<1x4x18x18xf32, #tpu.memory_space<vmem>>, vector<1x1x18x18xf32>
    %681 = vector.shape_cast %680 : vector<1x1x18x18xf32> to vector<18x18xf32>
    %682 = vector.shape_cast %669 : vector<18x18xf32> to vector<1x1x18x18xf32>
    tpu.vector_store %arg3[%c0_151, %c2_152, %c0_153, %c0_154], %682 {strides = array<i32>} : memref<1x4x18x18xf32, #tpu.memory_space<vmem>>, vector<1x1x18x18xf32>,
    %c0_155 = arith.constant 0 : index
    %c3_156 = arith.constant 3 : index
    %c0_157 = arith.constant 0 : index
    %c0_158 = arith.constant 0 : index
    %683 = vector.load %arg3[%c0_155, %c3_156, %c0_157, %c0_158] : memref<1x4x18x18xf32, #tpu.memory_space<vmem>>, vector<1x1x18x18xf32>
    %684 = vector.shape_cast %683 : vector<1x1x18x18xf32> to vector<18x18xf32>
    %685 = vector.shape_cast %673 : vector<18x18xf32> to vector<1x1x18x18xf32>
    tpu.vector_store %arg3[%c0_155, %c3_156, %c0_157, %c0_158], %685 {strides = array<i32>} : memref<1x4x18x18xf32, #tpu.memory_space<vmem>>, vector<1x1x18x18xf32>,
    return
  }
  func.func @transform_0(%arg0: i32) -> i32 {
    %c0_i32 = arith.constant 0 : i32
    %c0_i32_0 = arith.constant 0 : i32
    return %c0_i32 : i32
  }
  func.func @transform_1(%arg0: i32) -> (i32, i32, i32, i32) {
    %c0_i32 = arith.constant 0 : i32
    %c0_i32_0 = arith.constant 0 : i32
    %c0_i32_1 = arith.constant 0 : i32
    %c0_i32_2 = arith.constant 0 : i32
    return %arg0, %c0_i32, %c0_i32_0, %c0_i32_1 : i32, i32, i32, i32
  }
  func.func @transform_2(%arg0: i32) -> (i32, i32, i32, i32) {
    %c0_i32 = arith.constant 0 : i32
    %c0_i32_0 = arith.constant 0 : i32
    %c0_i32_1 = arith.constant 0 : i32
    %c0_i32_2 = arith.constant 0 : i32
    return %arg0, %c0_i32, %c0_i32_0, %c0_i32_1 : i32, i32, i32, i32
  }
}

</mosaic_0001>

<bundles_post_ra>
// kernel: tpu_custom_call.1
= control target key start
LH: loop header
LB: loop body
LE: loop exit
PB: predicated region body
PF: predicated region fallthrough
CT: control target
= control target key end

     0   :  { %7 = vsyncpa [#allocation5], 0  ;;  %s4705_s0 = inlined_call_operand.hbm [shape: f32[144], index: 0, kind: input, shape index: {}]   ;;  %s4706_s1 = inlined_call_operand.hbm [shape: f32[2,4,16,16], index: 1, kind: input, shape index: {}]   ;;  %s4707_s2 = inlined_call_operand.vmem [shape: f32[2,4,18,18], index: 2, kind: output, shape index: {}]  }
   0x1   :  { %8 = vsyncpa [#allocation4], 0 }
   0x2   :  { %10 = vsyncpa [#allocation4 + $0x1], 0  ;;  %s3013_s9 = smov 0   ;;  %s3015_s10 = smov 0  }
   0x3   :  { %s3017_s11 = smov 0   ;;  %s3019_s12 = smov 0  }
   0x4 LB: > { %s3029_s13 = sadd.s32 4294967295, %s2988_s12   ;;  %s3031_s14 = sadd.s32 1, %s2988_s12   ;;  %s2988_s12 = sphi %s3019_s12, %s4721_s12   ;;  %s2984_s11 = sphi %s3017_s11, %s4720_s11   ;;  %s2980_s10 = sphi %s3015_s10, %s4719_s10   ;;  %s2976_s9 = sphi %s3013_s9, %s4718_s9  }
   0x5   : > { %s41_s15 = ssub.s32 %s2988_s12, %s3031_s14  ;;  %s44_s16 = sadd.s32 1, %s2984_s11 }
   0x6   : > { %p42_p0 = scmp.eq.s32.totalorder %s41_s15, 0  ;;  %p51_p1 = scmp.ne.s32.totalorder %s2984_s11, %s2980_s10 }
   0x7   : > { %p52_p2 = scmp.eq.s32.totalorder %s2988_s12, 0  ;;  %p57_p3 = scmp.ne.s32.totalorder %s2980_s10, %s2976_s9 }
   0x8   : > { %s3039_s17 = scalar_select %p42_p0, %s2984_s11, %s44_s16  }
   0x9   : > { %p53_p4 = por %p52_p2, %p51_p1  ;;  %p4708_p5 = scmp.eq.s32.totalorder %s3029_s13, 0 }
   0xa   : > { %p2682_p6 = scmp.ge.s32.totalorder %s2988_s12, 1  ;;  %p94_p7 = scmp.lt.s32.totalorder %s2988_s12, 3 }
   0xb   : > { %p3044_p8 = por %p4708_p5, %p57_p3  ;;  %p2869_p10 = scmp.lt.s32.totalorder %s2988_s12, 2 }
   0xc   : > { %p3048_p9 = pnand %p2682_p6, %p94_p7  ;;  %s116_s20 = sand.u32 1, %s2984_s11  }
   0xd   : > { %s4711_s18 = scalar_select %p3044_p8, 1, 0 }
   0xe   : > { %s4712_s19 = scalar_select %p3048_p9, 1, 0 }
   0xf   : > { %p2860_p11 = pneg %p3048_p9  ;;  %p3055_p12 = pnand %p2869_p10, %p53_p4 }
  0x10   : > { %s2685_s22 = sshll.u32 %s116_s20, 6  ;;  %s2852_s23 = sshll.u32 %s2988_s12, 10 }
  0x11   : > { %p2861_p13 = pnand %p2860_p11, %p4708_p5  ;;  %s2990_s24 = smov [#allocation3]  }
  0x12   : > { %s3067_s29 = scalar_lea.hbm %s4706_s1, %s2852_s23  ;;  %s120_s30 = scalar_lea.vmem [#allocation6], %s2685_s22 }
  0x13   : > { %2863 = dma.hbm_to_smem (!%p2861_p13), %s4705_s0, 32, %s2990_s24, [#allocation5]  }
  0x14   : > { %s127_s3 = sshll.u32 %s120_s30, 4  ;;  %s3071_s4 = scalar_lea.sflag [#allocation4], %s116_s20  ;;  %s3069_s3 = int_to_ptr.vmem [resolvable:$true] %s127_s3 }
  0x15   : > { %s2922_s5 = scalar_lea.hbm %s3067_s29, 1024  ;;  %p2924_p1 = pneg %p3055_p12 }
  0x16   : > { %p2923_p0 = scmp.ne.s32.totalorder %s3067_s29, %s2922_s5  ;;  %s2927_s8 = scalar_lea.hbm %s4706_s1, 2048 }
  0x17   : > { %p2928_p4 = scmp.lt.s32.totalorder %s3067_s29, %s4706_s1  ;;  %p2929_p6 = scmp.lt.s32.totalorder %s2927_s8, %s2922_s5 }
  0x18   : > { %p2925_p2 = pnand %p2924_p1, %p2923_p0 }
  0x19   : > { %p2930_p7 = por %p2929_p6, %p2928_p4 }
  0x1a   : > { %p2926_p3 = pneg %p2925_p2 }
  0x1c   : > { %p2931_p10 = pnand %p2930_p7, %p2926_p3 }
  0x1e   : > { %2934 = shalt.err (!%p2931_p10)
}
  0x1f   : > { %s2935_s15 = scalar_lea.vmem %s3069_s3, 1024  ;;  %s2991_s16 = smov [#allocation6]  }
  0x20   : > { %p2936_p11 = scmp.ne.s32.totalorder %s3069_s3, %s2935_s15  ;;  %s2940_s20 = sshll.u32 %s2991_s16, 4  ;;  %s2941_s20 = int_to_ptr.vmem [resolvable:$false] %s2940_s20 }
  0x21   : > { %s2942_s22 = scalar_lea.vmem %s2941_s20, 2048  ;;  %p2943_p2 = scmp.lt.s32.totalorder %s3069_s3, %s2941_s20 }
  0x22   : > { %p2938_p13 = pnand %p2936_p11, %p2924_p1  ;;  %p2944_p5 = scmp.lt.s32.totalorder %s2942_s22, %s2935_s15 }
  0x24   : > { %p2939_p0 = pneg %p2938_p13  ;;  %p2945_p8 = por %p2944_p5, %p2943_p2 }
  0x26   : > { %p2946_p9 = pnand %p2945_p8, %p2939_p0 }
  0x28   : > { %2949 = shalt.err (!%p2946_p9)
}
  0x29   : > { %s2992_s23 = smov 128   ;;  %s2993_s24 = smov 8  }
  0x2a   : > { %2867 = dma.hbm_to_vmem [thread:$0]  (!%p3055_p12), %s3067_s29, 1024, %s3069_s3, %s3071_s4, %s2992_s23, %s2992_s23, %s2993_s24  }
  0x2b   : > { %p4714_p1 = scmp.ne.s32.totalorder %s4712_s19, 0 }
  0x2c   : > { %p4715_p3 = scmp.eq.s32.totalorder (!%p4714_p1), %s3029_s13, 0 }
  0x2d   : > { %139 = sbr.rel (%p4714_p1) target bundleno = 873 (0x369), region = 28 }
  0x32   : > { %2967 = dma.done.wait (%p4715_p3), [#allocation5], 32   ;;  %p4716_p4 = pmov %p4715_p3 }
  0x33   : > { %s145_s25 = sand.u32 1, %s2980_s10   ;;  %p4717_p5 = scmp.ne.s32.totalorder %s4711_s18, 0 }
  0x34   : > { %2969 = vsyncadd (%p4716_p4), [#allocation5], 4294967264  ;;  %s2690_s26 = sshll.u32 %s145_s25, 6  ;;  %s146_s27 = scalar_lea.sflag [#allocation4], %s145_s25 }
  0x35   : > { %s3099_s28 = scalar_lea.vmem [#allocation6], %s2690_s26 }
  0x36   : > { %2971 = dma.done.wait (%p4717_p5), %s146_s27, 1024  }
  0x37   : > { %2973 = vsyncadd (%p4717_p5), %s146_s27, 4294966272 }
  0x38   : > { %154 = sfence }
  0x39   : > { %v190_v0 = vld [vmem:[%s3099_s28] sm:$0xff]  ;;  %v2692_v1 = vld [vmem:[%s3099_s28 + $0x10] sm:$0xff]  ;;  %vm176_vm0 = vcmask 162816   ;;  %s2994_s19 = smov 2   ;;  %vm179_vm1 = vcmask 158720   ;;  %v191_v2 = vld [vmem:[%s3099_s28 + $0x8] sm:$0xff] }
  0x3a   : > { %194 = vrot.lane.b32.xlu0 %v190_v0, %s2994_s19  ;;  %208 = vrot.lane.b32.xlu1 %v2692_v1, %s2994_s19  ;;  %v2693_v3 = vld [vmem:[%s3099_s28 + $0x18] sm:$0xff]  ;;  %v2995_v4 = vmov 0.0   ;;  %s2725_s18 = sld [smem:[#allocation3 + $0x7]]  ;;  %v2694_v5 = vld [vmem:[%s3099_s28 + $0x20] sm:$0xff]  ;;  %s2996_s29 = smov 127   ;;  %vm200_vm2 = vcmask 146448  }
  0x3b   : > { %177 = vst.msk [vmem:[#allocation2] sm:$0xff] %vm176_vm0, %v2995_v4  ;;  %178 = vst.msk [vmem:[#allocation2 + $0x8] sm:$0xff] %vm176_vm0, %v2995_v4  ;;  %s2726_s21 = sld [smem:[#allocation3 + $0x2b]]  ;;  %v2695_v6 = vld [vmem:[%s3099_s28 + $0x28] sm:$0xff]  ;;  %v2696_v7 = vld [vmem:[%s3099_s28 + $0x30] sm:$0xff]  ;;  %s2997_s9 = smov 126  }
  0x3c   : > { %181 = vst.msk [vmem:[#allocation2 + $0x18] sm:$0xff] %vm176_vm0, %v2995_v4  ;;  %182 = vst.msk [vmem:[#allocation2 + $0x20] sm:$0xff] %vm176_vm0, %v2995_v4  ;;  %v2697_v9 = vld [vmem:[%s3099_s28 + $0x38] sm:$0xff]  ;;  %s2701_s30 = sld [smem:[#allocation3 + $0x1]]  ;;  %p171_p8 = scmp.lt.s32.totalorder %s3029_s13, 1  ;;  %vm2585_vm3 = vcmask 146432  }
  0x3d   : > { %184 = vst.msk [vmem:[#allocation2 + $0x30] sm:$0xff] %vm176_vm0, %v2995_v4  ;;  %185 = vst.msk [vmem:[#allocation2 + $0x38] sm:$0xff] %vm176_vm0, %v2995_v4  ;;  %s2702_s3 = sld [smem:[#allocation3 + $0x25]]  ;;  %vm2588_vm4 = vcmask 140288  }
  0x3e   : > { %187 = vst.msk [vmem:[#allocation2 + $0x48] sm:$0xff] %vm176_vm0, %v2995_v4  ;;  %188 = vst.msk [vmem:[#allocation2 + $0x50] sm:$0xff] %vm176_vm0, %v2995_v4  ;;  %196 = vrot.lane.b32.xlu0 %v191_v2, %s2994_s19  ;;  %210 = vrot.lane.b32.xlu1 %v2693_v3, %s2994_s19  ;;  %s2703_s4 = sld [smem:[#allocation3 + $0x49]]  ;;  %s4723_s13 = smov (!%p171_p8, %s3029_s13), 1 }
  0x3f   : > { %180 = vst.msk [vmem:[#allocation2 + $0x10] sm:$0xf] %vm179_vm1, %v2995_v4  ;;  %183 = vst.msk [vmem:[#allocation2 + $0x28] sm:$0xf] %vm179_vm1, %v2995_v4  ;;  %s2704_s5 = sld [smem:[#allocation3 + $0x6d]] }
  0x40   : > { %186 = vst.msk [vmem:[#allocation2 + $0x40] sm:$0xf] %vm179_vm1, %v2995_v4  ;;  %189 = vst.msk [vmem:[#allocation2 + $0x58] sm:$0xf] %vm179_vm1, %v2995_v4  ;;  %v3121_v10 = vstv %s2725_s18  ;;  %s2705_s6 = sld [smem:[#allocation3 + $0x2]] }
  0x41   : > { %v3123_v11 = vstv %s2726_s21  ;;  %s2706_s7 = sld [smem:[#allocation3 + $0x26]] }
  0x42   : > { %222 = vrot.lane.b32.xlu0 %v2694_v5, %s2994_s19  ;;  %224 = vrot.lane.b32.xlu1 %v2695_v6, %s2994_s19  ;;  %v281_v18 = vstv %s2701_s30  ;;  %s2707_s8 = sld [smem:[#allocation3 + $0x4a]] }
  0x43   : > { %v301_v29 = vstv %s2702_s3  ;;  %s2708_s12 = sld [smem:[#allocation3 + $0x6e]] }
  0x44   : > { %v321_v32 = vstv %s2703_s4  ;;  %s2713_s15 = sld [smem:[#allocation3 + $0x4]] }
  0x45   : > { %v341_v37 = vstv %s2704_s5  ;;  %s2714_s16 = sld [smem:[#allocation3 + $0x28]] }
  0x46   : > { %v3118_v8 = vld [vmem:[#allocation2 + $0x12] sm:$0x3]  ;;  %236 = vrot.lane.b32.xlu0 %v2696_v7, %s2994_s19  ;;  %238 = vrot.lane.b32.xlu1 %v2697_v9, %s2994_s19  ;;  %v361_v40 = vstv %s2705_s6  ;;  %s2715_s20 = sld [smem:[#allocation3 + $0x4c]] }
  0x47   : > { %v674_v12 = vmul.f32 %v3121_v10, %v3118_v8  ;;  %v694_v13 = vmul.f32 %v3123_v11, %v3118_v8  ;;  %v381_v45 = vstv %s2706_s7  ;;  %s2716_s22 = sld [smem:[#allocation3 + $0x70]] }
  0x48   : > { %v401_v48 = vstv %s2707_s8  ;;  %s2717_s23 = sld [smem:[#allocation3 + $0x5]] }
  0x49   : > { %v421_v53 = vstv %s2708_s12  ;;  %s2718_s24 = sld [smem:[#allocation3 + $0x29]] }
  0x4a   : > { %682 = vrot.lane.b32.xlu0 %v674_v12, %s2996_s29  ;;  %702 = vrot.lane.b32.xlu1 %v694_v13, %s2996_s29  ;;  %v476_v57 = vstv %s2713_s15  ;;  %s2719_s25 = sld [smem:[#allocation3 + $0x4d]] }
  0x4b   : > { %v496_v0 = vstv %s2714_s16  ;;  %s2720_s26 = sld [smem:[#allocation3 + $0x71]] }
  0x4c   : > { %v516_v3 = vstv %s2715_s20  ;;  %s2727_s27 = sld [smem:[#allocation3 + $0x4f]] }
  0x4d   : > { %v536_v9 = vstv %s2716_s22  ;;  %s2728_s28 = sld [smem:[#allocation3 + $0x73]] }
  0x4e   : > { %s2729_s19 = sld [smem:[#allocation3 + $0x8]] }
  0x4f   : > { %s2730_s18 = sld [smem:[#allocation3 + $0x2c]] }
  0x50   : > { %s2731_s21 = sld [smem:[#allocation3 + $0x50]] }
  0x51   : > { %s2732_s30 = sld [smem:[#allocation3 + $0x74]] }
  0x52   : > { %s248_s3 = sld [smem:[#allocation3]] }
  0x53   : > { %s2737_s4 = sld [smem:[#allocation3 + $0xa]] }
  0x54   : > { %s2709_s5 = sld [smem:[#allocation3 + $0x3]] }
  0x55   : > { %s2698_s6 = sld [smem:[#allocation3 + $0x24]] }
  0x56   : > { %s2699_s7 = sld [smem:[#allocation3 + $0x48]] }
  0x57   : > { %s3315_s8 = sld [smem:[#allocation3 + $0x2e]] }
  0x58   : > { %s3326_s12 = sld [smem:[#allocation3 + $0x27]] }
  0x59   : > { %s3331_s15 = sld [smem:[#allocation3 + $0x52]] }
  0x5a   : > { %s3342_s16 = sld [smem:[#allocation3 + $0x6c]] }
  0x5b   : > { %s3347_s20 = sld [smem:[#allocation3 + $0x4b]] }
  0x5c   : > { %s3363_s22 = sld [smem:[#allocation3 + $0x76]] }
  0xac   : > { %v195_v14 = vpop.permute.xlu0 %194  ;;  %v209_v15 = vpop.permute.xlu1 %208 }
  0xad   : > { %201 = vst.msk [vmem:[#allocation2 + $0x2] sm:$0xff] %vm200_vm2, %v195_v14  ;;  %215 = vst.msk [vmem:[#allocation2 + $0x1a] sm:$0xff] %vm200_vm2, %v209_v15  ;;  %v556_v14 = vstv %s2717_s23  ;;  %s3382_s23 = sld [smem:[#allocation3 + $0x6f]] }
  0xb0   : > { %v197_v16 = vpop.permute.xlu0 %196  ;;  %v211_v17 = vpop.permute.xlu1 %210 }
  0xb1   : > { %202 = vst.msk [vmem:[#allocation2 + $0xa] sm:$0xff] %vm200_vm2, %v197_v16  ;;  %216 = vst.msk [vmem:[#allocation2 + $0x22] sm:$0xff] %vm200_vm2, %v211_v17 }
  0xb4   : > { %v3137_v19 = vld [vmem:[#allocation2] sm:$0xff]  ;;  %v223_v20 = vpop.permute.xlu0 %222  ;;  %v225_v21 = vpop.permute.xlu1 %224 }
  0xb5   : > { %v282_v22 = vmul.f32 %v281_v18, %v3137_v19  ;;  %229 = vst.msk [vmem:[#allocation2 + $0x32] sm:$0xff] %vm200_vm2, %v223_v20  ;;  %230 = vst.msk [vmem:[#allocation2 + $0x3a] sm:$0xff] %vm200_vm2, %v225_v21  ;;  %v302_v30 = vmul.f32 %v301_v29, %v3137_v19  ;;  %v322_v34 = vmul.f32 %v321_v32, %v3137_v19  ;;  %v3191_v56 = vld [vmem:[#allocation2 + $0x1] sm:$0xff]  ;;  %v576_v20 = vstv %s2718_s24  ;;  %s3394_s24 = sld [smem:[#allocation3 + $0xb]] }
  0xb6   : > { %v342_v38 = vmul.f32 %v341_v37, %v3137_v19  ;;  %v362_v42 = vmul.f32 %v361_v40, %v3137_v19  ;;  %v382_v46 = vmul.f32 %v381_v45, %v3137_v19  ;;  %v402_v50 = vmul.f32 %v401_v48, %v3137_v19 }
  0xb7   : > { %288 = vrot.lane.b32.xlu0 %v282_v22, %s2996_s29  ;;  %v422_v54 = vmul.f32 %v421_v53, %v3137_v19  ;;  %v477_v59 = vmul.f32 %v476_v57, %v3191_v56  ;;  %v497_v1 = vmul.f32 %v496_v0, %v3191_v56  ;;  %v517_v5 = vmul.f32 %v516_v3, %v3191_v56 }
  0xb8   : > { %v3143_v23 = vld [vmem:[#allocation2 + $0x8] sm:$0xff]  ;;  %v3145_v24 = vld [vmem:[#allocation2 + $0x10] sm:$0x3]  ;;  %v237_v25 = vpop.permute.xlu0 %236  ;;  %v239_v26 = vpop.permute.xlu1 %238  ;;  %v537_v12 = vmul.f32 %v536_v9, %v3191_v56  ;;  %v557_v16 = vmul.f32 %v556_v14, %v3191_v56  ;;  %v577_v21 = vmul.f32 %v576_v20, %v3191_v56 }
  0xb9   : > { %v283_v27 = vmul.f32 %v281_v18, %v3143_v23  ;;  %v284_v28 = vmul.f32 %v281_v18, %v3145_v24  ;;  %243 = vst.msk [vmem:[#allocation2 + $0x4a] sm:$0xff] %vm200_vm2, %v237_v25  ;;  %244 = vst.msk [vmem:[#allocation2 + $0x52] sm:$0xff] %vm200_vm2, %v239_v26  ;;  %v303_v31 = vmul.f32 %v301_v29, %v3143_v23  ;;  %v3197_v60 = vld [vmem:[#allocation2 + $0x9] sm:$0xff]  ;;  %v3199_v61 = vld [vmem:[#allocation2 + $0x11] sm:$0x3]  ;;  %v596_v25 = vstv %s2719_s25  ;;  %s2742_s25 = sld [smem:[#allocation3 + $0x2f]] }
  0xba   : > { %v304_v33 = vmul.f32 %v301_v29, %v3145_v24  ;;  %v323_v35 = vmul.f32 %v321_v32, %v3143_v23  ;;  %v324_v36 = vmul.f32 %v321_v32, %v3145_v24  ;;  %v343_v39 = vmul.f32 %v341_v37, %v3143_v23 }
  0xbb   : > { %290 = vrot.lane.b32.xlu1 %v283_v27, %s2996_s29  ;;  %292 = vrot.lane.b32.xlu0 %v284_v28, %s2996_s29  ;;  %v344_v41 = vmul.f32 %v341_v37, %v3145_v24  ;;  %v363_v43 = vmul.f32 %v361_v40, %v3143_v23  ;;  %v364_v44 = vmul.f32 %v361_v40, %v3145_v24 }
  0xbc   : > { %v383_v47 = vmul.f32 %v381_v45, %v3143_v23  ;;  %v384_v49 = vmul.f32 %v381_v45, %v3145_v24  ;;  %v403_v51 = vmul.f32 %v401_v48, %v3143_v23  ;;  %v404_v52 = vmul.f32 %v401_v48, %v3145_v24 }
  0xbd   : > { %v423_v55 = vmul.f32 %v421_v53, %v3143_v23  ;;  %v424_v58 = vmul.f32 %v421_v53, %v3145_v24  ;;  %v478_v62 = vmul.f32 %v476_v57, %v3197_v60  ;;  %v479_v63 = vmul.f32 %v476_v57, %v3199_v61 }
  0xbe   : > { %v498_v2 = vmul.f32 %v496_v0, %v3197_v60  ;;  %v499_v4 = vmul.f32 %v496_v0, %v3199_v61  ;;  %v518_v6 = vmul.f32 %v516_v3, %v3197_v60  ;;  %v519_v7 = vmul.f32 %v516_v3, %v3199_v61 }
  0xbf   : > { %308 = vrot.lane.b32.xlu1 %v302_v30, %s2996_s29  ;;  %310 = vrot.lane.b32.xlu0 %v303_v31, %s2996_s29  ;;  %v538_v13 = vmul.f32 %v536_v9, %v3197_v60  ;;  %v539_v15 = vmul.f32 %v536_v9, %v3199_v61  ;;  %v558_v17 = vmul.f32 %v556_v14, %v3197_v60  ;;  %v616_v30 = vstv %s2720_s26  ;;  %s2743_s26 = sld [smem:[#allocation3 + $0x53]] }
  0xc0   : > { %v559_v18 = vmul.f32 %v556_v14, %v3199_v61  ;;  %v578_v22 = vmul.f32 %v576_v20, %v3197_v60  ;;  %v579_v26 = vmul.f32 %v576_v20, %v3199_v61  ;;  %v597_v27 = vmul.f32 %v596_v25, %v3191_v56 }
  0xc1   : > { %v598_v28 = vmul.f32 %v596_v25, %v3197_v60  ;;  %v599_v29 = vmul.f32 %v596_v25, %v3199_v61  ;;  %v617_v31 = vmul.f32 %v616_v30, %v3191_v56  ;;  %v618_v32 = vmul.f32 %v616_v30, %v3197_v60 }
  0xc2   : > { %v811_v9 = vstv %s2732_s30  ;;  %v866_v20 = vstv %s2737_s4  ;;  %s2751_s30 = sld [smem:[#allocation3 + $0x55]] }
  0xc3   : > { %312 = vrot.lane.b32.xlu1 %v304_v33, %s2996_s29  ;;  %328 = vrot.lane.b32.xlu0 %v322_v34, %s2996_s29  ;;  %v3245_v33 = vld [vmem:[#allocation2 + $0x2] sm:$0xff]  ;;  %v619_v34 = vmul.f32 %v616_v30, %v3199_v61  ;;  %s2752_s4 = sld [smem:[#allocation3 + $0x79]] }
  0xc4   : > { %v692_v40 = vmul.f32 %v3123_v11, %v3245_v33  ;;  %v3336_v30 = vld [vmem:[#allocation2 + $0x20] sm:$0xff] }
  0xc7   : > { %330 = vrot.lane.b32.xlu1 %v323_v35, %s2996_s29  ;;  %332 = vrot.lane.b32.xlu0 %v324_v36, %s2996_s29  ;;  %v672_v35 = vmul.f32 %v3121_v10, %v3245_v33  ;;  %v3252_v36 = vld [vmem:[#allocation2 + $0xa] sm:$0xff] }
  0xc8   : > { %v673_v37 = vmul.f32 %v3121_v10, %v3252_v36 }
  0xcb   : > { %348 = vrot.lane.b32.xlu1 %v342_v38, %s2996_s29  ;;  %350 = vrot.lane.b32.xlu0 %v343_v39, %s2996_s29  ;;  %v693_v38 = vmul.f32 %v3123_v11, %v3252_v36  ;;  %v711_v39 = vstv %s2727_s27  ;;  %s2744_s27 = sld [smem:[#allocation3 + $0x77]] }
  0xcc   : > { %v714_v10 = vmul.f32 %v711_v39, %v3118_v8 }
  0xcf   : > { %352 = vrot.lane.b32.xlu1 %v344_v41, %s2996_s29  ;;  %368 = vrot.lane.b32.xlu0 %v362_v42, %s2997_s9  ;;  %v712_v41 = vmul.f32 %v711_v39, %v3245_v33  ;;  %v713_v42 = vmul.f32 %v711_v39, %v3252_v36 }
  0xd3   : > { %370 = vrot.lane.b32.xlu1 %v363_v43, %s2997_s9  ;;  %372 = vrot.lane.b32.xlu0 %v364_v44, %s2997_s9  ;;  %v731_v43 = vstv %s2728_s28  ;;  %v3271_v44 = vpop.permute.xlu0 %682  ;;  %s2749_s28 = sld [smem:[#allocation3 + $0xd]] }
  0xd4   : > { %v732_v11 = vmul.f32 %v731_v43, %v3245_v33  ;;  %v733_v45 = vmul.f32 %v731_v43, %v3252_v36  ;;  %v734_v48 = vmul.f32 %v731_v43, %v3118_v8 }
  0xd7   : > { %388 = vrot.lane.b32.xlu1 %v382_v46, %s2997_s9  ;;  %390 = vrot.lane.b32.xlu0 %v383_v47, %s2997_s9  ;;  %v751_v46 = vstv %s2729_s19  ;;  %v3277_v47 = vpop.permute.xlu1 %702  ;;  %s2721_s19 = sld [smem:[#allocation3 + $0x6]] }
  0xdb   : > { %392 = vrot.lane.b32.xlu1 %v384_v49, %s2997_s9  ;;  %408 = vrot.lane.b32.xlu0 %v402_v50, %s2997_s9  ;;  %v752_v50 = vmul.f32 %v751_v46, %v3245_v33 }
  0xdf   : > { %410 = vrot.lane.b32.xlu1 %v403_v51, %s2997_s9  ;;  %412 = vrot.lane.b32.xlu0 %v404_v52, %s2997_s9  ;;  %v754_v51 = vmul.f32 %v751_v46, %v3118_v8 }
  0xe3   : > { %428 = vrot.lane.b32.xlu1 %v422_v54, %s2997_s9  ;;  %430 = vrot.lane.b32.xlu0 %v423_v55, %s2997_s9  ;;  %v753_v54 = vmul.f32 %v751_v46, %v3252_v36  ;;  %v771_v55 = vstv %s2730_s18  ;;  %s2750_s18 = sld [smem:[#allocation3 + $0x31]] }
  0xe4   : > { %v774_v0 = vmul.f32 %v771_v55, %v3118_v8 }
  0xe7   : > { %432 = vrot.lane.b32.xlu1 %v424_v58, %s2997_s9  ;;  %483 = vrot.lane.b32.xlu0 %v477_v59, %s2996_s29  ;;  %v772_v59 = vmul.f32 %v771_v55, %v3245_v33 }
  0xeb   : > { %485 = vrot.lane.b32.xlu1 %v478_v62, %s2996_s29  ;;  %487 = vrot.lane.b32.xlu0 %v479_v63, %s2996_s29  ;;  %v773_v62 = vmul.f32 %v771_v55, %v3252_v36  ;;  %v791_v63 = vstv %s2731_s21  ;;  %s2722_s21 = sld [smem:[#allocation3 + $0x2a]] }
  0xec   : > { %v792_v3 = vmul.f32 %v791_v63, %v3245_v33 }
  0xef   : > { %503 = vrot.lane.b32.xlu1 %v497_v1, %s2996_s29  ;;  %505 = vrot.lane.b32.xlu0 %v498_v2, %s2996_s29 }
  0xf3   : > { %507 = vrot.lane.b32.xlu1 %v499_v4, %s2996_s29  ;;  %523 = vrot.lane.b32.xlu0 %v517_v5, %s2996_s29  ;;  %v794_v4 = vmul.f32 %v791_v63, %v3118_v8 }
  0xf7   : > { %525 = vrot.lane.b32.xlu1 %v518_v6, %s2996_s29  ;;  %527 = vrot.lane.b32.xlu0 %v519_v7, %s2996_s29  ;;  %v793_v7 = vmul.f32 %v791_v63, %v3252_v36 }
  0xfb   : > { %543 = vrot.lane.b32.xlu1 %v537_v12, %s2996_s29  ;;  %545 = vrot.lane.b32.xlu0 %v538_v13, %s2996_s29  ;;  %v249_v12 = vstv %s248_s3  ;;  %s2723_s3 = sld [smem:[#allocation3 + $0x4e]] }
  0xff   : > { %547 = vrot.lane.b32.xlu1 %v539_v15, %s2996_s29  ;;  %563 = vrot.lane.b32.xlu0 %v557_v16, %s2997_s9  ;;  %v812_v15 = vmul.f32 %v811_v9, %v3245_v33  ;;  %v813_v16 = vmul.f32 %v811_v9, %v3252_v36 }
 0x103   : > { %565 = vrot.lane.b32.xlu1 %v558_v17, %s2997_s9  ;;  %567 = vrot.lane.b32.xlu0 %v559_v18, %s2997_s9  ;;  %v3323_v17 = vld [vmem:[#allocation2 + $0x18] sm:$0xff]  ;;  %v250_v18 = vmul.f32 %v249_v12, %v3137_v19 }
 0x107   : > { %583 = vrot.lane.b32.xlu1 %v577_v21, %s2997_s9  ;;  %585 = vrot.lane.b32.xlu0 %v578_v22, %s2997_s9  ;;  %v814_v21 = vmul.f32 %v811_v9, %v3118_v8  ;;  %v444_v22 = vstv %s2709_s5  ;;  %s2724_s5 = sld [smem:[#allocation3 + $0x72]] }
 0x10b   : > { %587 = vrot.lane.b32.xlu1 %v579_v26, %s2997_s9  ;;  %603 = vrot.lane.b32.xlu0 %v597_v27, %s2997_s9  ;;  %v257_v26 = vstv %s2698_s6  ;;  %s2753_s6 = sld [smem:[#allocation3 + $0xe]] }
 0x10c   : > { %v260_v63 = vmul.f32 %v257_v26, %v3145_v24 }
 0x10f   : > { %605 = vrot.lane.b32.xlu1 %v598_v28, %s2997_s9  ;;  %607 = vrot.lane.b32.xlu0 %v599_v29, %s2997_s9  ;;  %v867_v29 = vmul.f32 %v866_v20, %v3323_v17 }
 0x113   : > { %623 = vrot.lane.b32.xlu1 %v617_v31, %s2997_s9  ;;  %625 = vrot.lane.b32.xlu0 %v618_v32, %s2997_s9  ;;  %v3338_v31 = vld [vmem:[#allocation2 + $0x28] sm:$0x3]  ;;  %v251_v32 = vmul.f32 %v249_v12, %v3143_v23 }
 0x114   : > { %v869_v46 = vmul.f32 %v866_v20, %v3338_v31 }
 0x117   : > { %627 = vrot.lane.b32.xlu1 %v619_v34, %s2997_s9  ;;  %678 = vrot.lane.b32.xlu0 %v672_v35, %s2996_s29  ;;  %v252_v34 = vmul.f32 %v249_v12, %v3145_v24  ;;  %v445_v35 = vmul.f32 %v444_v22, %v3191_v56 }
 0x11b   : > { %680 = vrot.lane.b32.xlu1 %v673_v37, %s2996_s29  ;;  %700 = vrot.lane.b32.xlu0 %v693_v38, %s2996_s29  ;;  %v265_v37 = vstv %s2699_s7  ;;  %s2754_s7 = sld [smem:[#allocation3 + $0x32]] }
 0x11f   : > { %698 = vrot.lane.b32.xlu1 %v692_v40, %s2996_s29  ;;  %718 = vrot.lane.b32.xlu0 %v712_v41, %s2996_s29  ;;  %v886_v40 = vstv %s3315_s8  ;;  %s2755_s8 = sld [smem:[#allocation3 + $0x56]] }
 0x120   : > { %v888_v9 = vmul.f32 %v886_v40, %v3336_v30 }
 0x123   : > { %720 = vrot.lane.b32.xlu1 %v713_v42, %s2996_s29  ;;  %722 = vrot.lane.b32.xlu0 %v714_v10, %s2996_s29  ;;  %v258_v10 = vmul.f32 %v257_v26, %v3137_v19  ;;  %v259_v42 = vmul.f32 %v257_v26, %v3143_v23  ;;  %v267_v26 = vmul.f32 %v265_v37, %v3143_v23 }
 0x127   : > { %738 = vrot.lane.b32.xlu1 %v732_v11, %s2996_s29  ;;  %740 = vrot.lane.b32.xlu0 %v733_v45, %s2996_s29  ;;  %v868_v45 = vmul.f32 %v866_v20, %v3336_v30 }
 0x129   : > { %v289_v49 = vpop.permute.xlu0 %288 }
 0x12a   : > { %v297_v25 = vadd.f32 %v289_v49, %v250_v18  ;;  %v460_v18 = vstv %s3347_s20  ;;  %s3607_s20 = sld [smem:[#allocation3 + $0x2d]] }
 0x12b   : > { %742 = vrot.lane.b32.xlu1 %v734_v48, %s2996_s29  ;;  %758 = vrot.lane.b32.xlu0 %v752_v50, %s2997_s9  ;;  %v446_v50 = vmul.f32 %v444_v22, %v3197_v60 }
 0x12d   : > { %v3284_v52 = vpop.permute.xlu1 %290  ;;  %v3286_v53 = vpop.permute.xlu0 %292 }
 0x12e   : > { %v298_v38 = vadd.f32 %v3284_v52, %v251_v32  ;;  %v299_v39 = vadd.f32 %v3286_v53, %v252_v34  ;;  %v906_v52 = vstv %s3331_s15  ;;  %v452_v53 = vstv %s3326_s12  ;;  %s2756_s12 = sld [smem:[#allocation3 + $0x7a]] }
 0x12f   : > { %760 = vrot.lane.b32.xlu1 %v753_v54, %s2997_s9  ;;  %762 = vrot.lane.b32.xlu0 %v754_v51, %s2997_s9  ;;  %v447_v51 = vmul.f32 %v444_v22, %v3199_v61  ;;  %v889_v34 = vmul.f32 %v886_v40, %v3338_v31  ;;  %s2733_s15 = sld [smem:[#allocation3 + $0x9]] }
 0x131   : > { %v3291_v57 = vpop.permute.xlu1 %308  ;;  %v3293_v58 = vpop.permute.xlu0 %310 }
 0x132   : > { %v317_v54 = vadd.f32 %v3291_v57, %v258_v10  ;;  %v318_v55 = vadd.f32 %v3293_v58, %v259_v42  ;;  %v453_v57 = vmul.f32 %v452_v53, %v3191_v56  ;;  %v454_v58 = vmul.f32 %v452_v53, %v3197_v60 }
 0x133   : > { %778 = vrot.lane.b32.xlu1 %v772_v59, %s2997_s9  ;;  %780 = vrot.lane.b32.xlu0 %v773_v62, %s2997_s9 }
 0x135   : > { %v3300_v1 = vpop.permute.xlu1 %312  ;;  %v3302_v2 = vpop.permute.xlu0 %328 }
 0x136   : > { %v319_v20 = vadd.f32 %v3300_v1, %v260_v63 }
 0x137   : > { %782 = vrot.lane.b32.xlu1 %v774_v0, %s2997_s9  ;;  %798 = vrot.lane.b32.xlu0 %v792_v3, %s2997_s9  ;;  %v266_v0 = vmul.f32 %v265_v37, %v3137_v19 }
 0x139   : > { %v3308_v5 = vpop.permute.xlu1 %330  ;;  %v3310_v6 = vpop.permute.xlu0 %332 }
 0x13b   : > { %800 = vrot.lane.b32.xlu1 %v793_v7, %s2997_s9  ;;  %802 = vrot.lane.b32.xlu0 %v794_v4, %s2997_s9  ;;  %v887_v7 = vmul.f32 %v886_v40, %v3323_v17 }
 0x13d   : > { %v3317_v13 = vpop.permute.xlu1 %348  ;;  %v3319_v14 = vpop.permute.xlu0 %350 }
 0x13f   : > { %818 = vrot.lane.b32.xlu1 %v812_v15, %s2997_s9  ;;  %820 = vrot.lane.b32.xlu0 %v813_v16, %s2997_s9  ;;  %v273_v16 = vstv %s3342_s16  ;;  %s2761_s16 = sld [smem:[#allocation3 + $0x10]] }
 0x141   : > { %v3333_v27 = vpop.permute.xlu1 %352  ;;  %v369_v28 = vpop.permute.xlu0 %368 }
 0x142   : > { %v377_v8 = vadd.f32 %v369_v28, %v297_v25  ;;  %v268_v28 = vmul.f32 %v265_v37, %v3145_v24  ;;  %v338_v37 = vadd.f32 %v3308_v5, %v267_v26 }
 0x143   : > { %822 = vrot.lane.b32.xlu1 %v814_v21, %s2997_s9  ;;  %873 = vrot.lane.b32.xlu0 %v867_v29, %s2996_s29  ;;  %v337_v21 = vadd.f32 %v3302_v2, %v266_v0  ;;  %v455_v2 = vmul.f32 %v452_v53, %v3199_v61 }
 0x144   : > { %v3352_v41 = vadd.f32 %v445_v35, %v377_v8  ;;  %v907_v8 = vmul.f32 %v906_v52, %v3323_v17  ;;  %v339_v40 = vadd.f32 %v3310_v6, %v268_v28  ;;  %v463_v6 = vmul.f32 %v460_v18, %v3199_v61 }
 0x145   : > { %v371_v43 = vpop.permute.xlu1 %370  ;;  %v373_v11 = vpop.permute.xlu0 %372 }
 0x146   : > { %v378_v48 = vadd.f32 %v371_v43, %v298_v38  ;;  %v379_v49 = vadd.f32 %v373_v11, %v299_v39  ;;  %v461_v38 = vmul.f32 %v460_v18, %v3191_v56  ;;  %v926_v39 = vstv %s3363_s22  ;;  %s3618_s22 = sld [smem:[#allocation3 + $0x34]] }
 0x147   : > { %875 = vrot.lane.b32.xlu1 %v868_v45, %s2996_s29  ;;  %877 = vrot.lane.b32.xlu0 %v869_v46, %s2996_s29  ;;  %v274_v43 = vmul.f32 %v273_v16, %v3137_v19  ;;  %v275_v11 = vmul.f32 %v273_v16, %v3143_v23  ;;  %v468_v19 = vstv %s3382_s23  ;;  %s3628_s23 = sld [smem:[#allocation3 + $0x51]] }
 0x148   : > { %v3368_v59 = vadd.f32 %v446_v50, %v378_v48  ;;  %v3370_v62 = vadd.f32 %v447_v51, %v379_v49  ;;  %v908_v48 = vmul.f32 %v906_v52, %v3336_v30  ;;  %v909_v49 = vmul.f32 %v906_v52, %v3338_v31 }
 0x149   : > { %v389_v3 = vpop.permute.xlu1 %388  ;;  %v391_v4 = vpop.permute.xlu0 %390  ;;  %v462_v51 = vmul.f32 %v460_v18, %v3197_v60  ;;  %v357_v23 = vadd.f32 %v3317_v13, %v274_v43  ;;  %v358_v53 = vadd.f32 %v3319_v14, %v275_v11  ;;  %v276_v52 = vmul.f32 %v273_v16, %v3145_v24 }
 0x14a   : > { %v397_v12 = vadd.f32 %v389_v3, %v317_v54  ;;  %v398_v15 = vadd.f32 %v391_v4, %v318_v55  ;;  %v927_v3 = vmul.f32 %v926_v39, %v3323_v17  ;;  %v928_v4 = vmul.f32 %v926_v39, %v3336_v30 }
 0x14b   : > { %893 = vrot.lane.b32.xlu1 %v887_v7, %s2996_s29  ;;  %895 = vrot.lane.b32.xlu0 %v888_v9, %s2996_s29  ;;  %v946_v7 = vstv %s3394_s24  ;;  %v469_v13 = vmul.f32 %v468_v19, %v3191_v56  ;;  %v470_v14 = vmul.f32 %v468_v19, %v3197_v60  ;;  %v359_v24 = vadd.f32 %v3333_v27, %v276_v52  ;;  %s3638_s24 = sld [smem:[#allocation3 + $0x58]] }
 0x14c   : > { %v3386_v22 = vadd.f32 %v453_v57, %v397_v12  ;;  %v3388_v25 = vadd.f32 %v454_v58, %v398_v15  ;;  %v929_v18 = vmul.f32 %v926_v39, %v3338_v31  ;;  %v471_v56 = vmul.f32 %v468_v19, %v3199_v61 }
 0x14d   : > { %v393_v29 = vpop.permute.xlu1 %392  ;;  %v409_v32 = vpop.permute.xlu0 %408  ;;  %v948_v28 = vmul.f32 %v946_v7, %v3336_v30  ;;  %v3478_v19 = vstv %s2721_s19  ;;  %s2767_s19 = sld [smem:[#allocation3 + $0x59]] }
 0x14e   : > { %v399_v1 = vadd.f32 %v393_v29, %v319_v20  ;;  %v417_v35 = vadd.f32 %v409_v32, %v337_v21  ;;  %v947_v20 = vmul.f32 %v946_v7, %v3323_v17  ;;  %v949_v29 = vmul.f32 %v946_v7, %v3338_v31 }
 0x14f   : > { %897 = vrot.lane.b32.xlu1 %v889_v34, %s2996_s29  ;;  %913 = vrot.lane.b32.xlu0 %v907_v8, %s2996_s29  ;;  %v966_v32 = vstv %s2742_s25  ;;  %s3662_s25 = sld [smem:[#allocation3 + $0x75]] }
 0x150   : > { %v3403_v10 = vadd.f32 %v455_v2, %v399_v1  ;;  %v3405_v42 = vadd.f32 %v461_v38, %v417_v35  ;;  %v967_v8 = vmul.f32 %v966_v32, %v3323_v17  ;;  %v968_v1 = vmul.f32 %v966_v32, %v3336_v30 }
 0x151   : > { %v411_v45 = vpop.permute.xlu1 %410  ;;  %v413_v46 = vpop.permute.xlu0 %412  ;;  %v986_v35 = vstv %s2743_s26  ;;  %v969_v39 = vmul.f32 %v966_v32, %v3338_v31  ;;  %s3680_s26 = sld [smem:[#allocation3 + $0x7c]] }
 0x152   : > { %v418_v50 = vadd.f32 %v411_v45, %v338_v37  ;;  %v419_v5 = vadd.f32 %v413_v46, %v339_v40  ;;  %v987_v37 = vmul.f32 %v986_v35, %v3323_v17  ;;  %v988_v11 = vmul.f32 %v986_v35, %v3336_v30 }
 0x153   : > { %915 = vrot.lane.b32.xlu1 %v908_v48, %s2996_s29  ;;  %917 = vrot.lane.b32.xlu0 %v909_v49, %s2996_s29  ;;  %v989_v45 = vmul.f32 %v986_v35, %v3338_v31  ;;  %v1006_v46 = vstv %s2744_s27  ;;  %s2765_s27 = sld [smem:[#allocation3 + $0x11]] }
 0x154   : > { %v3418_v54 = vadd.f32 %v462_v51, %v418_v50  ;;  %v3420_v55 = vadd.f32 %v463_v6, %v419_v5  ;;  %v1007_v50 = vmul.f32 %v1006_v46, %v3323_v17  ;;  %v1008_v5 = vmul.f32 %v1006_v46, %v3336_v30  ;;  %v3474_v51 = vld [vmem:[#allocation2 + $0x19] sm:$0xff] }
 0x155   : > { %v429_v63 = vpop.permute.xlu1 %428  ;;  %v431_v0 = vpop.permute.xlu0 %430  ;;  %v1061_v6 = vstv %s2749_s28  ;;  %s2766_s28 = sld [smem:[#allocation3 + $0x35]] }
 0x156   : > { %v437_v9 = vadd.f32 %v429_v63, %v357_v23  ;;  %v438_v12 = vadd.f32 %v431_v0, %v358_v53  ;;  %v1009_v63 = vmul.f32 %v1006_v46, %v3338_v31  ;;  %v1062_v0 = vmul.f32 %v1061_v6, %v3474_v51 }
 0x157   : > { %933 = vrot.lane.b32.xlu1 %v927_v3, %s2996_s29  ;;  %935 = vrot.lane.b32.xlu0 %v928_v4, %s2996_s29  ;;  %v3485_v3 = vld [vmem:[#allocation2 + $0x21] sm:$0xff]  ;;  %v3487_v4 = vld [vmem:[#allocation2 + $0x29] sm:$0x3] }
 0x158   : > { %v3431_v15 = vadd.f32 %v469_v13, %v437_v9  ;;  %v3433_v57 = vadd.f32 %v470_v14, %v438_v12  ;;  %v640_v9 = vmul.f32 %v3478_v19, %v3245_v33 }
 0x159   : > { %v433_v58 = vpop.permute.xlu1 %432  ;;  %v484_v16 = vpop.permute.xlu0 %483 }
 0x15a   : > { %v439_v21 = vadd.f32 %v433_v58, %v359_v24  ;;  %v492_v23 = vadd.f32 %v484_v16, %v3352_v41  ;;  %v1063_v24 = vmul.f32 %v1061_v6, %v3485_v3  ;;  %v1064_v58 = vmul.f32 %v1061_v6, %v3487_v4 }
 0x15b   : > { %937 = vrot.lane.b32.xlu1 %v929_v18, %s2996_s29  ;;  %953 = vrot.lane.b32.xlu0 %v947_v20, %s2997_s9  ;;  %v1081_v18 = vstv %s2750_s18  ;;  %v641_v20 = vmul.f32 %v3478_v19, %v3252_v36  ;;  %s2768_s18 = sld [smem:[#allocation3 + $0x7d]] }
 0x15c   : > { %v3440_v60 = vadd.f32 %v471_v56, %v439_v21  ;;  %v3504_v21 = vstv %s2722_s21  ;;  %v1082_v32 = vmul.f32 %v1081_v18, %v3474_v51  ;;  %s2745_s21 = sld [smem:[#allocation3 + $0xc]] }
 0x15d   : > { %v486_v27 = vpop.permute.xlu1 %485  ;;  %v3442_v26 = vpop.permute.xlu0 %487 }
 0x15e   : > { %v493_v41 = vadd.f32 %v486_v27, %v3368_v59 }
 0x15f   : > { %955 = vrot.lane.b32.xlu1 %v948_v28, %s2997_s9  ;;  %957 = vrot.lane.b32.xlu0 %v949_v29, %s2997_s9 }
 0x161   : > { %v504_v34 = vpop.permute.xlu1 %503  ;;  %v506_v61 = vpop.permute.xlu0 %505 }
 0x162   : > { %v512_v59 = vadd.f32 %v504_v34, %v3386_v22  ;;  %v513_v56 = vadd.f32 %v506_v61, %v3388_v25  ;;  %v648_v22 = vmul.f32 %v3504_v21, %v3245_v33  ;;  %v3518_v25 = vstv %s2723_s3  ;;  %s3764_s3 = sld [smem:[#allocation3 + $0x30]] }
 0x163   : > { %973 = vrot.lane.b32.xlu1 %v967_v8, %s2997_s9  ;;  %975 = vrot.lane.b32.xlu0 %v968_v1, %s2997_s9  ;;  %v1083_v8 = vmul.f32 %v1081_v18, %v3485_v3  ;;  %v1101_v1 = vstv %s2751_s30  ;;  %s2773_s30 = sld [smem:[#allocation3 + $0x13]] }
 0x165   : > { %v3452_v2 = vpop.permute.xlu1 %507  ;;  %v3454_v38 = vpop.permute.xlu0 %523 }
 0x166   : > { %v532_v34 = vadd.f32 %v3454_v38, %v3405_v42 }
 0x167   : > { %977 = vrot.lane.b32.xlu1 %v969_v39, %s2997_s9  ;;  %993 = vrot.lane.b32.xlu0 %v987_v37, %s2997_s9  ;;  %v649_v37 = vmul.f32 %v3504_v21, %v3252_v36 }
 0x169   : > { %v3460_v40 = vpop.permute.xlu1 %525  ;;  %v3462_v43 = vpop.permute.xlu0 %527 }
 0x16a   : > { %v533_v42 = vadd.f32 %v3460_v40, %v3418_v54 }
 0x16b   : > { %995 = vrot.lane.b32.xlu1 %v988_v11, %s2997_s9  ;;  %997 = vrot.lane.b32.xlu0 %v989_v45, %s2997_s9 }
 0x16d   : > { %v3468_v48 = vpop.permute.xlu1 %543  ;;  %v3470_v49 = vpop.permute.xlu0 %545 }
 0x16e   : > { %v552_v54 = vadd.f32 %v3468_v48, %v3431_v15  ;;  %v553_v40 = vadd.f32 %v3470_v49, %v3433_v57 }
 0x16f   : > { %1013 = vrot.lane.b32.xlu1 %v1007_v50, %s2997_s9  ;;  %1015 = vrot.lane.b32.xlu0 %v1008_v5, %s2997_s9  ;;  %v1084_v50 = vmul.f32 %v1081_v18, %v3487_v4  ;;  %v1102_v5 = vmul.f32 %v1101_v1, %v3474_v51 }
 0x171   : > { %v3481_v53 = vpop.permute.xlu1 %547  ;;  %v564_v52 = vpop.permute.xlu0 %563 }
 0x172   : > { %v572_v7 = vadd.f32 %v564_v52, %v492_v23  ;;  %v656_v23 = vmul.f32 %v3518_v25, %v3245_v33 }
 0x173   : > { %1017 = vrot.lane.b32.xlu1 %v1009_v63, %s2997_s9  ;;  %1068 = vrot.lane.b32.xlu0 %v1062_v0, %s2996_s29  ;;  %v1103_v0 = vmul.f32 %v1101_v1, %v3485_v3 }
 0x174   : > { %v3494_v12 = vadd.f32 %v640_v9, %v572_v7  ;;  %v1104_v7 = vmul.f32 %v1101_v1, %v3487_v4 }
 0x175   : > { %v566_v13 = vpop.permute.xlu1 %565  ;;  %v3496_v14 = vpop.permute.xlu0 %567 }
 0x176   : > { %v573_v16 = vadd.f32 %v566_v13, %v493_v41  ;;  %v1121_v41 = vstv %s2752_s4  ;;  %v657_v13 = vmul.f32 %v3518_v25, %v3252_v36  ;;  %s3771_s4 = sld [smem:[#allocation3 + $0x37]] }
 0x177   : > { %1070 = vrot.lane.b32.xlu1 %v1063_v24, %s2996_s29  ;;  %1072 = vrot.lane.b32.xlu0 %v1064_v58, %s2996_s29  ;;  %v3546_v24 = vstv %s2724_s5  ;;  %v1124_v1 = vmul.f32 %v1121_v41, %v3487_v4  ;;  %s3779_s5 = sld [smem:[#allocation3 + $0x54]] }
 0x178   : > { %v3508_v27 = vadd.f32 %v641_v20, %v573_v16  ;;  %v1122_v20 = vmul.f32 %v1121_v41, %v3474_v51  ;;  %v665_v15 = vmul.f32 %v3546_v24, %v3252_v36 }
 0x179   : > { %v584_v28 = vpop.permute.xlu1 %583  ;;  %v586_v29 = vpop.permute.xlu0 %585 }
 0x17a   : > { %v592_v35 = vadd.f32 %v584_v28, %v512_v59  ;;  %v593_v39 = vadd.f32 %v586_v29, %v513_v56  ;;  %v1123_v59 = vmul.f32 %v1121_v41, %v3485_v3  ;;  %v1141_v56 = vstv %s2753_s6  ;;  %s3786_s6 = sld [smem:[#allocation3 + $0x5b]] }
 0x17b   : > { %1088 = vrot.lane.b32.xlu1 %v1082_v32, %s2996_s29  ;;  %1090 = vrot.lane.b32.xlu0 %v1083_v8, %s2996_s29  ;;  %v664_v32 = vmul.f32 %v3546_v24, %v3245_v33 }
 0x17c   : > { %v3522_v61 = vadd.f32 %v649_v37, %v593_v39  ;;  %v3524_v11 = vadd.f32 %v648_v22, %v592_v35  ;;  %v1142_v35 = vmul.f32 %v1141_v56, %v3474_v51  ;;  %v1143_v39 = vmul.f32 %v1141_v56, %v3485_v3 }
 0x17d   : > { %v3526_v45 = vpop.permute.xlu1 %587  ;;  %v604_v46 = vpop.permute.xlu0 %603  ;;  %v1144_v37 = vmul.f32 %v1141_v56, %v3487_v4  ;;  %v1161_v22 = vstv %s2754_s7  ;;  %s3811_s7 = sld [smem:[#allocation3 + $0x78]] }
 0x17e   : > { %v612_v6 = vadd.f32 %v604_v46, %v532_v34 }
 0x17f   : > { %1092 = vrot.lane.b32.xlu1 %v1084_v50, %s2996_s29  ;;  %1108 = vrot.lane.b32.xlu0 %v1102_v5, %s2996_s29  ;;  %v1162_v50 = vmul.f32 %v1161_v22, %v3474_v51  ;;  %v1163_v5 = vmul.f32 %v1161_v22, %v3485_v3 }
 0x180   : > { %v3536_v38 = vadd.f32 %v656_v23, %v612_v6  ;;  %v1181_v6 = vstv %s2755_s8  ;;  %s3824_s8 = sld [smem:[#allocation3 + $0x7f]] }
 0x181   : > { %v606_v52 = vpop.permute.xlu1 %605  ;;  %v3538_v63 = vpop.permute.xlu0 %607 }
 0x182   : > { %v613_v9 = vadd.f32 %v606_v52, %v533_v42  ;;  %v1164_v52 = vmul.f32 %v1161_v22, %v3487_v4 }
 0x183   : > { %1110 = vrot.lane.b32.xlu1 %v1103_v0, %s2996_s29  ;;  %1112 = vrot.lane.b32.xlu0 %v1104_v7, %s2996_s29  ;;  %v1182_v0 = vmul.f32 %v1181_v6, %v3474_v51  ;;  %v494_v7 = vadd.f32 %v3442_v26, %v3370_v62  ;;  %v1184_v62 = vmul.f32 %v1181_v6, %v3487_v4  ;;  %v1201_v26 = vstv %s2756_s12  ;;  %s2777_s12 = sld [smem:[#allocation3 + $0x14]] }
 0x184   : > { %v3552_v58 = vadd.f32 %v657_v13, %v613_v9  ;;  %v3596_v9 = vld [vmem:[#allocation2 + $0x12] sm:$0x3] }
 0x185   : > { %v624_v16 = vpop.permute.xlu1 %623  ;;  %v626_v18 = vpop.permute.xlu0 %625  ;;  %v642_v41 = vmul.f32 %v3596_v9, %v3478_v19  ;;  %v574_v13 = vadd.f32 %v3496_v14, %v494_v7  ;;  %v514_v14 = vadd.f32 %v3452_v2, %v3403_v10  ;;  %v3630_v2 = vld [vmem:[#allocation2 + $0x2a] sm:$0x3] }
 0x186   : > { %v632_v28 = vadd.f32 %v624_v16, %v552_v54  ;;  %v633_v29 = vadd.f32 %v626_v18, %v553_v40  ;;  %v1183_v16 = vmul.f32 %v1181_v6, %v3485_v3  ;;  %v834_v18 = vstv %s2733_s15  ;;  %v3641_v6 = vld [vmem:[#allocation2 + $0x22] sm:$0xff]  ;;  %s2778_s15 = sld [smem:[#allocation3 + $0x38]] }
 0x187   : > { %1128 = vrot.lane.b32.xlu1 %v1122_v20, %s2996_s29  ;;  %1130 = vrot.lane.b32.xlu0 %v1123_v59, %s2996_s29  ;;  %v645_v20 = vadd.f32 %v642_v41, %v574_v13  ;;  %v594_v10 = vadd.f32 %v3526_v45, %v514_v14 }
 0x188   : > { %v3562_v57 = vadd.f32 %v664_v32, %v632_v28  ;;  %v3564_v48 = vadd.f32 %v665_v15, %v633_v29  ;;  %v1202_v28 = vmul.f32 %v1201_v26, %v3474_v51  ;;  %v1203_v29 = vmul.f32 %v1201_v26, %v3485_v3  ;;  %v3620_v32 = vld [vmem:[#allocation2 + $0x1a] sm:$0xff] }
 0x189   : > { %v3566_v49 = vpop.permute.xlu1 %627  ;;  %v679_v8 = vpop.permute.xlu0 %678 }
 0x18a   : > { %v687_v19 = vadd.f32 %v679_v8, %v3494_v12  ;;  %v650_v12 = vmul.f32 %v3596_v9, %v3504_v21  ;;  %v1204_v21 = vmul.f32 %v1201_v26, %v3487_v4 }
 0x18b   : > { %1132 = vrot.lane.b32.xlu1 %v1124_v1, %s2996_s29  ;;  %1148 = vrot.lane.b32.xlu0 %v1142_v35, %s2997_s9  ;;  %v1256_v1 = vstv %s2761_s16  ;;  %v835_v35 = vmul.f32 %v834_v18, %v3323_v17  ;;  %s2779_s16 = sld [smem:[#allocation3 + $0x5c]] }
 0x18c   : > { %v1257_v45 = vmul.f32 %v1256_v1, %v3620_v32  ;;  %v653_v7 = vadd.f32 %v650_v12, %v594_v10  ;;  %v1259_v41 = vmul.f32 %v1256_v1, %v3630_v2  ;;  %v1296_v10 = vstv %s3638_s24  ;;  %s2758_s24 = sld [smem:[#allocation3 + $0x33]] }
 0x18d   : > { %v681_v33 = vpop.permute.xlu1 %680  ;;  %v3572_v36 = vpop.permute.xlu0 %700 }
 0x18e   : > { %v688_v8 = vadd.f32 %v681_v33, %v3508_v27  ;;  %v837_v27 = vmul.f32 %v834_v18, %v3338_v31  ;;  %v534_v33 = vadd.f32 %v3462_v43, %v3420_v55  ;;  %v708_v13 = vadd.f32 %v3572_v36, %v3522_v61 }
 0x18f   : > { %1150 = vrot.lane.b32.xlu1 %v1143_v39, %s2997_s9  ;;  %1152 = vrot.lane.b32.xlu0 %v1144_v37, %s2997_s9  ;;  %v689_v39 = vadd.f32 %v3271_v44, %v645_v20  ;;  %v842_v44 = vstv %s3607_s20  ;;  %v1258_v43 = vmul.f32 %v1256_v1, %v3641_v6  ;;  %v1276_v20 = vstv %s3618_s22  ;;  %s2780_s20 = sld [smem:[#allocation3 + $0x80]] }
 0x190   : > { %v844_v14 = vmul.f32 %v842_v44, %v3336_v30  ;;  %v614_v61 = vadd.f32 %v3538_v63, %v534_v33  ;;  %v1278_v12 = vmul.f32 %v1276_v20, %v3641_v6  ;;  %v858_v33 = vstv %s3662_s25  ;;  %s2757_s22 = sld [smem:[#allocation3 + $0xf]] }
 0x191   : > { %v3578_v34 = vpop.permute.xlu1 %698  ;;  %v3580_v46 = vpop.permute.xlu0 %718  ;;  %s2786_s25 = sld [smem:[#allocation3 + $0x3a]] }
 0x193   : > { %1168 = vrot.lane.b32.xlu1 %v1162_v50, %s2997_s9  ;;  %1170 = vrot.lane.b32.xlu0 %v1163_v5, %s2997_s9  ;;  %v836_v5 = vmul.f32 %v834_v18, %v3336_v30 }
 0x195   : > { %v3586_v23 = vpop.permute.xlu1 %720  ;;  %v3588_v42 = vpop.permute.xlu0 %722 }
 0x197   : > { %1172 = vrot.lane.b32.xlu1 %v1164_v52, %s2997_s9  ;;  %1188 = vrot.lane.b32.xlu0 %v1182_v0, %s2997_s9 }
 0x199   : > { %v3601_v54 = vpop.permute.xlu1 %738  ;;  %v3603_v40 = vpop.permute.xlu0 %740 }
 0x19b   : > { %1190 = vrot.lane.b32.xlu1 %v1183_v16, %s2997_s9  ;;  %1192 = vrot.lane.b32.xlu0 %v1184_v62, %s2997_s9  ;;  %v707_v16 = vadd.f32 %v3578_v34, %v3524_v11  ;;  %v658_v11 = vmul.f32 %v3596_v9, %v3518_v25  ;;  %v1277_v25 = vmul.f32 %v1276_v20, %v3620_v32 }
 0x19d   : > { %v3614_v59 = vpop.permute.xlu1 %742  ;;  %v759_v56 = vpop.permute.xlu0 %758 }
 0x19e   : > { %v767_v15 = vadd.f32 %v759_v56, %v687_v19  ;;  %v843_v19 = vmul.f32 %v842_v44, %v3323_v17  ;;  %v850_v56 = vstv %s3628_s23  ;;  %s2785_s23 = sld [smem:[#allocation3 + $0x16]] }
 0x19f   : > { %1208 = vrot.lane.b32.xlu1 %v1202_v28, %s2997_s9  ;;  %1210 = vrot.lane.b32.xlu0 %v1203_v29, %s2997_s9  ;;  %v727_v28 = vadd.f32 %v3580_v46, %v3536_v38  ;;  %v709_v29 = vadd.f32 %v3277_v47, %v653_v7  ;;  %v851_v47 = vmul.f32 %v850_v56, %v3323_v17 }
 0x1a0   : > { %v3634_v37 = vadd.f32 %v835_v35, %v767_v15  ;;  %v554_v46 = vadd.f32 %v3481_v53, %v3440_v60  ;;  %v852_v60 = vmul.f32 %v850_v56, %v3336_v30  ;;  %v853_v53 = vmul.f32 %v850_v56, %v3338_v31 }
 0x1a1   : > { %v761_v22 = vpop.permute.xlu1 %760  ;;  %v763_v50 = vpop.permute.xlu0 %762 }
 0x1a2   : > { %v768_v52 = vadd.f32 %v761_v22, %v688_v8  ;;  %v769_v0 = vadd.f32 %v763_v50, %v689_v39  ;;  %v845_v8 = vmul.f32 %v842_v44, %v3338_v31  ;;  %v661_v39 = vadd.f32 %v658_v11, %v614_v61 }
 0x1a3   : > { %1212 = vrot.lane.b32.xlu1 %v1204_v21, %s2997_s9  ;;  %1263 = vrot.lane.b32.xlu0 %v1257_v45, %s2996_s29  ;;  %v1279_v50 = vmul.f32 %v1276_v20, %v3630_v2  ;;  %v728_v21 = vadd.f32 %v3586_v23, %v3552_v58  ;;  %v1297_v44 = vmul.f32 %v1296_v10, %v3620_v32 }
 0x1a4   : > { %v3654_v62 = vadd.f32 %v836_v5, %v768_v52  ;;  %v3656_v26 = vadd.f32 %v837_v27, %v769_v0  ;;  %v729_v45 = vadd.f32 %v3588_v42, %v661_v39  ;;  %v634_v7 = vadd.f32 %v3566_v49, %v554_v46 }
 0x1a5   : > { %v779_v18 = vpop.permute.xlu1 %778  ;;  %v781_v55 = vpop.permute.xlu0 %780  ;;  %v666_v58 = vmul.f32 %v3596_v9, %v3546_v24  ;;  %v859_v20 = vmul.f32 %v858_v33, %v3323_v17  ;;  %v860_v11 = vmul.f32 %v858_v33, %v3336_v30  ;;  %v861_v30 = vmul.f32 %v858_v33, %v3338_v31 }
 0x1a6   : > { %v787_v36 = vadd.f32 %v779_v18, %v707_v16  ;;  %v788_v34 = vadd.f32 %v781_v55, %v708_v13  ;;  %v747_v13 = vadd.f32 %v3601_v54, %v3562_v57  ;;  %v748_v16 = vadd.f32 %v3603_v40, %v3564_v48 }
 0x1a7   : > { %1265 = vrot.lane.b32.xlu1 %v1258_v43, %s2996_s29  ;;  %1267 = vrot.lane.b32.xlu0 %v1259_v41, %s2996_s29  ;;  %v1299_v41 = vmul.f32 %v1296_v10, %v3630_v2  ;;  %v1298_v55 = vmul.f32 %v1296_v10, %v3641_v6  ;;  %v1316_v43 = vstv %s3680_s26  ;;  %v1356_v39 = vstv %s2766_s28  ;;  %s2759_s26 = sld [smem:[#allocation3 + $0x57]] }
 0x1a8   : > { %v3673_v15 = vadd.f32 %v843_v19, %v787_v36  ;;  %v3675_v1 = vadd.f32 %v844_v14, %v788_v34  ;;  %v669_v19 = vadd.f32 %v666_v58, %v634_v7  ;;  %v1317_v34 = vmul.f32 %v1316_v43, %v3620_v32  ;;  %s2760_s28 = sld [smem:[#allocation3 + $0x7b]] }
 0x1a9   : > { %v783_v63 = vpop.permute.xlu1 %782  ;;  %v799_v35 = vpop.permute.xlu0 %798  ;;  %v1318_v17 = vmul.f32 %v1316_v43, %v3641_v6  ;;  %v1358_v46 = vmul.f32 %v1356_v39, %v3641_v6  ;;  %v1396_v7 = vstv %s2768_s18  ;;  %v1029_v58 = vstv %s2745_s21  ;;  %s2789_s18 = sld [smem:[#allocation3 + $0x17]] }
 0x1aa   : > { %v789_v22 = vadd.f32 %v783_v63, %v709_v29  ;;  %v807_v38 = vadd.f32 %v799_v35, %v727_v28  ;;  %v749_v57 = vadd.f32 %v3614_v59, %v669_v19  ;;  %v1336_v28 = vstv %s2765_s27  ;;  %s2787_s27 = sld [smem:[#allocation3 + $0x5e]] }
 0x1ab   : > { %1283 = vrot.lane.b32.xlu1 %v1277_v25, %s2996_s29  ;;  %1285 = vrot.lane.b32.xlu0 %v1278_v12, %s2996_s29  ;;  %v1319_v59 = vmul.f32 %v1316_v43, %v3630_v2  ;;  %v1337_v25 = vmul.f32 %v1336_v28, %v3620_v32  ;;  %v1339_v12 = vmul.f32 %v1336_v28, %v3630_v2  ;;  %s2790_s21 = sld [smem:[#allocation3 + $0x3b]] }
 0x1ac   : > { %v3692_v5 = vadd.f32 %v845_v8, %v789_v22  ;;  %v3694_v52 = vadd.f32 %v851_v47, %v807_v38  ;;  %v1338_v8 = vmul.f32 %v1336_v28, %v3641_v6  ;;  %v1357_v47 = vmul.f32 %v1356_v39, %v3620_v32 }
 0x1ad   : > { %v801_v0 = vpop.permute.xlu1 %800  ;;  %v803_v27 = vpop.permute.xlu0 %802  ;;  %v1030_v43 = vmul.f32 %v1029_v58, %v3474_v51 }
 0x1ae   : > { %v808_v23 = vadd.f32 %v801_v0, %v728_v21  ;;  %v809_v42 = vadd.f32 %v803_v27, %v729_v45  ;;  %v1359_v21 = vmul.f32 %v1356_v39, %v3630_v2  ;;  %v1471_v39 = vstv %s3771_s4  ;;  %s2769_s4 = sld [smem:[#allocation3 + $0x12]] }
 0x1af   : > { %1287 = vrot.lane.b32.xlu1 %v1279_v50, %s2996_s29  ;;  %1303 = vrot.lane.b32.xlu0 %v1297_v44, %s2996_s29  ;;  %v1376_v50 = vstv %s2767_s19  ;;  %s2788_s19 = sld [smem:[#allocation3 + $0x82]] }
 0x1b0   : > { %v3710_v18 = vadd.f32 %v852_v60, %v808_v23  ;;  %v3712_v49 = vadd.f32 %v853_v53, %v809_v42  ;;  %v1377_v27 = vmul.f32 %v1376_v50, %v3620_v32  ;;  %v1379_v44 = vmul.f32 %v1376_v50, %v3630_v2 }
 0x1b1   : > { %v819_v24 = vpop.permute.xlu1 %818  ;;  %v821_v9 = vpop.permute.xlu0 %820  ;;  %v1378_v33 = vmul.f32 %v1376_v50, %v3641_v6 }
 0x1b2   : > { %v827_v14 = vadd.f32 %v819_v24, %v747_v13  ;;  %v828_v61 = vadd.f32 %v821_v9, %v748_v16  ;;  %v1397_v13 = vmul.f32 %v1396_v7, %v3620_v32  ;;  %v1398_v16 = vmul.f32 %v1396_v7, %v3641_v6  ;;  %v3773_v24 = vld [vmem:[#allocation2 + $0x30] sm:$0xff] }
 0x1b3   : > { %1305 = vrot.lane.b32.xlu1 %v1298_v55, %s2996_s29  ;;  %1307 = vrot.lane.b32.xlu0 %v1299_v41, %s2996_s29  ;;  %v1451_v55 = vstv %s2773_s30  ;;  %s2791_s30 = sld [smem:[#allocation3 + $0x5f]] }
 0x1b4   : > { %v3721_v48 = vadd.f32 %v859_v20, %v827_v14  ;;  %v3723_v54 = vadd.f32 %v860_v11, %v828_v61 }
 0x1b5   : > { %v823_v40 = vpop.permute.xlu1 %822  ;;  %v874_v36 = vpop.permute.xlu0 %873 }
 0x1b6   : > { %v829_v56 = vadd.f32 %v823_v40, %v749_v57  ;;  %v882_v23 = vadd.f32 %v874_v36, %v3634_v37  ;;  %v1399_v37 = vmul.f32 %v1396_v7, %v3630_v2  ;;  %v1452_v57 = vmul.f32 %v1451_v55, %v3773_v24  ;;  %v3788_v40 = vld [vmem:[#allocation2 + $0x38] sm:$0xff]  ;;  %v3790_v36 = vld [vmem:[#allocation2 + $0x40] sm:$0x3] }
 0x1b7   : > { %1323 = vrot.lane.b32.xlu1 %v1317_v34, %s2996_s29  ;;  %1325 = vrot.lane.b32.xlu0 %v1318_v17, %s2996_s29  ;;  %v1472_v7 = vmul.f32 %v1471_v39, %v3773_v24 }
 0x1b8   : > { %v3731_v29 = vadd.f32 %v861_v30, %v829_v56  ;;  %v1031_v56 = vmul.f32 %v1029_v58, %v3485_v3 }
 0x1b9   : > { %v876_v63 = vpop.permute.xlu1 %875  ;;  %v878_v35 = vpop.permute.xlu0 %877 }
 0x1ba   : > { %v883_v20 = vadd.f32 %v876_v63, %v3654_v62  ;;  %v884_v19 = vadd.f32 %v878_v35, %v3656_v26  ;;  %v1032_v62 = vmul.f32 %v1029_v58, %v3487_v4  ;;  %v1037_v26 = vstv %s3764_s3  ;;  %s2792_s3 = sld [smem:[#allocation3 + $0x83]] }
 0x1bb   : > { %1327 = vrot.lane.b32.xlu1 %v1319_v59, %s2996_s29  ;;  %1343 = vrot.lane.b32.xlu0 %v1337_v25, %s2997_s9  ;;  %v1038_v50 = vmul.f32 %v1037_v26, %v3474_v51  ;;  %v1473_v58 = vmul.f32 %v1471_v39, %v3788_v40 }
 0x1bd   : > { %v894_v31 = vpop.permute.xlu1 %893  ;;  %v896_v10 = vpop.permute.xlu0 %895 }
 0x1be   : > { %v902_v28 = vadd.f32 %v894_v31, %v3673_v15  ;;  %v903_v30 = vadd.f32 %v896_v10, %v3675_v1  ;;  %v1039_v15 = vmul.f32 %v1037_v26, %v3485_v3  ;;  %v1045_v1 = vstv %s3779_s5  ;;  %s2797_s5 = sld [smem:[#allocation3 + $0x19]] }
 0x1bf   : > { %1345 = vrot.lane.b32.xlu1 %v1338_v8, %s2997_s9  ;;  %1347 = vrot.lane.b32.xlu0 %v1339_v12, %s2997_s9  ;;  %v1453_v12 = vmul.f32 %v1451_v55, %v3788_v40  ;;  %v1454_v8 = vmul.f32 %v1451_v55, %v3790_v36 }
 0x1c1   : > { %v3740_v22 = vpop.permute.xlu1 %897  ;;  %v3742_v38 = vpop.permute.xlu0 %913 }
 0x1c2   : > { %v904_v31 = vadd.f32 %v3740_v22, %v3692_v5  ;;  %v922_v10 = vadd.f32 %v3742_v38, %v3694_v52  ;;  %v1040_v5 = vmul.f32 %v1037_v26, %v3487_v4  ;;  %v1046_v22 = vmul.f32 %v1045_v1, %v3474_v51 }
 0x1c3   : > { %1363 = vrot.lane.b32.xlu1 %v1357_v47, %s2997_s9  ;;  %1365 = vrot.lane.b32.xlu0 %v1358_v46, %s2997_s9 }
 0x1c5   : > { %v3749_v45 = vpop.permute.xlu1 %915  ;;  %v3751_v0 = vpop.permute.xlu0 %917 }
 0x1c6   : > { %v923_v52 = vadd.f32 %v3749_v45, %v3710_v18  ;;  %v924_v38 = vadd.f32 %v3751_v0, %v3712_v49  ;;  %v1048_v18 = vmul.f32 %v1045_v1, %v3487_v4  ;;  %v1053_v49 = vstv %s3811_s7  ;;  %s4051_s7 = sld [smem:[#allocation3 + $0x3d]] }
 0x1c7   : > { %1367 = vrot.lane.b32.xlu1 %v1359_v21, %s2997_s9  ;;  %1383 = vrot.lane.b32.xlu0 %v1377_v27, %s2997_s9 }
 0x1c9   : > { %v3757_v60 = vpop.permute.xlu1 %933  ;;  %v3759_v53 = vpop.permute.xlu0 %935 }
 0x1ca   : > { %v942_v45 = vadd.f32 %v3757_v60, %v3721_v48  ;;  %v943_v0 = vadd.f32 %v3759_v53, %v3723_v54  ;;  %v1055_v48 = vmul.f32 %v1053_v49, %v3485_v3 }
 0x1cb   : > { %1385 = vrot.lane.b32.xlu1 %v1378_v33, %s2997_s9  ;;  %1387 = vrot.lane.b32.xlu0 %v1379_v44, %s2997_s9 }
 0x1cd   : > { %v3767_v42 = vpop.permute.xlu1 %937  ;;  %v954_v41 = vpop.permute.xlu0 %953 }
 0x1ce   : > { %v962_v9 = vadd.f32 %v954_v41, %v882_v23  ;;  %v1491_v23 = vstv %s3786_s6  ;;  %v944_v54 = vadd.f32 %v3767_v42, %v3731_v29  ;;  %s4039_s6 = sld [smem:[#allocation3 + $0x36]] }
 0x1cf   : > { %1403 = vrot.lane.b32.xlu1 %v1397_v13, %s2997_s9  ;;  %1405 = vrot.lane.b32.xlu0 %v1398_v16, %s2997_s9  ;;  %v1494_v26 = vmul.f32 %v1491_v23, %v3790_v36 }
 0x1d0   : > { %v3783_v14 = vadd.f32 %v1030_v43, %v962_v9 }
 0x1d1   : > { %v956_v61 = vpop.permute.xlu1 %955  ;;  %v958_v11 = vpop.permute.xlu0 %957 }
 0x1d2   : > { %v963_v34 = vadd.f32 %v956_v61, %v883_v20  ;;  %v964_v17 = vadd.f32 %v958_v11, %v884_v19  ;;  %v1492_v20 = vmul.f32 %v1491_v23, %v3773_v24  ;;  %v1047_v11 = vmul.f32 %v1045_v1, %v3485_v3 }
 0x1d3   : > { %1407 = vrot.lane.b32.xlu1 %v1399_v37, %s2997_s9  ;;  %1458 = vrot.lane.b32.xlu0 %v1452_v57, %s2996_s29  ;;  %v1474_v37 = vmul.f32 %v1471_v39, %v3790_v36  ;;  %v1056_v3 = vmul.f32 %v1053_v49, %v3487_v4 }
 0x1d4   : > { %v3799_v59 = vadd.f32 %v1031_v56, %v963_v34  ;;  %v3801_v63 = vadd.f32 %v1032_v62, %v964_v17  ;;  %v1493_v62 = vmul.f32 %v1491_v23, %v3788_v40 }
 0x1d5   : > { %v974_v35 = vpop.permute.xlu1 %973  ;;  %v976_v25 = vpop.permute.xlu0 %975 }
 0x1d6   : > { %v982_v47 = vadd.f32 %v974_v35, %v902_v28  ;;  %v983_v46 = vadd.f32 %v976_v25, %v903_v30  ;;  %v1511_v28 = vstv %s3824_s8  ;;  %v1054_v25 = vmul.f32 %v1053_v49, %v3474_v51  ;;  %s4059_s8 = sld [smem:[#allocation3 + $0x5a]] }
 0x1d7   : > { %1460 = vrot.lane.b32.xlu1 %v1453_v12, %s2996_s29  ;;  %1462 = vrot.lane.b32.xlu0 %v1454_v8, %s2996_s29  ;;  %v1512_v39 = vmul.f32 %v1511_v28, %v3773_v24 }
 0x1d8   : > { %v3817_v21 = vadd.f32 %v1038_v50, %v982_v47  ;;  %v3819_v27 = vadd.f32 %v1039_v15, %v983_v46  ;;  %v1513_v47 = vmul.f32 %v1511_v28, %v3788_v40  ;;  %v1531_v46 = vstv %s2777_s12  ;;  %s4071_s12 = sld [smem:[#allocation3 + $0x61]] }
 0x1d9   : > { %v978_v44 = vpop.permute.xlu1 %977  ;;  %v994_v33 = vpop.permute.xlu0 %993  ;;  %v1514_v15 = vmul.f32 %v1511_v28, %v3790_v36  ;;  %v1532_v1 = vmul.f32 %v1531_v46, %v3773_v24 }
 0x1da   : > { %v984_v41 = vadd.f32 %v978_v44, %v904_v31  ;;  %v1002_v13 = vadd.f32 %v994_v33, %v922_v10  ;;  %v1533_v10 = vmul.f32 %v1531_v46, %v3788_v40  ;;  %v1534_v44 = vmul.f32 %v1531_v46, %v3790_v36 }
 0x1db   : > { %1478 = vrot.lane.b32.xlu1 %v1472_v7, %s2996_s29  ;;  %1480 = vrot.lane.b32.xlu0 %v1473_v58, %s2996_s29  ;;  %v1551_v33 = vstv %s2778_s15  ;;  %s4098_s15 = sld [smem:[#allocation3 + $0x7e]] }
 0x1dc   : > { %v3834_v16 = vadd.f32 %v1040_v5, %v984_v41  ;;  %v3836_v9 = vadd.f32 %v1046_v22, %v1002_v13  ;;  %v1552_v23 = vmul.f32 %v1551_v33, %v3773_v24  ;;  %v1553_v41 = vmul.f32 %v1551_v33, %v3788_v40 }
 0x1dd   : > { %v996_v55 = vpop.permute.xlu1 %995  ;;  %v998_v43 = vpop.permute.xlu0 %997  ;;  %v1571_v13 = vstv %s2779_s16  ;;  %s4114_s16 = sld [smem:[#allocation3 + $0x85]] }
 0x1de   : > { %v1003_v19 = vadd.f32 %v996_v55, %v923_v52  ;;  %v1004_v61 = vadd.f32 %v998_v43, %v924_v38  ;;  %v1554_v52 = vmul.f32 %v1551_v33, %v3790_v36  ;;  %v1572_v38 = vmul.f32 %v1571_v13, %v3773_v24 }
 0x1df   : > { %1482 = vrot.lane.b32.xlu1 %v1474_v37, %s2996_s29  ;;  %1498 = vrot.lane.b32.xlu0 %v1492_v20, %s2996_s29  ;;  %v1573_v37 = vmul.f32 %v1571_v13, %v3788_v40  ;;  %v1574_v20 = vmul.f32 %v1571_v13, %v3790_v36 }
 0x1e0   : > { %v3849_v57 = vadd.f32 %v1047_v11, %v1003_v19  ;;  %v3851_v34 = vadd.f32 %v1048_v18, %v1004_v61  ;;  %v1591_v19 = vstv %s2780_s20  ;;  %v3907_v61 = vstv %s2757_s22  ;;  %s2801_s20 = sld [smem:[#allocation3 + $0x1a]] }
 0x1e1   : > { %v1014_v17 = vpop.permute.xlu1 %1013  ;;  %v1016_v56 = vpop.permute.xlu0 %1015  ;;  %s2802_s22 = sld [smem:[#allocation3 + $0x3e]] }
 0x1e2   : > { %v1022_v30 = vadd.f32 %v1014_v17, %v942_v45  ;;  %v1023_v35 = vadd.f32 %v1016_v56, %v943_v0  ;;  %v1592_v45 = vmul.f32 %v1591_v19, %v3773_v24  ;;  %v1593_v0 = vmul.f32 %v1591_v19, %v3788_v40  ;;  %v3914_v17 = vld [vmem:[#allocation2 + $0x31] sm:$0xff] }
 0x1e3   : > { %1500 = vrot.lane.b32.xlu1 %v1493_v62, %s2996_s29  ;;  %1502 = vrot.lane.b32.xlu0 %v1494_v26, %s2996_s29  ;;  %v1646_v62 = vstv %s2785_s23  ;;  %v1225_v26 = vmul.f32 %v3907_v61, %v3620_v32  ;;  %s2803_s23 = sld [smem:[#allocation3 + $0x62]] }
 0x1e4   : > { %v3862_v60 = vadd.f32 %v1054_v25, %v1022_v30  ;;  %v3864_v53 = vadd.f32 %v1055_v48, %v1023_v35  ;;  %v1594_v25 = vmul.f32 %v1591_v19, %v3790_v36  ;;  %v1647_v48 = vmul.f32 %v1646_v62, %v3914_v17 }
 0x1e5   : > { %v1018_v12 = vpop.permute.xlu1 %1017  ;;  %v1069_v8 = vpop.permute.xlu0 %1068  ;;  %v1686_v19 = vstv %s2787_s27  ;;  %s4198_s27 = sld [smem:[#allocation3 + $0x39]] }
 0x1e6   : > { %v1024_v51 = vadd.f32 %v1018_v12, %v944_v54  ;;  %v1077_v11 = vadd.f32 %v1069_v8, %v3783_v14  ;;  %v3927_v54 = vld [vmem:[#allocation2 + $0x39] sm:$0xff]  ;;  %v3929_v12 = vld [vmem:[#allocation2 + $0x41] sm:$0x3] }
 0x1e7   : > { %1518 = vrot.lane.b32.xlu1 %v1512_v39, %s2996_s29  ;;  %1520 = vrot.lane.b32.xlu0 %v1513_v47, %s2996_s29  ;;  %v1226_v39 = vmul.f32 %v3907_v61, %v3641_v6 }
 0x1e8   : > { %v3871_v29 = vadd.f32 %v1056_v3, %v1024_v51 }
 0x1e9   : > { %v1071_v42 = vpop.permute.xlu1 %1070  ;;  %v3873_v50 = vpop.permute.xlu0 %1072 }
 0x1ea   : > { %v1078_v14 = vadd.f32 %v1071_v42, %v3799_v59  ;;  %v3935_v59 = vstv %s2758_s24  ;;  %s2804_s24 = sld [smem:[#allocation3 + $0x86]] }
 0x1eb   : > { %1522 = vrot.lane.b32.xlu1 %v1514_v15, %s2996_s29  ;;  %1538 = vrot.lane.b32.xlu0 %v1532_v1, %s2997_s9  ;;  %v1648_v15 = vmul.f32 %v1646_v62, %v3927_v54  ;;  %v1649_v1 = vmul.f32 %v1646_v62, %v3929_v12 }
 0x1ed   : > { %v1089_v31 = vpop.permute.xlu1 %1088  ;;  %v1091_v4 = vpop.permute.xlu0 %1090 }
 0x1ee   : > { %v1097_v47 = vadd.f32 %v1089_v31, %v3817_v21  ;;  %v1098_v51 = vadd.f32 %v1091_v4, %v3819_v27  ;;  %v3949_v21 = vstv %s2759_s26  ;;  %s2809_s26 = sld [smem:[#allocation3 + $0x1c]] }
 0x1ef   : > { %1540 = vrot.lane.b32.xlu1 %v1533_v10, %s2997_s9  ;;  %1542 = vrot.lane.b32.xlu0 %v1534_v44, %s2997_s9  ;;  %v1666_v10 = vstv %s2786_s25  ;;  %s2781_s25 = sld [smem:[#allocation3 + $0x15]] }
 0x1f1   : > { %v3883_v7 = vpop.permute.xlu1 %1092  ;;  %v3885_v58 = vpop.permute.xlu0 %1108 }
 0x1f2   : > { %v1117_v27 = vadd.f32 %v3885_v58, %v3836_v9 }
 0x1f3   : > { %1558 = vrot.lane.b32.xlu1 %v1552_v23, %s2997_s9  ;;  %1560 = vrot.lane.b32.xlu0 %v1553_v41, %s2997_s9  ;;  %v1233_v23 = vmul.f32 %v3935_v59, %v3620_v32  ;;  %v1234_v41 = vmul.f32 %v3935_v59, %v3641_v6 }
 0x1f5   : > { %v3891_v5 = vpop.permute.xlu1 %1110  ;;  %v3893_v22 = vpop.permute.xlu0 %1112 }
 0x1f6   : > { %v1118_v9 = vadd.f32 %v3891_v5, %v3849_v57 }
 0x1f7   : > { %1562 = vrot.lane.b32.xlu1 %v1554_v52, %s2997_s9  ;;  %1578 = vrot.lane.b32.xlu0 %v1572_v38, %s2997_s9  ;;  %v1667_v38 = vmul.f32 %v1666_v10, %v3914_v17 }
 0x1f9   : > { %v3899_v55 = vpop.permute.xlu1 %1128  ;;  %v3901_v43 = vpop.permute.xlu0 %1130 }
 0x1fa   : > { %v1137_v57 = vadd.f32 %v3899_v55, %v3862_v60  ;;  %v1138_v5 = vadd.f32 %v3901_v43, %v3864_v53 }
 0x1fb   : > { %1580 = vrot.lane.b32.xlu1 %v1573_v37, %s2997_s9  ;;  %1582 = vrot.lane.b32.xlu0 %v1574_v20, %s2997_s9  ;;  %v1668_v37 = vmul.f32 %v1666_v10, %v3927_v54 }
 0x1fd   : > { %v3910_v18 = vpop.permute.xlu1 %1132  ;;  %v1149_v49 = vpop.permute.xlu0 %1148 }
 0x1fe   : > { %v1157_v56 = vadd.f32 %v1149_v49, %v1077_v11  ;;  %v1241_v11 = vmul.f32 %v3949_v21, %v3620_v32 }
 0x1ff   : > { %1598 = vrot.lane.b32.xlu1 %v1592_v45, %s2997_s9  ;;  %1600 = vrot.lane.b32.xlu0 %v1593_v0, %s2997_s9  ;;  %v1669_v0 = vmul.f32 %v1666_v10, %v3929_v12 }
 0x200   : > { %v3921_v28 = vadd.f32 %v1225_v26, %v1157_v56  ;;  %v1687_v56 = vmul.f32 %v1686_v19, %v3914_v17  ;;  %v1242_v26 = vmul.f32 %v3949_v21, %v3641_v6 }
 0x201   : > { %v1151_v30 = vpop.permute.xlu1 %1150  ;;  %v3923_v35 = vpop.permute.xlu0 %1152 }
 0x202   : > { %v1158_v8 = vadd.f32 %v1151_v30, %v1078_v14  ;;  %v3977_v14 = vstv %s2760_s28  ;;  %s4205_s28 = sld [smem:[#allocation3 + $0x40]] }
 0x203   : > { %1602 = vrot.lane.b32.xlu1 %v1594_v25, %s2997_s9  ;;  %1653 = vrot.lane.b32.xlu0 %v1647_v48, %s2996_s29  ;;  %v1250_v60 = vmul.f32 %v3977_v14, %v3641_v6 }
 0x204   : > { %v3939_v46 = vadd.f32 %v1226_v39, %v1158_v8  ;;  %v1688_v8 = vmul.f32 %v1686_v19, %v3927_v54  ;;  %v1689_v39 = vmul.f32 %v1686_v19, %v3929_v12 }
 0x205   : > { %v1169_v3 = vpop.permute.xlu1 %1168  ;;  %v1171_v42 = vpop.permute.xlu0 %1170 }
 0x206   : > { %v1177_v44 = vadd.f32 %v1169_v3, %v1097_v47  ;;  %v1178_v33 = vadd.f32 %v1171_v42, %v1098_v51  ;;  %v1706_v47 = vstv %s2788_s19  ;;  %v1249_v42 = vmul.f32 %v3977_v14, %v3620_v32  ;;  %s4213_s19 = sld [smem:[#allocation3 + $0x5d]] }
 0x207   : > { %1655 = vrot.lane.b32.xlu1 %v1648_v15, %s2996_s29  ;;  %1657 = vrot.lane.b32.xlu0 %v1649_v1, %s2996_s29  ;;  %v1707_v1 = vmul.f32 %v1706_v47, %v3914_v17  ;;  %v1708_v10 = vmul.f32 %v1706_v47, %v3927_v54 }
 0x208   : > { %v3953_v31 = vadd.f32 %v1233_v23, %v1177_v44  ;;  %v3955_v4 = vadd.f32 %v1234_v41, %v1178_v33  ;;  %v1726_v44 = vstv %s2789_s18  ;;  %v1709_v33 = vmul.f32 %v1706_v47, %v3929_v12  ;;  %s4220_s18 = sld [smem:[#allocation3 + $0x64]] }
 0x209   : > { %v3957_v13 = vpop.permute.xlu1 %1172  ;;  %v1189_v52 = vpop.permute.xlu0 %1188  ;;  %v1727_v23 = vmul.f32 %v1726_v44, %v3914_v17  ;;  %v1227_v47 = vmul.f32 %v3907_v61, %v3630_v2 }
 0x20a   : > { %v1197_v20 = vadd.f32 %v1189_v52, %v1117_v27  ;;  %v1728_v52 = vmul.f32 %v1726_v44, %v3927_v54 }
 0x20b   : > { %1673 = vrot.lane.b32.xlu1 %v1667_v38, %s2996_s29  ;;  %1675 = vrot.lane.b32.xlu0 %v1668_v37, %s2996_s29  ;;  %v1729_v38 = vmul.f32 %v1726_v44, %v3929_v12  ;;  %v1746_v37 = vstv %s2790_s21  ;;  %v1841_v44 = vstv %s2797_s5  ;;  %s4245_s21 = sld [smem:[#allocation3 + $0x81]] }
 0x20c   : > { %v3967_v58 = vadd.f32 %v1241_v11, %v1197_v20  ;;  %v1747_v11 = vmul.f32 %v1746_v37, %v3914_v17  ;;  %s2815_s5 = sld [smem:[#allocation3 + $0x65]] }
 0x20d   : > { %v1191_v49 = vpop.permute.xlu1 %1190  ;;  %v3969_v45 = vpop.permute.xlu0 %1192 }
 0x20e   : > { %v1198_v62 = vadd.f32 %v1191_v49, %v1118_v9  ;;  %v1748_v9 = vmul.f32 %v1746_v37, %v3927_v54  ;;  %v1766_v49 = vstv %s2791_s30  ;;  %s4258_s30 = sld [smem:[#allocation3 + $0x88]] }
 0x20f   : > { %1677 = vrot.lane.b32.xlu1 %v1669_v0, %s2996_s29  ;;  %1693 = vrot.lane.b32.xlu0 %v1687_v56, %s2996_s29 }
 0x210   : > { %v3983_v30 = vadd.f32 %v1242_v26, %v1198_v62  ;;  %v1749_v62 = vmul.f32 %v1746_v37, %v3929_v12  ;;  %v1767_v26 = vmul.f32 %v1766_v49, %v3914_v17 }
 0x211   : > { %v1209_v25 = vpop.permute.xlu1 %1208  ;;  %v1211_v48 = vpop.permute.xlu0 %1210 }
 0x212   : > { %v1217_v51 = vadd.f32 %v1209_v25, %v1137_v57  ;;  %v1218_v3 = vadd.f32 %v1211_v48, %v1138_v5  ;;  %v1079_v57 = vadd.f32 %v3873_v50, %v3801_v63  ;;  %v1768_v48 = vmul.f32 %v1766_v49, %v3927_v54 }
 0x213   : > { %1695 = vrot.lane.b32.xlu1 %v1688_v8, %s2996_s29  ;;  %1697 = vrot.lane.b32.xlu0 %v1689_v39, %s2996_s29  ;;  %v1769_v8 = vmul.f32 %v1766_v49, %v3929_v12  ;;  %v1419_v63 = vstv %s2769_s4  ;;  %s2814_s4 = sld [smem:[#allocation3 + $0x41]] }
 0x214   : > { %v3993_v53 = vadd.f32 %v1249_v42, %v1217_v51  ;;  %v3995_v55 = vadd.f32 %v1250_v60, %v1218_v3  ;;  %v1159_v39 = vadd.f32 %v3923_v35, %v1079_v57  ;;  %v1786_v51 = vstv %s2792_s3  ;;  %v4053_v35 = vld [vmem:[#allocation2 + $0x32] sm:$0xff]  ;;  %s2813_s3 = sld [smem:[#allocation3 + $0x1d]] }
 0x215   : > { %v3997_v43 = vpop.permute.xlu1 %1212  ;;  %v1264_v15 = vpop.permute.xlu0 %1263  ;;  %v1787_v60 = vmul.f32 %v1786_v51, %v3914_v17  ;;  %v1422_v57 = vmul.f32 %v1419_v63, %v3790_v36 }
 0x216   : > { %v1272_v50 = vadd.f32 %v1264_v15, %v3921_v28  ;;  %v1230_v61 = vadd.f32 %v1227_v47, %v1159_v39  ;;  %v1789_v28 = vmul.f32 %v1786_v51, %v3929_v12  ;;  %v4061_v15 = vld [vmem:[#allocation2 + $0x3a] sm:$0xff] }
 0x217   : > { %1713 = vrot.lane.b32.xlu1 %v1707_v1, %s2996_s29  ;;  %1715 = vrot.lane.b32.xlu0 %v1708_v10, %s2996_s29  ;;  %v1788_v1 = vmul.f32 %v1786_v51, %v3927_v54 }
 0x219   : > { %v1266_v32 = vpop.permute.xlu1 %1265  ;;  %v1268_v6 = vpop.permute.xlu0 %1267 }
 0x21a   : > { %v1274_v37 = vadd.f32 %v1268_v6, %v1230_v61  ;;  %v1843_v6 = vmul.f32 %v1841_v44, %v4061_v15 }
 0x21b   : > { %1717 = vrot.lane.b32.xlu1 %v1709_v33, %s2996_s29  ;;  %1733 = vrot.lane.b32.xlu0 %v1727_v23, %s2997_s9  ;;  %v1420_v33 = vmul.f32 %v1419_v63, %v3773_v24  ;;  %v4063_v23 = vld [vmem:[#allocation2 + $0x42] sm:$0x3] }
 0x21c   : > { %v1844_v39 = vmul.f32 %v1841_v44, %v4063_v23 }
 0x21d   : > { %v4007_v41 = vpop.permute.xlu1 %1283  ;;  %v4009_v27 = vpop.permute.xlu0 %1285 }
 0x21e   : > { %v1293_v47 = vadd.f32 %v4009_v27, %v3955_v4 }
 0x21f   : > { %1735 = vrot.lane.b32.xlu1 %v1728_v52, %s2997_s9  ;;  %1737 = vrot.lane.b32.xlu0 %v1729_v38, %s2997_s9  ;;  %v1099_v52 = vadd.f32 %v3883_v7, %v3834_v16  ;;  %v1273_v38 = vadd.f32 %v1266_v32, %v3939_v46  ;;  %v1235_v16 = vmul.f32 %v3935_v59, %v3630_v2 }
 0x220   : > { %v1119_v32 = vadd.f32 %v3893_v22, %v3851_v34  ;;  %v1243_v34 = vmul.f32 %v3949_v21, %v3630_v2  ;;  %v1435_v21 = vstv %s4059_s8  ;;  %s2821_s8 = sld [smem:[#allocation3 + $0x1f]] }
 0x221   : > { %v4015_v20 = vpop.permute.xlu1 %1287  ;;  %v4017_v19 = vpop.permute.xlu0 %1303 }
 0x222   : > { %v1312_v61 = vadd.f32 %v4017_v19, %v3967_v58  ;;  %v1436_v58 = vmul.f32 %v1435_v21, %v3773_v24  ;;  %v1139_v19 = vadd.f32 %v3910_v18, %v3871_v29  ;;  %v1437_v29 = vmul.f32 %v1435_v21, %v3788_v40 }
 0x223   : > { %1753 = vrot.lane.b32.xlu1 %v1747_v11, %s2997_s9  ;;  %1755 = vrot.lane.b32.xlu0 %v1748_v9, %s2997_s9  ;;  %v1438_v18 = vmul.f32 %v1435_v21, %v3790_v36 }
 0x225   : > { %v4023_v0 = vpop.permute.xlu1 %1305  ;;  %v4025_v56 = vpop.permute.xlu0 %1307 }
 0x227   : > { %1757 = vrot.lane.b32.xlu1 %v1749_v62, %s2997_s9  ;;  %1773 = vrot.lane.b32.xlu0 %v1767_v26, %s2997_s9  ;;  %v1842_v62 = vmul.f32 %v1841_v44, %v4053_v35  ;;  %v1421_v26 = vmul.f32 %v1419_v63, %v3788_v40 }
 0x229   : > { %v4033_v5 = vpop.permute.xlu1 %1323  ;;  %v4035_v25 = vpop.permute.xlu0 %1325 }
 0x22b   : > { %1775 = vrot.lane.b32.xlu1 %v1768_v48, %s2997_s9  ;;  %1777 = vrot.lane.b32.xlu0 %v1769_v8, %s2997_s9  ;;  %v1427_v48 = vstv %s4039_s6  ;;  %v1179_v8 = vadd.f32 %v3957_v13, %v1099_v52  ;;  %v1292_v13 = vadd.f32 %v4007_v41, %v3953_v31  ;;  %v1199_v31 = vadd.f32 %v3969_v45, %v1119_v32  ;;  %s2816_s6 = sld [smem:[#allocation3 + $0x89]] }
 0x22c   : > { %v1443_v32 = vstv %s4098_s15  ;;  %s2822_s15 = sld [smem:[#allocation3 + $0x43]] }
 0x22d   : > { %v4047_v3 = vpop.permute.xlu1 %1327  ;;  %v1344_v42 = vpop.permute.xlu0 %1343  ;;  %v1238_v4 = vadd.f32 %v1235_v16, %v1179_v8 }
 0x22e   : > { %v1352_v10 = vadd.f32 %v1344_v42, %v1272_v50  ;;  %v1861_v50 = vstv %s4051_s7  ;;  %v1428_v42 = vmul.f32 %v1427_v48, %v3773_v24  ;;  %s2793_s7 = sld [smem:[#allocation3 + $0x18]] }
 0x22f   : > { %1793 = vrot.lane.b32.xlu1 %v1787_v60, %s2997_s9  ;;  %1795 = vrot.lane.b32.xlu0 %v1788_v1, %s2997_s9  ;;  %v1429_v60 = vmul.f32 %v1427_v48, %v3788_v40  ;;  %v1294_v1 = vadd.f32 %v4015_v20, %v1238_v4  ;;  %v1862_v45 = vmul.f32 %v1861_v50, %v4053_v35 }
 0x230   : > { %v4068_v11 = vadd.f32 %v1420_v33, %v1352_v10  ;;  %v1863_v52 = vmul.f32 %v1861_v50, %v4061_v15  ;;  %v1445_v4 = vmul.f32 %v1443_v32, %v3788_v40  ;;  %v1446_v40 = vmul.f32 %v1443_v32, %v3790_v36 }
 0x231   : > { %v1346_v9 = vpop.permute.xlu1 %1345  ;;  %v1348_v49 = vpop.permute.xlu0 %1347 }
 0x232   : > { %v1353_v7 = vadd.f32 %v1346_v9, %v1273_v38  ;;  %v1354_v46 = vadd.f32 %v1348_v49, %v1274_v37  ;;  %v1881_v38 = vstv %s4071_s12  ;;  %v1430_v37 = vmul.f32 %v1427_v48, %v3790_v36  ;;  %s2794_s12 = sld [smem:[#allocation3 + $0x3c]] }
 0x233   : > { %1797 = vrot.lane.b32.xlu1 %v1789_v28, %s2997_s9  ;;  %1848 = vrot.lane.b32.xlu0 %v1842_v62, %s2996_s29  ;;  %v1246_v9 = vadd.f32 %v1243_v34, %v1199_v31  ;;  %v1864_v62 = vmul.f32 %v1861_v50, %v4063_v23  ;;  %v1444_v50 = vmul.f32 %v1443_v32, %v3773_v24 }
 0x234   : > { %v4089_v59 = vadd.f32 %v1421_v26, %v1353_v7  ;;  %v4091_v51 = vadd.f32 %v1422_v57, %v1354_v46  ;;  %v1313_v26 = vadd.f32 %v4023_v0, %v3983_v30  ;;  %v1882_v46 = vmul.f32 %v1881_v38, %v4053_v35 }
 0x235   : > { %v1364_v22 = vpop.permute.xlu1 %1363  ;;  %v1366_v63 = vpop.permute.xlu0 %1365  ;;  %v1314_v57 = vadd.f32 %v4025_v56, %v1246_v9  ;;  %v1251_v30 = vmul.f32 %v3977_v14, %v3630_v2  ;;  %v1941_v9 = vstv %s2802_s22  ;;  %s2796_s22 = sld [smem:[#allocation3 + $0x84]] }
 0x236   : > { %v1372_v41 = vadd.f32 %v1364_v22, %v1292_v13  ;;  %v1373_v27 = vadd.f32 %v1366_v63, %v1293_v47  ;;  %v1332_v13 = vadd.f32 %v4033_v5, %v3993_v53  ;;  %v1333_v47 = vadd.f32 %v4035_v25, %v3995_v55 }
 0x237   : > { %1850 = vrot.lane.b32.xlu1 %v1843_v6, %s2996_s29  ;;  %1852 = vrot.lane.b32.xlu0 %v1844_v39, %s2996_s29  ;;  %v1219_v6 = vadd.f32 %v3997_v43, %v1139_v19  ;;  %v1884_v39 = vmul.f32 %v1881_v38, %v4063_v23  ;;  %v1883_v22 = vmul.f32 %v1881_v38, %v4061_v15  ;;  %v1901_v63 = vstv %s4114_s16  ;;  %s4354_s16 = sld [smem:[#allocation3 + $0x60]] }
 0x238   : > { %v4107_v10 = vadd.f32 %v1428_v42, %v1372_v41  ;;  %v4109_v44 = vadd.f32 %v1429_v60, %v1373_v27  ;;  %v1902_v27 = vmul.f32 %v1901_v63, %v4053_v35  ;;  %v1903_v24 = vmul.f32 %v1901_v63, %v4061_v15 }
 0x239   : > { %v1368_v33 = vpop.permute.xlu1 %1367  ;;  %v1384_v28 = vpop.permute.xlu0 %1383  ;;  %v1254_v42 = vadd.f32 %v1251_v30, %v1219_v6  ;;  %v1943_v19 = vmul.f32 %v1941_v9, %v4061_v15  ;;  %v1981_v6 = vstv %s2804_s24  ;;  %v1614_v30 = vstv %s2781_s25  ;;  %s4408_s24 = sld [smem:[#allocation3 + $0x20]] }
 0x23a   : > { %v1374_v20 = vadd.f32 %v1368_v33, %v1294_v1  ;;  %v1392_v49 = vadd.f32 %v1384_v28, %v1312_v61  ;;  %v1921_v1 = vstv %s2801_s20  ;;  %s2823_s20 = sld [smem:[#allocation3 + $0x67]] }
 0x23b   : > { %1868 = vrot.lane.b32.xlu1 %v1862_v45, %s2996_s29  ;;  %1870 = vrot.lane.b32.xlu0 %v1863_v52, %s2996_s29  ;;  %v1334_v53 = vadd.f32 %v4047_v3, %v1254_v42  ;;  %v1904_v3 = vmul.f32 %v1901_v63, %v4063_v23  ;;  %v1922_v45 = vmul.f32 %v1921_v1, %v4053_v35  ;;  %s2826_s25 = sld [smem:[#allocation3 + $0x44]] }
 0x23c   : > { %v4126_v48 = vadd.f32 %v1430_v37, %v1374_v20  ;;  %v4128_v8 = vadd.f32 %v1436_v58, %v1392_v49  ;;  %v1924_v52 = vmul.f32 %v1921_v1, %v4063_v23  ;;  %v1923_v37 = vmul.f32 %v1921_v1, %v4061_v15 }
 0x23d   : > { %v1386_v16 = vpop.permute.xlu1 %1385  ;;  %v1388_v7 = vpop.permute.xlu0 %1387  ;;  %v1942_v58 = vmul.f32 %v1941_v9, %v4053_v35  ;;  %v1615_v63 = vmul.f32 %v1614_v30, %v3914_v17 }
 0x23e   : > { %v1393_v0 = vadd.f32 %v1386_v16, %v1313_v26  ;;  %v1394_v56 = vadd.f32 %v1388_v7, %v1314_v57  ;;  %v1944_v26 = vmul.f32 %v1941_v9, %v4063_v23  ;;  %v2056_v9 = vstv %s4205_s28  ;;  %s2805_s28 = sld [smem:[#allocation3 + $0x1b]] }
 0x23f   : > { %1872 = vrot.lane.b32.xlu1 %v1864_v62, %s2996_s29  ;;  %1888 = vrot.lane.b32.xlu0 %v1882_v46, %s2996_s29  ;;  %v1961_v62 = vstv %s2803_s23  ;;  %s2824_s23 = sld [smem:[#allocation3 + $0x8b]] }
 0x240   : > { %v4144_v34 = vadd.f32 %v1437_v29, %v1393_v0  ;;  %v4146_v43 = vadd.f32 %v1438_v18, %v1394_v56  ;;  %v1962_v7 = vmul.f32 %v1961_v62, %v4053_v35  ;;  %v1964_v46 = vmul.f32 %v1961_v62, %v4063_v23 }
 0x241   : > { %v1404_v2 = vpop.permute.xlu1 %1403  ;;  %v1406_v14 = vpop.permute.xlu0 %1405  ;;  %v1963_v32 = vmul.f32 %v1961_v62, %v4061_v15 }
 0x242   : > { %v1412_v60 = vadd.f32 %v1404_v2, %v1332_v13  ;;  %v1413_v31 = vadd.f32 %v1406_v14, %v1333_v47  ;;  %v1982_v13 = vmul.f32 %v1981_v6, %v4053_v35  ;;  %v1983_v47 = vmul.f32 %v1981_v6, %v4061_v15  ;;  %v4207_v2 = vld [vmem:[#allocation2 + $0x48] sm:$0xff] }
 0x243   : > { %1890 = vrot.lane.b32.xlu1 %v1883_v22, %s2996_s29  ;;  %1892 = vrot.lane.b32.xlu0 %v1884_v39, %s2996_s29  ;;  %v2036_v22 = vstv %s2809_s26  ;;  %s2827_s26 = sld [smem:[#allocation3 + $0x68]] }
 0x244   : > { %v4155_v55 = vadd.f32 %v1444_v50, %v1412_v60  ;;  %v4157_v5 = vadd.f32 %v1445_v4, %v1413_v31 }
 0x245   : > { %v1408_v25 = vpop.permute.xlu1 %1407  ;;  %v1459_v41 = vpop.permute.xlu0 %1458 }
 0x246   : > { %v1414_v21 = vadd.f32 %v1408_v25, %v1334_v53  ;;  %v1467_v0 = vadd.f32 %v1459_v41, %v4068_v11  ;;  %v1984_v11 = vmul.f32 %v1981_v6, %v4063_v23  ;;  %v2037_v53 = vmul.f32 %v2036_v22, %v4207_v2  ;;  %v4222_v25 = vld [vmem:[#allocation2 + $0x50] sm:$0xff]  ;;  %v4224_v41 = vld [vmem:[#allocation2 + $0x58] sm:$0x3] }
 0x247   : > { %1908 = vrot.lane.b32.xlu1 %v1902_v27, %s2996_s29  ;;  %1910 = vrot.lane.b32.xlu0 %v1903_v24, %s2996_s29  ;;  %v2057_v6 = vmul.f32 %v2056_v9, %v4207_v2 }
 0x248   : > { %v4165_v61 = vadd.f32 %v1446_v40, %v1414_v21  ;;  %v1616_v21 = vmul.f32 %v1614_v30, %v3927_v54 }
 0x249   : > { %v1461_v33 = vpop.permute.xlu1 %1460  ;;  %v1463_v28 = vpop.permute.xlu0 %1462 }
 0x24a   : > { %v1468_v50 = vadd.f32 %v1461_v33, %v4089_v59  ;;  %v1469_v42 = vadd.f32 %v1463_v28, %v4091_v51  ;;  %v1617_v59 = vmul.f32 %v1614_v30, %v3929_v12  ;;  %v1622_v51 = vstv %s4198_s27  ;;  %s2828_s27 = sld [smem:[#allocation3 + $0x8c]] }
 0x24b   : > { %1912 = vrot.lane.b32.xlu1 %v1904_v3, %s2996_s29  ;;  %1928 = vrot.lane.b32.xlu0 %v1922_v45, %s2997_s9  ;;  %v1623_v62 = vmul.f32 %v1622_v51, %v3914_v17  ;;  %v2058_v30 = vmul.f32 %v2056_v9, %v4222_v25 }
 0x24d   : > { %v1479_v36 = vpop.permute.xlu1 %1478  ;;  %v1481_v38 = vpop.permute.xlu0 %1480 }
 0x24e   : > { %v1487_v1 = vadd.f32 %v1479_v36, %v4107_v10  ;;  %v1488_v40 = vadd.f32 %v1481_v38, %v4109_v44  ;;  %v1624_v10 = vmul.f32 %v1622_v51, %v3927_v54  ;;  %v1630_v44 = vstv %s4213_s19  ;;  %s2833_s19 = sld [smem:[#allocation3 + $0x22]] }
 0x24f   : > { %1930 = vrot.lane.b32.xlu1 %v1923_v37, %s2997_s9  ;;  %1932 = vrot.lane.b32.xlu0 %v1924_v52, %s2997_s9  ;;  %v2038_v52 = vmul.f32 %v2036_v22, %v4222_v25  ;;  %v2039_v37 = vmul.f32 %v2036_v22, %v4224_v41 }
 0x251   : > { %v4174_v20 = vpop.permute.xlu1 %1482  ;;  %v4176_v49 = vpop.permute.xlu0 %1498 }
 0x252   : > { %v1489_v36 = vadd.f32 %v4174_v20, %v4126_v48  ;;  %v1507_v38 = vadd.f32 %v4176_v49, %v4128_v8  ;;  %v1625_v48 = vmul.f32 %v1622_v51, %v3929_v12  ;;  %v1631_v20 = vmul.f32 %v1630_v44, %v3914_v17 }
 0x253   : > { %1948 = vrot.lane.b32.xlu1 %v1942_v58, %s2997_s9  ;;  %1950 = vrot.lane.b32.xlu0 %v1943_v19, %s2997_s9 }
 0x255   : > { %v4183_v57 = vpop.permute.xlu1 %1500  ;;  %v4185_v16 = vpop.permute.xlu0 %1502 }
 0x256   : > { %v1508_v8 = vadd.f32 %v4183_v57, %v4144_v34  ;;  %v1509_v49 = vadd.f32 %v4185_v16, %v4146_v43  ;;  %v1633_v34 = vmul.f32 %v1630_v44, %v3929_v12  ;;  %v1638_v43 = vstv %s4245_s21  ;;  %s2834_s21 = sld [smem:[#allocation3 + $0x46]] }
 0x257   : > { %1952 = vrot.lane.b32.xlu1 %v1944_v26, %s2997_s9  ;;  %1968 = vrot.lane.b32.xlu0 %v1962_v7, %s2997_s9 }
 0x259   : > { %v4191_v29 = vpop.permute.xlu1 %1518  ;;  %v4193_v18 = vpop.permute.xlu0 %1520 }
 0x25a   : > { %v1527_v57 = vadd.f32 %v4191_v29, %v4155_v55  ;;  %v1528_v16 = vadd.f32 %v4193_v18, %v4157_v5  ;;  %v1640_v55 = vmul.f32 %v1638_v43, %v3927_v54 }
 0x25b   : > { %1970 = vrot.lane.b32.xlu1 %v1963_v32, %s2997_s9  ;;  %1972 = vrot.lane.b32.xlu0 %v1964_v46, %s2997_s9 }
 0x25d   : > { %v4201_v56 = vpop.permute.xlu1 %1522  ;;  %v1539_v39 = vpop.permute.xlu0 %1538 }
 0x25e   : > { %v1547_v14 = vadd.f32 %v1539_v39, %v1467_v0  ;;  %v2076_v0 = vstv %s4220_s18  ;;  %v1529_v5 = vadd.f32 %v4201_v56, %v4165_v61  ;;  %s2806_s18 = sld [smem:[#allocation3 + $0x3f]] }
 0x25f   : > { %1988 = vrot.lane.b32.xlu1 %v1982_v13, %s2997_s9  ;;  %1990 = vrot.lane.b32.xlu0 %v1983_v47, %s2997_s9  ;;  %v2079_v51 = vmul.f32 %v2076_v0, %v4224_v41 }
 0x260   : > { %v4217_v60 = vadd.f32 %v1615_v63, %v1547_v14 }
 0x261   : > { %v1541_v31 = vpop.permute.xlu1 %1540  ;;  %v1543_v4 = vpop.permute.xlu0 %1542 }
 0x262   : > { %v1548_v27 = vadd.f32 %v1541_v31, %v1468_v50  ;;  %v1549_v24 = vadd.f32 %v1543_v4, %v1469_v42  ;;  %v2077_v50 = vmul.f32 %v2076_v0, %v4207_v2  ;;  %v1632_v4 = vmul.f32 %v1630_v44, %v3927_v54 }
 0x263   : > { %1992 = vrot.lane.b32.xlu1 %v1984_v11, %s2997_s9  ;;  %2043 = vrot.lane.b32.xlu0 %v2037_v53, %s2996_s29  ;;  %v2059_v11 = vmul.f32 %v2056_v9, %v4224_v41  ;;  %v1641_v54 = vmul.f32 %v1638_v43, %v3929_v12 }
 0x264   : > { %v4233_v3 = vadd.f32 %v1616_v21, %v1548_v27  ;;  %v4235_v33 = vadd.f32 %v1617_v59, %v1549_v24  ;;  %v2078_v59 = vmul.f32 %v2076_v0, %v4222_v25 }
 0x265   : > { %v1559_v28 = vpop.permute.xlu1 %1558  ;;  %v1561_v45 = vpop.permute.xlu0 %1560 }
 0x266   : > { %v1567_v58 = vadd.f32 %v1559_v28, %v1487_v1  ;;  %v1568_v19 = vadd.f32 %v1561_v45, %v1488_v40  ;;  %v2096_v1 = vstv %s4258_s30  ;;  %v1639_v45 = vmul.f32 %v1638_v43, %v3914_v17  ;;  %s2807_s30 = sld [smem:[#allocation3 + $0x63]] }
 0x267   : > { %2045 = vrot.lane.b32.xlu1 %v2038_v52, %s2996_s29  ;;  %2047 = vrot.lane.b32.xlu0 %v2039_v37, %s2996_s29  ;;  %v2097_v9 = vmul.f32 %v2096_v1, %v4207_v2 }
 0x268   : > { %v4251_v26 = vadd.f32 %v1623_v62, %v1567_v58  ;;  %v4253_v7 = vadd.f32 %v1624_v10, %v1568_v19  ;;  %v2098_v58 = vmul.f32 %v2096_v1, %v4222_v25  ;;  %v2116_v19 = vstv %s2813_s3  ;;  %s2835_s3 = sld [smem:[#allocation3 + $0x6a]] }
 0x269   : > { %v1563_v46 = vpop.permute.xlu1 %1562  ;;  %v1579_v32 = vpop.permute.xlu0 %1578  ;;  %v2099_v10 = vmul.f32 %v2096_v1, %v4224_v41  ;;  %v2117_v44 = vmul.f32 %v2116_v19, %v4207_v2 }
 0x26a   : > { %v1569_v39 = vadd.f32 %v1563_v46, %v1489_v36  ;;  %v1587_v13 = vadd.f32 %v1579_v32, %v1507_v38  ;;  %v2118_v38 = vmul.f32 %v2116_v19, %v4222_v25  ;;  %v2119_v46 = vmul.f32 %v2116_v19, %v4224_v41 }
 0x26b   : > { %2063 = vrot.lane.b32.xlu1 %v2057_v6, %s2996_s29  ;;  %2065 = vrot.lane.b32.xlu0 %v2058_v30, %s2996_s29  ;;  %v2136_v32 = vstv %s2814_s4  ;;  %s2808_s4 = sld [smem:[#allocation3 + $0x87]] }
 0x26c   : > { %v4268_v47 = vadd.f32 %v1625_v48, %v1569_v39  ;;  %v4270_v14 = vadd.f32 %v1631_v20, %v1587_v13  ;;  %v2137_v0 = vmul.f32 %v2136_v32, %v4207_v2  ;;  %v2138_v39 = vmul.f32 %v2136_v32, %v4222_v25 }
 0x26d   : > { %v1581_v22 = vpop.permute.xlu1 %1580  ;;  %v1583_v63 = vpop.permute.xlu0 %1582  ;;  %v2156_v13 = vstv %s2815_s5  ;;  %s2836_s5 = sld [smem:[#allocation3 + $0x8e]] }
 0x26e   : > { %v1588_v42 = vadd.f32 %v1581_v22, %v1508_v8  ;;  %v1589_v31 = vadd.f32 %v1583_v63, %v1509_v49  ;;  %v2139_v8 = vmul.f32 %v2136_v32, %v4224_v41  ;;  %v2157_v49 = vmul.f32 %v2156_v13, %v4207_v2 }
 0x26f   : > { %2067 = vrot.lane.b32.xlu1 %v2059_v11, %s2996_s29  ;;  %2083 = vrot.lane.b32.xlu0 %v2077_v50, %s2996_s29  ;;  %v2158_v11 = vmul.f32 %v2156_v13, %v4222_v25  ;;  %v2159_v50 = vmul.f32 %v2156_v13, %v4224_v41 }
 0x270   : > { %v4283_v53 = vadd.f32 %v1632_v4, %v1588_v42  ;;  %v4285_v27 = vadd.f32 %v1633_v34, %v1589_v31  ;;  %v2176_v42 = vstv %s2816_s6  ;;  %v4341_v31 = vstv %s2793_s7  ;;  %s2837_s6 = sld [smem:[#allocation3 + $0x23]] }
 0x271   : > { %v1599_v24 = vpop.permute.xlu1 %1598  ;;  %v1601_v21 = vpop.permute.xlu0 %1600  ;;  %s2838_s7 = sld [smem:[#allocation3 + $0x47]] }
 0x272   : > { %v1607_v40 = vadd.f32 %v1599_v24, %v1527_v57  ;;  %v1608_v28 = vadd.f32 %v1601_v21, %v1528_v16  ;;  %v2177_v57 = vmul.f32 %v2176_v42, %v4207_v2  ;;  %v2178_v16 = vmul.f32 %v2176_v42, %v4222_v25  ;;  %v4348_v24 = vld [vmem:[#allocation2 + $0x49] sm:$0xff] }
 0x273   : > { %2085 = vrot.lane.b32.xlu1 %v2078_v59, %s2996_s29  ;;  %2087 = vrot.lane.b32.xlu0 %v2079_v51, %s2996_s29  ;;  %v2231_v59 = vstv %s2821_s8  ;;  %v1810_v51 = vmul.f32 %v4341_v31, %v4053_v35  ;;  %s2839_s8 = sld [smem:[#allocation3 + $0x6b]] }
 0x274   : > { %v4296_v29 = vadd.f32 %v1639_v45, %v1607_v40  ;;  %v4298_v18 = vadd.f32 %v1640_v55, %v1608_v28  ;;  %v2179_v45 = vmul.f32 %v2176_v42, %v4224_v41  ;;  %v2232_v55 = vmul.f32 %v2231_v59, %v4348_v24 }
 0x275   : > { %v1603_v52 = vpop.permute.xlu1 %1602  ;;  %v1654_v37 = vpop.permute.xlu0 %1653  ;;  %v2271_v42 = vstv %s2823_s20  ;;  %s2820_s20 = sld [smem:[#allocation3 + $0x8a]] }
 0x276   : > { %v1609_v17 = vadd.f32 %v1603_v52, %v1529_v5  ;;  %v1662_v4 = vadd.f32 %v1654_v37, %v4217_v60  ;;  %v4363_v5 = vld [vmem:[#allocation2 + $0x51] sm:$0xff]  ;;  %v4365_v52 = vld [vmem:[#allocation2 + $0x59] sm:$0x3] }
 0x277   : > { %2103 = vrot.lane.b32.xlu1 %v2097_v9, %s2996_s29  ;;  %2105 = vrot.lane.b32.xlu0 %v2098_v58, %s2996_s29  ;;  %v1811_v9 = vmul.f32 %v4341_v31, %v4061_v15 }
 0x278   : > { %v4305_v61 = vadd.f32 %v1641_v54, %v1609_v17 }
 0x279   : > { %v1656_v56 = vpop.permute.xlu1 %1655  ;;  %v4307_v62 = vpop.permute.xlu0 %1657 }
 0x27a   : > { %v1663_v60 = vadd.f32 %v1656_v56, %v4233_v3  ;;  %v4371_v3 = vstv %s2794_s12  ;;  %s2817_s12 = sld [smem:[#allocation3 + $0x1e]] }
 0x27b   : > { %2107 = vrot.lane.b32.xlu1 %v2099_v10, %s2996_s29  ;;  %2123 = vrot.lane.b32.xlu0 %v2117_v44, %s2997_s9  ;;  %v2233_v10 = vmul.f32 %v2231_v59, %v4363_v5  ;;  %v2234_v44 = vmul.f32 %v2231_v59, %v4365_v52 }
 0x27d   : > { %v1674_v36 = vpop.permute.xlu1 %1673  ;;  %v1676_v12 = vpop.permute.xlu0 %1675 }
 0x27e   : > { %v1682_v58 = vadd.f32 %v1674_v36, %v4251_v26  ;;  %v1683_v17 = vadd.f32 %v1676_v12, %v4253_v7  ;;  %v4386_v26 = vstv %s4354_s16  ;;  %s2819_s16 = sld [smem:[#allocation3 + $0x66]] }
 0x27f   : > { %2125 = vrot.lane.b32.xlu1 %v2118_v38, %s2997_s9  ;;  %2127 = vrot.lane.b32.xlu0 %v2119_v46, %s2997_s9  ;;  %v2251_v38 = vstv %s2822_s15  ;;  %s2818_s15 = sld [smem:[#allocation3 + $0x42]] }
 0x281   : > { %v4317_v6 = vpop.permute.xlu1 %1677  ;;  %v4319_v30 = vpop.permute.xlu0 %1693 }
 0x282   : > { %v1702_v7 = vadd.f32 %v4319_v30, %v4270_v14 }
 0x283   : > { %2143 = vrot.lane.b32.xlu1 %v2137_v0, %s2997_s9  ;;  %2145 = vrot.lane.b32.xlu0 %v2138_v39, %s2997_s9  ;;  %v1818_v0 = vmul.f32 %v4371_v3, %v4053_v35  ;;  %v1819_v39 = vmul.f32 %v4371_v3, %v4061_v15 }
 0x285   : > { %v4325_v48 = vpop.permute.xlu1 %1695  ;;  %v4327_v20 = vpop.permute.xlu0 %1697 }
 0x286   : > { %v1703_v14 = vadd.f32 %v4325_v48, %v4283_v53 }
 0x287   : > { %2147 = vrot.lane.b32.xlu1 %v2139_v8, %s2997_s9  ;;  %2163 = vrot.lane.b32.xlu0 %v2157_v49, %s2997_s9  ;;  %v2252_v49 = vmul.f32 %v2251_v38, %v4348_v24 }
 0x289   : > { %v4333_v22 = vpop.permute.xlu1 %1713  ;;  %v4335_v63 = vpop.permute.xlu0 %1715 }
 0x28a   : > { %v1722_v53 = vadd.f32 %v4333_v22, %v4296_v29  ;;  %v1723_v48 = vadd.f32 %v4335_v63, %v4298_v18  ;;  %v1812_v22 = vmul.f32 %v4341_v31, %v4063_v23  ;;  %v2311_v31 = vstv %s4408_s24  ;;  %s2832_s24 = sld [smem:[#allocation3 + $0x8d]] }
 0x28b   : > { %2165 = vrot.lane.b32.xlu1 %v2158_v11, %s2997_s9  ;;  %2167 = vrot.lane.b32.xlu0 %v2159_v50, %s2997_s9  ;;  %v2253_v11 = vmul.f32 %v2251_v38, %v4363_v5 }
 0x28d   : > { %v4344_v34 = vpop.permute.xlu1 %1717  ;;  %v1734_v43 = vpop.permute.xlu0 %1733 }
 0x28e   : > { %v1742_v21 = vadd.f32 %v1734_v43, %v1662_v4  ;;  %v1826_v4 = vmul.f32 %v4386_v26, %v4053_v35  ;;  %v1724_v63 = vadd.f32 %v4344_v34, %v4305_v61 }
 0x28f   : > { %2183 = vrot.lane.b32.xlu1 %v2177_v57, %s2997_s9  ;;  %2185 = vrot.lane.b32.xlu0 %v2178_v16, %s2997_s9  ;;  %v2254_v16 = vmul.f32 %v2251_v38, %v4365_v52 }
 0x290   : > { %v4357_v1 = vadd.f32 %v1810_v51, %v1742_v21  ;;  %v2272_v21 = vmul.f32 %v2271_v42, %v4348_v24  ;;  %v1827_v51 = vmul.f32 %v4386_v26, %v4061_v15 }
 0x291   : > { %v1736_v40 = vpop.permute.xlu1 %1735  ;;  %v4359_v28 = vpop.permute.xlu0 %1737 }
 0x292   : > { %v1743_v37 = vadd.f32 %v1736_v40, %v1663_v60  ;;  %v4412_v60 = vstv %s2796_s22  ;;  %s2830_s22 = sld [smem:[#allocation3 + $0x45]] }
 0x293   : > { %2187 = vrot.lane.b32.xlu1 %v2179_v45, %s2997_s9  ;;  %2238 = vrot.lane.b32.xlu0 %v2232_v55, %s2996_s29  ;;  %v1835_v18 = vmul.f32 %v4412_v60, %v4061_v15 }
 0x294   : > { %v4375_v19 = vadd.f32 %v1811_v9, %v1743_v37  ;;  %v2273_v37 = vmul.f32 %v2271_v42, %v4363_v5  ;;  %v2274_v9 = vmul.f32 %v2271_v42, %v4365_v52 }
 0x295   : > { %v1754_v54 = vpop.permute.xlu1 %1753  ;;  %v1756_v56 = vpop.permute.xlu0 %1755 }
 0x296   : > { %v1762_v46 = vadd.f32 %v1754_v54, %v1682_v58  ;;  %v1763_v32 = vadd.f32 %v1756_v56, %v1683_v17  ;;  %v2291_v58 = vstv %s2824_s23  ;;  %v1834_v17 = vmul.f32 %v4412_v60, %v4053_v35  ;;  %s2831_s23 = sld [smem:[#allocation3 + $0x69]] }
 0x297   : > { %2240 = vrot.lane.b32.xlu1 %v2233_v10, %s2996_s29  ;;  %2242 = vrot.lane.b32.xlu0 %v2234_v44, %s2996_s29  ;;  %v1664_v54 = vadd.f32 %v4307_v62, %v4235_v33  ;;  %v2292_v15 = vmul.f32 %v2291_v58, %v4348_v24  ;;  %v2293_v38 = vmul.f32 %v2291_v58, %v4363_v5 }
 0x298   : > { %v4390_v36 = vadd.f32 %v1818_v0, %v1762_v46  ;;  %v4392_v12 = vadd.f32 %v1819_v39, %v1763_v32  ;;  %v2294_v0 = vmul.f32 %v2291_v58, %v4365_v52  ;;  %v2312_v39 = vmul.f32 %v2311_v31, %v4348_v24 }
 0x299   : > { %v4394_v13 = vpop.permute.xlu1 %1757  ;;  %v1774_v8 = vpop.permute.xlu0 %1773  ;;  %v1744_v35 = vadd.f32 %v4359_v28, %v1664_v54 }
 0x29a   : > { %v1782_v50 = vadd.f32 %v1774_v8, %v1702_v7  ;;  %v1684_v7 = vadd.f32 %v4317_v6, %v4268_v47  ;;  %v2314_v47 = vmul.f32 %v2311_v31, %v4365_v52  ;;  %v1704_v6 = vadd.f32 %v4327_v20, %v4285_v27 }
 0x29b   : > { %2258 = vrot.lane.b32.xlu1 %v2252_v49, %s2996_s29  ;;  %2260 = vrot.lane.b32.xlu0 %v2253_v11, %s2996_s29  ;;  %v1815_v61 = vadd.f32 %v1812_v22, %v1744_v35  ;;  %v1820_v11 = vmul.f32 %v4371_v3, %v4063_v23 }
 0x29c   : > { %v4404_v30 = vadd.f32 %v1826_v4, %v1782_v50  ;;  %v1764_v49 = vadd.f32 %v4394_v13, %v1684_v7  ;;  %v2313_v4 = vmul.f32 %v2311_v31, %v4363_v5 }
 0x29d   : > { %v1776_v43 = vpop.permute.xlu1 %1775  ;;  %v1778_v57 = vpop.permute.xlu0 %1777 }
 0x29e   : > { %v1783_v59 = vadd.f32 %v1776_v43, %v1703_v14  ;;  %v2331_v43 = vstv %s2826_s25  ;;  %v1784_v3 = vadd.f32 %v1778_v57, %v1704_v6  ;;  %v1823_v13 = vadd.f32 %v1820_v11, %v1764_v49  ;;  %s2853_s25 = smul.u32 96, %s4723_s13 }
 0x29f   : > { %2262 = vrot.lane.b32.xlu1 %v2254_v16, %s2996_s29  ;;  %2278 = vrot.lane.b32.xlu0 %v2272_v21, %s2996_s29  ;;  %v1828_v16 = vmul.f32 %v4386_v26, %v4063_v23  ;;  %v2332_v27 = vmul.f32 %v2331_v43, %v4348_v24  ;;  %v2333_v20 = vmul.f32 %v2331_v43, %v4363_v5 }
 0x2a0   : > { %v4420_v40 = vadd.f32 %v1827_v51, %v1783_v59  ;;  %v2351_v51 = vstv %s2827_s26 }
 0x2a1   : > { %v1794_v45 = vpop.permute.xlu1 %1793  ;;  %v1796_v55 = vpop.permute.xlu0 %1795  ;;  %v1831_v57 = vadd.f32 %v1828_v16, %v1784_v3  ;;  %v2354_v54 = vmul.f32 %v2351_v51, %v4365_v52 }
 0x2a2   : > { %v1802_v56 = vadd.f32 %v1794_v45, %v1722_v53  ;;  %v1803_v29 = vadd.f32 %v1796_v55, %v1723_v48  ;;  %v2334_v48 = vmul.f32 %v2331_v43, %v4365_v52  ;;  %v2352_v45 = vmul.f32 %v2351_v51, %v4348_v24 }
 0x2a3   : > { %2280 = vrot.lane.b32.xlu1 %v2273_v37, %s2996_s29  ;;  %2282 = vrot.lane.b32.xlu0 %v2274_v9, %s2996_s29 }
 0x2a4   : > { %v4437_v10 = vadd.f32 %v1834_v17, %v1802_v56  ;;  %v4439_v33 = vadd.f32 %v1835_v18, %v1803_v29  ;;  %v2353_v17 = vmul.f32 %v2351_v51, %v4363_v5  ;;  %v2371_v29 = vstv %s2828_s27 }
 0x2a5   : > { %v1798_v62 = vpop.permute.xlu1 %1797  ;;  %v1849_v44 = vpop.permute.xlu0 %1848  ;;  %v2004_v18 = vstv %s2805_s28  ;;  %v2373_v35 = vmul.f32 %v2371_v29, %v4363_v5  ;;  %s4656_s28 = scalar_lea.vmem %s4707_s2, %s2853_s25 }
 0x2a6   : > { %v4443_v46 = vadd.f32 %v1798_v62, %v1724_v63  ;;  %v4446_v32 = vadd.f32 %v1849_v44, %v4357_v1  ;;  %v2372_v63 = vmul.f32 %v2371_v29, %v4348_v24  ;;  %v2426_v44 = vstv %s2833_s19 }
 0x2a7   : > { %2298 = vrot.lane.b32.xlu1 %v2292_v15, %s2996_s29  ;;  %2300 = vrot.lane.b32.xlu0 %v2293_v38, %s2996_s29  ;;  %v2005_v15 = vmul.f32 %v2004_v18, %v4207_v2  ;;  %v4520_v38 = vld [vmem:[#allocation2 + $0x5a] sm:$0x3]  ;;  %v2006_v7 = vmul.f32 %v2004_v18, %v4222_v25  ;;  %v2007_v49 = vmul.f32 %v2004_v18, %v4224_v41 }
 0x2a8   : > { %v2429_v11 = vmul.f32 %v2426_v44, %v4520_v38 }
 0x2a9   : > { %v1851_v34 = vpop.permute.xlu1 %1850  ;;  %v1853_v28 = vpop.permute.xlu0 %1852 }
 0x2aa   : > { %v4456_v8 = vadd.f32 %v1851_v34, %v4375_v19  ;;  %v4458_v1 = vadd.f32 %v1853_v28, %v1815_v61  ;;  %v2374_v34 = vmul.f32 %v2371_v29, %v4365_v52 }
 0x2ab   : > { %2302 = vrot.lane.b32.xlu1 %v2294_v0, %s2996_s29  ;;  %2318 = vrot.lane.b32.xlu0 %v2312_v39, %s2997_s9 }
 0x2ad   : > { %v1869_v50 = vpop.permute.xlu1 %1868  ;;  %v1871_v42 = vpop.permute.xlu0 %1870 }
 0x2ae   : > { %v4470_v19 = vadd.f32 %v1869_v50, %v4390_v36  ;;  %v4473_v14 = vadd.f32 %v1871_v42, %v4392_v12  ;;  %v2012_v50 = vstv %s2806_s18 }
 0x2af   : > { %2320 = vrot.lane.b32.xlu1 %v2313_v4, %s2997_s9  ;;  %2322 = vrot.lane.b32.xlu0 %v2314_v47, %s2997_s9  ;;  %v2014_v16 = vmul.f32 %v2012_v50, %v4222_v25 }
 0x2b1   : > { %v1873_v21 = vpop.permute.xlu1 %1872  ;;  %v1889_v59 = vpop.permute.xlu0 %1888 }
 0x2b2   : > { %v4481_v36 = vadd.f32 %v1873_v21, %v1823_v13  ;;  %v4484_v12 = vadd.f32 %v1889_v59, %v4404_v30  ;;  %v1836_v30 = vmul.f32 %v4412_v60, %v4063_v23  ;;  %v2013_v13 = vmul.f32 %v2012_v50, %v4207_v2 }
 0x2b3   : > { %2338 = vrot.lane.b32.xlu1 %v2332_v27, %s2997_s9  ;;  %2340 = vrot.lane.b32.xlu0 %v2333_v20, %s2997_s9  ;;  %v2020_v21 = vstv %s2807_s30 }
 0x2b4   : > { %v1839_v23 = vadd.f32 %v1836_v30, %v4443_v46  ;;  %v2022_v18 = vmul.f32 %v2020_v21, %v4222_v25 }
 0x2b5   : > { %v1891_v26 = vpop.permute.xlu1 %1890  ;;  %v1893_v53 = vpop.permute.xlu0 %1892 }
 0x2b6   : > { %v4491_v55 = vadd.f32 %v1891_v26, %v4420_v40  ;;  %v4493_v37 = vadd.f32 %v1893_v53, %v1831_v57  ;;  %v2466_v57 = vstv %s2835_s3 }
 0x2b7   : > { %2342 = vrot.lane.b32.xlu1 %v2334_v48, %s2997_s9  ;;  %2358 = vrot.lane.b32.xlu0 %v2352_v45, %s2997_s9  ;;  %v2015_v48 = vmul.f32 %v2012_v50, %v4224_v41  ;;  %v2021_v45 = vmul.f32 %v2020_v21, %v4207_v2  ;;  %v2506_v50 = vstv %s2837_s6 }
 0x2b9   : > { %v1909_v9 = vpop.permute.xlu1 %1908  ;;  %v1911_v58 = vpop.permute.xlu0 %1910 }
 0x2ba   : > { %v4502_v56 = vadd.f32 %v1909_v9, %v4437_v10  ;;  %v4505_v40 = vadd.f32 %v1911_v58, %v4439_v33  ;;  %v4512_v10 = vld [vmem:[#allocation2 + $0x4a] sm:$0xff] }
 0x2bb   : > { %2360 = vrot.lane.b32.xlu1 %v2353_v17, %s2997_s9  ;;  %2362 = vrot.lane.b32.xlu0 %v2354_v54, %s2997_s9  ;;  %v2427_v28 = vmul.f32 %v2426_v44, %v4512_v10  ;;  %v2467_v29 = vmul.f32 %v2466_v57, %v4512_v10 }
 0x2bd   : > { %v1913_v60 = vpop.permute.xlu1 %1912  ;;  %v1929_v22 = vpop.permute.xlu0 %1928 }
 0x2be   : > { %v4514_v33 = vadd.f32 %v1913_v60, %v1839_v23  ;;  %v1937_v62 = vadd.f32 %v1929_v22, %v4446_v32  ;;  %v4526_v32 = vld [vmem:[#allocation2 + $0x52] sm:$0xff]  ;;  %v2023_v23 = vmul.f32 %v2020_v21, %v4224_v41  ;;  %v2469_v60 = vmul.f32 %v2466_v57, %v4520_v38 }
 0x2bf   : > { %2378 = vrot.lane.b32.xlu1 %v2372_v63, %s2997_s9  ;;  %2380 = vrot.lane.b32.xlu0 %v2373_v35, %s2997_s9  ;;  %v2028_v22 = vstv %s2808_s4 }
 0x2c0   : > { %v4522_v46 = vadd.f32 %v2005_v15, %v1937_v62  ;;  %v2486_v15 = vstv %s2836_s5 }
 0x2c1   : > { %v1931_v31 = vpop.permute.xlu1 %1930  ;;  %v1933_v61 = vpop.permute.xlu0 %1932 }
 0x2c2   : > { %v1938_v0 = vadd.f32 %v1931_v31, %v4456_v8  ;;  %v1939_v39 = vadd.f32 %v1933_v61, %v4458_v1  ;;  %v2428_v8 = vmul.f32 %v2426_v44, %v4526_v32  ;;  %v2446_v1 = vstv %s2834_s21 }
 0x2c3   : > { %2382 = vrot.lane.b32.xlu1 %v2374_v34, %s2997_s9  ;;  %2433 = vrot.lane.b32.xlu0 %v2427_v28, %s2996_s29  ;;  %v2449_v30 = vmul.f32 %v2446_v1, %v4520_v38  ;;  %v2029_v61 = vmul.f32 %v2028_v22, %v4207_v2  ;;  %v2030_v34 = vmul.f32 %v2028_v22, %v4222_v25 }
 0x2c4   : > { %v4535_v42 = vadd.f32 %v2006_v7, %v1938_v0  ;;  %v4537_v4 = vadd.f32 %v2007_v49, %v1939_v39  ;;  %v2487_v49 = vmul.f32 %v2486_v15, %v4512_v10  ;;  %v2031_v2 = vmul.f32 %v2028_v22, %v4224_v41 }
 0x2c5   : > { %v1949_v47 = vpop.permute.xlu1 %1948  ;;  %v1951_v6 = vpop.permute.xlu0 %1950  ;;  %v2489_v25 = vmul.f32 %v2486_v15, %v4520_v38  ;;  %v2509_v41 = vmul.f32 %v2506_v50, %v4520_v38 }
 0x2c6   : > { %v1957_v43 = vadd.f32 %v1949_v47, %v4470_v19  ;;  %v1958_v3 = vadd.f32 %v1951_v6, %v4473_v14  ;;  %v2447_v19 = vmul.f32 %v2446_v1, %v4512_v10  ;;  %v2448_v14 = vmul.f32 %v2446_v1, %v4526_v32 }
 0x2c7   : > { %2435 = vrot.lane.b32.xlu1 %v2428_v8, %s2996_s29  ;;  %2437 = vrot.lane.b32.xlu0 %v2429_v11, %s2996_s29  ;;  %v2488_v11 = vmul.f32 %v2486_v15, %v4526_v32  ;;  %v2507_v1 = vmul.f32 %v2506_v50, %v4512_v10 }
 0x2c8   : > { %v4546_v59 = vadd.f32 %v2013_v13, %v1957_v43  ;;  %v4548_v27 = vadd.f32 %v2014_v16, %v1958_v3  ;;  %v2508_v13 = vmul.f32 %v2506_v50, %v4526_v32 }
 0x2c9   : > { %v1953_v20 = vpop.permute.xlu1 %1952  ;;  %v1969_v51 = vpop.permute.xlu0 %1968 }
 0x2ca   : > { %v1959_v26 = vadd.f32 %v1953_v20, %v4481_v36  ;;  %v1977_v53 = vadd.f32 %v1969_v51, %v4484_v12  ;;  %v2526_v20 = vstv %s2838_s7 }
 0x2cb   : > { %2453 = vrot.lane.b32.xlu1 %v2447_v19, %s2996_s29  ;;  %2455 = vrot.lane.b32.xlu0 %v2448_v14, %s2996_s29  ;;  %v2527_v51 = vmul.f32 %v2526_v20, %v4512_v10  ;;  %v2528_v19 = vmul.f32 %v2526_v20, %v4526_v32 }
 0x2cc   : > { %v2018_v9 = vadd.f32 %v2015_v48, %v1959_v26  ;;  %v2024_v58 = vadd.f32 %v2021_v45, %v1977_v53  ;;  %v2546_v26 = vstv %s2839_s8 }
 0x2cd   : > { %v1971_v17 = vpop.permute.xlu1 %1970  ;;  %v1973_v54 = vpop.permute.xlu0 %1972  ;;  %v2547_v48 = vmul.f32 %v2546_v26, %v4512_v10 }
 0x2ce   : > { %v1978_v36 = vadd.f32 %v1971_v17, %v4491_v55  ;;  %v1979_v12 = vadd.f32 %v1973_v54, %v4493_v37  ;;  %v2468_v55 = vmul.f32 %v2466_v57, %v4526_v32  ;;  %v2548_v54 = vmul.f32 %v2546_v26, %v4526_v32 }
 0x2cf   : > { %2457 = vrot.lane.b32.xlu1 %v2449_v30, %s2996_s29  ;;  %2473 = vrot.lane.b32.xlu0 %v2467_v29, %s2996_s29 }
 0x2d0   : > { %v2025_v63 = vadd.f32 %v2022_v18, %v1978_v36  ;;  %v2026_v35 = vadd.f32 %v2023_v23, %v1979_v12  ;;  %v2199_v18 = vstv %s2817_s12 }
 0x2d1   : > { %v1989_v62 = vpop.permute.xlu1 %1988  ;;  %v1991_v44 = vpop.permute.xlu0 %1990 }
 0x2d2   : > { %v1997_v37 = vadd.f32 %v1989_v62, %v4502_v56  ;;  %v1998_v31 = vadd.f32 %v1991_v44, %v4505_v40  ;;  %v2200_v44 = vmul.f32 %v2199_v18, %v4348_v24 }
 0x2d3   : > { %2475 = vrot.lane.b32.xlu1 %v2468_v55, %s2996_s29  ;;  %2477 = vrot.lane.b32.xlu0 %v2469_v60, %s2996_s29 }
 0x2d4   : > { %v2032_v28 = vadd.f32 %v2029_v61, %v1997_v37  ;;  %v2033_v0 = vadd.f32 %v2030_v34, %v1998_v31 }
 0x2d5   : > { %v1993_v39 = vpop.permute.xlu1 %1992  ;;  %v2044_v7 = vpop.permute.xlu0 %2043 }
 0x2d6   : > { %v1999_v56 = vadd.f32 %v1993_v39, %v4514_v33  ;;  %v2052_v40 = vadd.f32 %v2044_v7, %v4522_v46  ;;  %v2207_v39 = vstv %s2818_s15 }
 0x2d7   : > { %2493 = vrot.lane.b32.xlu1 %v2487_v49, %s2996_s29  ;;  %2495 = vrot.lane.b32.xlu0 %v2488_v11, %s2996_s29 }
 0x2d8   : > { %v2034_v47 = vadd.f32 %v2031_v2, %v1999_v56  ;;  %v2208_v2 = vmul.f32 %v2207_v39, %v4348_v24 }
 0x2d9   : > { %v2046_v6 = vpop.permute.xlu1 %2045  ;;  %v2048_v8 = vpop.permute.xlu0 %2047 }
 0x2da   : > { %v2053_v43 = vadd.f32 %v2046_v6, %v4535_v42  ;;  %v2054_v33 = vadd.f32 %v2048_v8, %v4537_v4 }
 0x2db   : > { %2497 = vrot.lane.b32.xlu1 %v2489_v25, %s2996_s29  ;;  %2513 = vrot.lane.b32.xlu0 %v2507_v1, %s2997_s9  ;;  %s2840_s29 = sld [smem:[#allocation3 + $0x8f]]  ;;  %v2209_v25 = vmul.f32 %v2207_v39, %v4363_v5 }
 0x2dd   : > { %v2064_v46 = vpop.permute.xlu1 %2063  ;;  %v2066_v3 = vpop.permute.xlu0 %2065 }
 0x2de   : > { %v2072_v16 = vadd.f32 %v2064_v46, %v4546_v59  ;;  %v2073_v21 = vadd.f32 %v2066_v3, %v4548_v27  ;;  %v2529_v59 = vmul.f32 %v2526_v20, %v4520_v38  ;;  %v2210_v46 = vmul.f32 %v2207_v39, %v4365_v52 }
 0x2df   : > { %2515 = vrot.lane.b32.xlu1 %v2508_v13, %s2997_s9  ;;  %2517 = vrot.lane.b32.xlu0 %v2509_v41, %s2997_s9 }
 0x2e1   : > { %v2068_v42 = vpop.permute.xlu1 %2067  ;;  %v2084_v4 = vpop.permute.xlu0 %2083  ;;  %v2566_v12 = vstv %s2840_s29 }
 0x2e2   : > { %v2074_v14 = vadd.f32 %v2068_v42, %v2018_v9  ;;  %v2092_v57 = vadd.f32 %v2084_v4, %v2024_v58  ;;  %v2549_v9 = vmul.f32 %v2546_v26, %v4520_v38  ;;  %v2567_v22 = vmul.f32 %v2566_v12, %v4512_v10 }
 0x2e3   : > { %2533 = vrot.lane.b32.xlu1 %v2527_v51, %s2997_s9  ;;  %2535 = vrot.lane.b32.xlu0 %v2528_v19, %s2997_s9  ;;  %v2569_v55 = vmul.f32 %v2566_v12, %v4520_v38  ;;  %v2223_v26 = vstv %s2820_s20 }
 0x2e5   : > { %v2086_v27 = vpop.permute.xlu1 %2085  ;;  %v2088_v53 = vpop.permute.xlu0 %2087 }
 0x2e6   : > { %v2093_v45 = vadd.f32 %v2086_v27, %v2025_v63  ;;  %v2094_v30 = vadd.f32 %v2088_v53, %v2026_v35  ;;  %v2568_v63 = vmul.f32 %v2566_v12, %v4526_v32 }
 0x2e7   : > { %2537 = vrot.lane.b32.xlu1 %v2529_v59, %s2997_s9  ;;  %2553 = vrot.lane.b32.xlu0 %v2547_v48, %s2997_s9 }
 0x2e9   : > { %v2104_v58 = vpop.permute.xlu1 %2103  ;;  %v2106_v17 = vpop.permute.xlu0 %2105 }
 0x2ea   : > { %v2112_v29 = vadd.f32 %v2104_v58, %v2032_v28  ;;  %v2113_v36 = vadd.f32 %v2106_v17, %v2033_v0  ;;  %v2201_v28 = vmul.f32 %v2199_v18, %v4363_v5  ;;  %v2202_v0 = vmul.f32 %v2199_v18, %v4365_v52 }
 0x2eb   : > { %2555 = vrot.lane.b32.xlu1 %v2548_v54, %s2997_s9  ;;  %2557 = vrot.lane.b32.xlu0 %v2549_v9, %s2997_s9  ;;  %v2224_v9 = vmul.f32 %v2223_v26, %v4348_v24  ;;  %v2225_v58 = vmul.f32 %v2223_v26, %v4363_v5 }
 0x2ed   : > { %v2108_v23 = vpop.permute.xlu1 %2107  ;;  %v2124_v60 = vpop.permute.xlu0 %2123 }
 0x2ee   : > { %v2114_v35 = vadd.f32 %v2108_v23, %v2034_v47  ;;  %v2132_v62 = vadd.f32 %v2124_v60, %v2052_v40  ;;  %v2215_v47 = vstv %s2819_s16  ;;  %v2226_v23 = vmul.f32 %v2223_v26, %v4365_v52 }
 0x2ef   : > { %2573 = vrot.lane.b32.xlu1 %v2567_v22, %s2997_s9  ;;  %2575 = vrot.lane.b32.xlu0 %v2568_v63, %s2997_s9  ;;  %v2216_v3 = vmul.f32 %v2215_v47, %v4348_v24  ;;  %v2217_v51 = vmul.f32 %v2215_v47, %v4363_v5  ;;  %v2218_v19 = vmul.f32 %v2215_v47, %v4365_v52 }
 0x2f0   : > { %v2203_v15 = vadd.f32 %v2200_v44, %v2132_v62 }
 0x2f1   : > { %v2126_v37 = vpop.permute.xlu1 %2125  ;;  %v2128_v31 = vpop.permute.xlu0 %2127 }
 0x2f2   : > { %v2133_v61 = vadd.f32 %v2126_v37, %v2053_v43  ;;  %v2134_v34 = vadd.f32 %v2128_v31, %v2054_v33 }
 0x2f3   : > { %2577 = vrot.lane.b32.xlu1 %v2569_v55, %s2997_s9  ;;  %s2829_s9 = sld [smem:[#allocation3 + $0x21]] }
 0x2f4   : > { %v2204_v7 = vadd.f32 %v2201_v28, %v2133_v61  ;;  %v2205_v49 = vadd.f32 %v2202_v0, %v2134_v34 }
 0x2f5   : > { %v2144_v11 = vpop.permute.xlu1 %2143  ;;  %v2146_v56 = vpop.permute.xlu0 %2145 }
 0x2f6   : > { %v2152_v40 = vadd.f32 %v2144_v11, %v2072_v16  ;;  %v2153_v50 = vadd.f32 %v2146_v56, %v2073_v21 }
 0x2f8   : > { %v2211_v6 = vadd.f32 %v2208_v2, %v2152_v40  ;;  %v2212_v8 = vadd.f32 %v2209_v25, %v2153_v50 }
 0x2f9   : > { %v2148_v1 = vpop.permute.xlu1 %2147  ;;  %v2164_v43 = vpop.permute.xlu0 %2163 }
 0x2fa   : > { %v2154_v33 = vadd.f32 %v2148_v1, %v2074_v14  ;;  %v2172_v41 = vadd.f32 %v2164_v43, %v2092_v57  ;;  %v2402_v43 = vstv %s2830_s22 }
 0x2fc   : > { %v2213_v13 = vadd.f32 %v2210_v46, %v2154_v33  ;;  %v2219_v20 = vadd.f32 %v2216_v3, %v2172_v41 }
 0x2fd   : > { %v2166_v16 = vpop.permute.xlu1 %2165  ;;  %v2168_v21 = vpop.permute.xlu0 %2167 }
 0x2fe   : > { %v2173_v42 = vadd.f32 %v2166_v16, %v2093_v45  ;;  %v2174_v4 = vadd.f32 %v2168_v21, %v2094_v30  ;;  %v2404_v16 = vmul.f32 %v2402_v43, %v4526_v32  ;;  %v2410_v21 = vstv %s2831_s23 }
 0x300   : > { %v2220_v59 = vadd.f32 %v2217_v51, %v2173_v42  ;;  %v2221_v27 = vadd.f32 %v2218_v19, %v2174_v4 }
 0x301   : > { %v2184_v53 = vpop.permute.xlu1 %2183  ;;  %v2186_v14 = vpop.permute.xlu0 %2185 }
 0x302   : > { %v2192_v57 = vadd.f32 %v2184_v53, %v2112_v29  ;;  %v2193_v48 = vadd.f32 %v2186_v14, %v2113_v36 }
 0x304   : > { %v2227_v17 = vadd.f32 %v2224_v9, %v2192_v57  ;;  %v2228_v54 = vadd.f32 %v2225_v58, %v2193_v48  ;;  %v2412_v48 = vmul.f32 %v2410_v21, %v4526_v32  ;;  %v4637_v9 = vstv %s2832_s24 }
 0x305   : > { %v2188_v12 = vpop.permute.xlu1 %2187  ;;  %v2239_v45 = vpop.permute.xlu0 %2238 }
 0x306   : > { %v2194_v30 = vadd.f32 %v2188_v12, %v2114_v35  ;;  %v2247_v18 = vadd.f32 %v2239_v45, %v2203_v15 }
 0x308   : > { %v2229_v60 = vadd.f32 %v2226_v23, %v2194_v30  ;;  %v2419_v30 = vmul.f32 %v4637_v9, %v4512_v10 }
 0x309   : > { %v2241_v22 = vpop.permute.xlu1 %2240  ;;  %v2243_v63 = vpop.permute.xlu0 %2242 }
 0x30a   : > { %v2248_v62 = vadd.f32 %v2241_v22, %v2204_v7  ;;  %v4623_v44 = vadd.f32 %v2243_v63, %v2205_v49  ;;  %v2394_v49 = vstv %s2829_s9 }
 0x30b   : > { %v2395_v2 = vmul.f32 %v2394_v49, %v4512_v10  ;;  %v2396_v1 = vmul.f32 %v2394_v49, %v4526_v32 }
 0x30d   : > { %v2259_v29 = vpop.permute.xlu1 %2258  ;;  %v2261_v36 = vpop.permute.xlu0 %2260 }
 0x30e   : > { %v2267_v55 = vadd.f32 %v2259_v29, %v2211_v6  ;;  %v2268_v24 = vadd.f32 %v2261_v36, %v2212_v8 }
 0x311   : > { %v2263_v37 = vpop.permute.xlu1 %2262  ;;  %v2279_v5 = vpop.permute.xlu0 %2278 }
 0x312   : > { %v4625_v31 = vadd.f32 %v2263_v37, %v2213_v13  ;;  %v2287_v61 = vadd.f32 %v2279_v5, %v2219_v20  ;;  %v2403_v20 = vmul.f32 %v2402_v43, %v4512_v10 }
 0x315   : > { %v2281_v35 = vpop.permute.xlu1 %2280  ;;  %v2283_v15 = vpop.permute.xlu0 %2282 }
 0x316   : > { %v2288_v34 = vadd.f32 %v2281_v35, %v2220_v59  ;;  %v4627_v52 = vadd.f32 %v2283_v15, %v2221_v27  ;;  %v2411_v59 = vmul.f32 %v2410_v21, %v4512_v10  ;;  %v2397_v15 = vmul.f32 %v2394_v49, %v4520_v38 }
 0x319   : > { %v2299_v28 = vpop.permute.xlu1 %2298  ;;  %v2301_v0 = vpop.permute.xlu0 %2300 }
 0x31a   : > { %v2307_v39 = vadd.f32 %v2299_v28, %v2227_v17  ;;  %v2308_v7 = vadd.f32 %v2301_v0, %v2228_v54 }
 0x31d   : > { %v2303_v11 = vpop.permute.xlu1 %2302  ;;  %v2319_v56 = vpop.permute.xlu0 %2318 }
 0x31e   : > { %v4629_v40 = vadd.f32 %v2303_v11, %v2229_v60  ;;  %v2327_v50 = vadd.f32 %v2319_v56, %v2247_v18  ;;  %v2420_v18 = vmul.f32 %v4637_v9, %v4526_v32 }
 0x320   : > { %v2398_v25 = vadd.f32 %v2395_v2, %v2327_v50  ;;  %v2405_v2 = vmul.f32 %v2402_v43, %v4520_v38 }
 0x321   : > { %v2321_v47 = vpop.permute.xlu1 %2320  ;;  %v2323_v6 = vpop.permute.xlu0 %2322 }
 0x322   : > { %v2328_v8 = vadd.f32 %v2321_v47, %v2248_v62  ;;  %v2329_v32 = vadd.f32 %v2323_v6, %v4623_v44 }
 0x324   : > { %v2399_v33 = vadd.f32 %v2396_v1, %v2328_v8  ;;  %v2413_v1 = vmul.f32 %v2410_v21, %v4520_v38 }
 0x325   : > { %v2339_v41 = vpop.permute.xlu1 %2338  ;;  %v2341_v46 = vpop.permute.xlu0 %2340 }
 0x326   : > { %v2347_v3 = vadd.f32 %v2339_v41, %v2267_v55  ;;  %v2348_v13 = vadd.f32 %v2341_v46, %v2268_v24 }
 0x328   : > { %v2406_v42 = vadd.f32 %v2403_v20, %v2347_v3  ;;  %v2407_v4 = vadd.f32 %v2404_v16, %v2348_v13 }
 0x329   : > { %v2343_v51 = vpop.permute.xlu1 %2342  ;;  %v2359_v19 = vpop.permute.xlu0 %2358 }
 0x32a   : > { %v2367_v26 = vadd.f32 %v2359_v19, %v2287_v61  ;;  %v2349_v50 = vadd.f32 %v2343_v51, %v4625_v31 }
 0x32c   : > { %v2414_v27 = vadd.f32 %v2411_v59, %v2367_v26  ;;  %v2408_v31 = vadd.f32 %v2405_v2, %v2349_v50 }
 0x32d   : > { %v2361_v53 = vpop.permute.xlu1 %2360  ;;  %v2363_v14 = vpop.permute.xlu0 %2362 }
 0x32e   : > { %v2368_v57 = vadd.f32 %v2361_v53, %v2288_v34  ;;  %v2369_v46 = vadd.f32 %v2363_v14, %v4627_v52  ;;  %v2421_v53 = vmul.f32 %v4637_v9, %v4520_v38 }
 0x330   : > { %v4639_v58 = vadd.f32 %v2412_v48, %v2368_v57 }
 0x331   : > { %v2379_v17 = vpop.permute.xlu1 %2378  ;;  %v2381_v54 = vpop.permute.xlu0 %2380 }
 0x332   : > { %v2387_v12 = vadd.f32 %v2379_v17, %v2307_v39  ;;  %v2388_v45 = vadd.f32 %v2381_v54, %v2308_v7  ;;  %v2400_v39 = vadd.f32 %v2397_v15, %v2329_v32 }
 0x334   : > { %v4645_v23 = vadd.f32 %v2419_v30, %v2387_v12  ;;  %v4647_v60 = vadd.f32 %v2420_v18, %v2388_v45 }
 0x335   : > { %v2383_v22 = vpop.permute.xlu1 %2382  ;;  %v2434_v63 = vpop.permute.xlu0 %2433 }
 0x336   : > { %v2442_v34 = vadd.f32 %v2434_v63, %v2398_v25 }
 0x339   : > { %v2436_v62 = vpop.permute.xlu1 %2435  ;;  %v2438_v29 = vpop.permute.xlu0 %2437 }
 0x33a   : > { %v2443_v11 = vadd.f32 %v2436_v62, %v2399_v33  ;;  %v2444_v56 = vadd.f32 %v2438_v29, %v2400_v39 }
 0x33d   : > { %v2454_v36 = vpop.permute.xlu1 %2453  ;;  %v2456_v55 = vpop.permute.xlu0 %2455 }
 0x33e   : > { %v2462_v6 = vadd.f32 %v2454_v36, %v2406_v42  ;;  %v2463_v8 = vadd.f32 %v2456_v55, %v2407_v4  ;;  %v2416_v4 = vadd.f32 %v2413_v1, %v2369_v46 }
 0x341   : > { %v2458_v24 = vpop.permute.xlu1 %2457  ;;  %v2474_v37 = vpop.permute.xlu0 %2473 }
 0x342   : > { %v2464_v13 = vadd.f32 %v2458_v24, %v2408_v31  ;;  %v2482_v20 = vadd.f32 %v2474_v37, %v2414_v27  ;;  %v2389_v27 = vadd.f32 %v2383_v22, %v4629_v40 }
 0x344   : > { %v2424_v12 = vadd.f32 %v2421_v53, %v2389_v27 }
 0x345   : > { %v2476_v5 = vpop.permute.xlu1 %2475  ;;  %v2478_v61 = vpop.permute.xlu0 %2477 }
 0x346   : > { %v2483_v19 = vadd.f32 %v2476_v5, %v4639_v58  ;;  %v2484_v52 = vadd.f32 %v2478_v61, %v2416_v4 }
 0x349   : > { %v2494_v10 = vpop.permute.xlu1 %2493  ;;  %v2496_v35 = vpop.permute.xlu0 %2495 }
 0x34a   : > { %v2502_v48 = vadd.f32 %v2494_v10, %v4645_v23  ;;  %v2503_v58 = vadd.f32 %v2496_v35, %v4647_v60 }
 0x34d   : > { %v2498_v28 = vpop.permute.xlu1 %2497  ;;  %v2514_v0 = vpop.permute.xlu0 %2513 }
 0x34e   : > { %v2522_v7 = vadd.f32 %v2514_v0, %v2442_v34  ;;  %v2504_v40 = vadd.f32 %v2498_v28, %v2424_v12 }
 0x350   : > { %2586 = vst.msk [vmem:[%s4656_s28] sm:$0xff] %vm2585_vm3, %v2522_v7 }
 0x351   : > { %v2516_v44 = vpop.permute.xlu1 %2515  ;;  %v2518_v49 = vpop.permute.xlu0 %2517 }
 0x352   : > { %v2523_v25 = vadd.f32 %v2516_v44, %v2443_v11  ;;  %v2524_v47 = vadd.f32 %v2518_v49, %v2444_v56 }
 0x354   : > { %2587 = vst.msk [vmem:[%s4656_s28 + $0x8] sm:$0xff] %vm2585_vm3, %v2523_v25 }
 0x355   : > { %2589 = vst.msk [vmem:[%s4656_s28 + $0x10] sm:$0x3] %vm2588_vm4, %v2524_v47  ;;  %v2534_v33 = vpop.permute.xlu1 %2533  ;;  %v2536_v41 = vpop.permute.xlu0 %2535 }
 0x356   : > { %v2542_v43 = vadd.f32 %v2534_v33, %v2462_v6  ;;  %v2543_v3 = vadd.f32 %v2536_v41, %v2463_v8 }
 0x358   : > { %2841 = vst.msk [vmem:[%s4656_s28 + $0x18] sm:$0xff] %vm2585_vm3, %v2542_v43  ;;  %2842 = vst.msk [vmem:[%s4656_s28 + $0x20] sm:$0xff] %vm2585_vm3, %v2543_v3 }
 0x359   : > { %v2538_v16 = vpop.permute.xlu1 %2537  ;;  %v2554_v42 = vpop.permute.xlu0 %2553 }
 0x35a   : > { %v2544_v21 = vadd.f32 %v2538_v16, %v2464_v13  ;;  %v2562_v51 = vadd.f32 %v2554_v42, %v2482_v20 }
 0x35c   : > { %2843 = vst.msk [vmem:[%s4656_s28 + $0x28] sm:$0x3] %vm2588_vm4, %v2544_v21 }
 0x35d   : > { %2844 = vst.msk [vmem:[%s4656_s28 + $0x30] sm:$0xff] %vm2585_vm3, %v2562_v51  ;;  %v2556_v26 = vpop.permute.xlu1 %2555  ;;  %v2558_v59 = vpop.permute.xlu0 %2557 }
 0x35e   : > { %v2563_v14 = vadd.f32 %v2556_v26, %v2483_v19  ;;  %v2564_v57 = vadd.f32 %v2558_v59, %v2484_v52 }
 0x360   : > { %2845 = vst.msk [vmem:[%s4656_s28 + $0x38] sm:$0xff] %vm2585_vm3, %v2563_v14 }
 0x361   : > { %2846 = vst.msk [vmem:[%s4656_s28 + $0x40] sm:$0x3] %vm2588_vm4, %v2564_v57  ;;  %v2574_v17 = vpop.permute.xlu1 %2573  ;;  %v2576_v54 = vpop.permute.xlu0 %2575 }
 0x362   : > { %v2582_v45 = vadd.f32 %v2574_v17, %v2502_v48  ;;  %v2583_v30 = vadd.f32 %v2576_v54, %v2503_v58 }
 0x364   : > { %2847 = vst.msk [vmem:[%s4656_s28 + $0x48] sm:$0xff] %vm2585_vm3, %v2582_v45  ;;  %2848 = vst.msk [vmem:[%s4656_s28 + $0x50] sm:$0xff] %vm2585_vm3, %v2583_v30 }
 0x365   : > { %v2578_v38 = vpop.permute.xlu1 %2577 }
 0x366   : > { %v2584_v9 = vadd.f32 %v2578_v38, %v2504_v40 }
 0x368   : > { %2849 = vst.msk [vmem:[%s4656_s28 + $0x58] sm:$0x3] %vm2588_vm4, %v2584_v9 }
 0x369 PF: > { %p13_p9 = scmp.ge.s32.totalorder %s3031_s14, 4   ;;  %s4718_s9 = smov %s2980_s10 }
 0x36a   : > { %s4719_s10 = smov %s2984_s11  ;;  %s4720_s11 = smov %s3039_s17 }
 0x36b   : > { %s4721_s12 = smov %s3031_s14  ;;  %15 = sbr.rel (!%p13_p9) target bundleno = 4 (0x4), region = 82 }
 0x370   :  { %2623 = vsyncpa [#allocation4], 1 }
 0x371   :  { %2625 = vsyncpa [#allocation4 + $0x1], 1 }
 0x372   :  { %2626 = vsyncpa [#allocation5], 1 }
 0x373   :  { %2628 = vsyncpa [#allocation5 + $0x1], 1 }

</bundles_post_ra>
